<compile_context>
chip_gen: v7x
topology: tpu7x:2x2x1
jax: 0.10.0
libtpu: 0.0.40
codegen_flags: <defaults>
</compile_context>

<pallas_src>
import functools

import jax
import jax.numpy as jnp
import numpy as np
from jax.experimental import pallas as pl
from jax.experimental.pallas import tpu as pltpu

_ROWS = 8  # packed feature rows per batch: [mean, std, cr, 1, aux, 0, 0, 0]


# ----------------------------- Pallas kernel ------------------------------ #
def _nv_kernel(S, W, LANES, b_blk,
               feats_ref, w1_ref, w2_ref, b2_ref, w3_ref, b3_ref, out_ref):
    """One grid step: b_blk batches fused along lanes.

    feats_ref : (1, 8, b_blk*LANES)  rows = [mean, std, cr, 1, aux, 0, 0, 0]
                aux lanes per batch  = [sinv_sum(0:S) | wpos(S:S+W) |
                                        wlimit | wh_base | wh_cap | 0...]
    out_ref   : (1, 1, b_blk*LANES)  lanes per batch = [stores(0:S) |
                                        warehouses(S:S+W) | 0...]
    """
    feats = feats_ref[0]                                       # (8, L_TOT)

    # ---- store MLP, fused across the whole batch block (3 MXU matmuls) ----
    # layer 1 + bias folded into one augmented matmul (ones row carries b1;
    # aux row hits an all-zero weight column so it does not perturb h).
    h = jnp.dot(w1_ref[...], feats, preferred_element_type=jnp.float32)
    h = jnp.maximum(h, 0.0)                                    # (H, L_TOT)
    h = jnp.dot(w2_ref[...], h, preferred_element_type=jnp.float32) + b2_ref[...]
    h = jnp.maximum(h, 0.0)
    out = jnp.dot(w3_ref[...], h, preferred_element_type=jnp.float32) + b3_ref[...]
    base = out[0:1, :]                                         # base-stock levels
    caps = out[1:2, :]                                         # store caps
    aux = feats[4:5, :]                                        # packed per-batch scalars

    # ---- hoisted per-segment masks (shared by every batch in the block) ----
    loc = jax.lax.broadcasted_iota(jnp.int32, (1, LANES), 1)
    store_m = loc < S
    wh_m = (loc >= S) & (loc < S + W)

    # ---- tiny per-batch epilogue: segmented reduce + proportional scale ----
    for b in range(b_blk):
        lo = b * LANES
        sl = slice(lo, lo + LANES)
        aux_b = aux[:, sl]
        inter = jnp.where(
            store_m,
            jnp.minimum(jnp.maximum(base[:, sl] - aux_b, 0.0), caps[:, sl]),
            0.0)                                               # (1, LANES)
        sum_alloc = jnp.sum(inter, axis=1, keepdims=True)      # (1, 1)
        wlimit = aux_b[:, S + W:S + W + 1]
        scale = jnp.minimum(
            wlimit * pl.reciprocal(sum_alloc + 1e-15, approx=True), 1.0)
        wh_base = aux_b[:, S + W + 1:S + W + 2]
        wh_cap = aux_b[:, S + W + 2:S + W + 3]
        wh = jnp.minimum(jnp.maximum(wh_base - aux_b, 0.0), wh_cap)
        seg = jnp.where(store_m, inter * scale, jnp.where(wh_m, wh, 0.0))
        out_ref[:, :, sl] = seg[None]                          # aligned 128-lane store


# ------------------------------ wrapper ----------------------------------- #
def transformed_nv_forward(obs, params, n_stores, batches_per_block=None):
    f32 = jnp.float32
    mean = obs['mean'].astype(f32)
    std = obs['std'].astype(f32)
    und = obs['underage_costs'].astype(f32)
    hold = obs['holding_costs'].astype(f32)
    sinv = obs['store_inventories'].astype(f32)
    winv = obs['warehouse_inventories'].astype(f32)

    B, S = mean.shape
    W = winv.shape[1]
    H = params['w1'].shape[1]
    # lanes per batch: stores, warehouses, wlimit, wh_base, wh_cap -> pad to 128
    # TODO(synk): for S << 128 one could further pack several batches into one
    # 128-lane segment (segmented lane reductions) to raise lane occupancy.
    LANES = -(-(S + W + 3) // 128) * 128

    # ---- batch-block size: prefer grid >= 4 (2+ steps per TC on v7x) ----
    if batches_per_block is None:
        divisors = [c for c in (64, 32, 16, 8, 4, 2, 1) if B % c == 0]
        pref = [c for c in divisors if B // c >= 4]
        batches_per_block = (pref or divisors)[0]
    b_blk = int(batches_per_block)
    assert B % b_blk == 0, "batches_per_block must divide the batch size"
    G = B // b_blk
    L_TOT = b_blk * LANES

    # ---- wrapper-side packing (layout plumbing + cheap elementwise glue) ----
    cr = und / (und + hold)
    sinv_sum = jnp.sum(sinv, axis=2)                           # (B, S)
    wpos = jnp.sum(winv, axis=2)                               # (B, W)
    wlimit = winv[:, 0, 0]                                     # (B,)

    # warehouse head is parameter-only because the module feeds the constant 0.0.
    # TODO(synk): folding relu(wh_b1) @ wh_w2 + wh_b2 is valid only for the
    # constant-zero warehouse-net input used by the original forward.
    wh_h = jax.nn.relu(params['wh_b1'].astype(f32))
    wh_out = wh_h @ params['wh_w2'].astype(f32) + params['wh_b2'].astype(f32)
    wh_base = wh_out[0] * float(n_stores)
    wh_cap = wh_out[1] * float(n_stores)

    aux = jnp.zeros((B, LANES), f32)
    aux = aux.at[:, :S].set(sinv_sum)
    aux = aux.at[:, S:S + W].set(wpos)
    aux = aux.at[:, S + W].set(wlimit)
    aux = aux.at[:, S + W + 1].set(wh_base)
    aux = aux.at[:, S + W + 2].set(wh_cap)

    def lane_pad(x):                                           # (B, S) -> (B, LANES)
        return jnp.pad(x, ((0, 0), (0, LANES - S)))

    zeros = jnp.zeros((B, LANES), f32)
    feats = jnp.stack(
        [lane_pad(mean), lane_pad(std), lane_pad(cr),
         jnp.ones((B, LANES), f32),                            # bias column for layer 1
         aux, zeros, zeros, zeros], axis=1)                    # (B, 8, LANES)
    # fold the batch block into lanes: (G, 8, b_blk*LANES)
    feats = feats.reshape(G, b_blk, _ROWS, LANES).transpose(0, 2, 1, 3)
    feats = feats.reshape(G, _ROWS, L_TOT)

    # transposed store-net weights; layer-1 weight augmented with its bias.
    w1aug = jnp.zeros((H, _ROWS), f32)
    w1aug = w1aug.at[:, 0:3].set(params['w1'].T.astype(f32))
    w1aug = w1aug.at[:, 3].set(params['b1'].astype(f32))
    w2t = params['w2'].T.astype(f32)                           # (H, H)
    b2c = params['b2'].reshape(H, 1).astype(f32)
    w3t = jnp.zeros((_ROWS, H), f32).at[0:2, :].set(params['w3'].T.astype(f32))
    b3c = jnp.zeros((_ROWS, 1), f32).at[0:2, 0].set(params['b3'].astype(f32))

    kernel = functools.partial(_nv_kernel, int(S), int(W), int(LANES), b_blk)
    packed = pl.pallas_call(
        kernel,
        out_shape=jax.ShapeDtypeStruct((G, 1, L_TOT), f32),
        grid=(G,),
        in_specs=[
            pl.BlockSpec((1, _ROWS, L_TOT), lambda i: (i, 0, 0)),  # packed feats
            pl.BlockSpec((H, _ROWS), lambda i: (0, 0)),            # w1 (augmented)
            pl.BlockSpec((H, H), lambda i: (0, 0)),                # w2^T
            pl.BlockSpec((H, 1), lambda i: (0, 0)),                # b2
            pl.BlockSpec((_ROWS, H), lambda i: (0, 0)),            # w3^T (padded)
            pl.BlockSpec((_ROWS, 1), lambda i: (0, 0)),            # b3 (padded)
        ],
        out_specs=pl.BlockSpec((1, 1, L_TOT), lambda i: (i, 0, 0)),
        compiler_params=pltpu.CompilerParams(
            dimension_semantics=("parallel",)),
    )(feats, w1aug, w2t, b2c, w3t, b3c)

    rows = packed.reshape(B, LANES)
    return {'stores': rows[:, :S],                             # (B, S)
            'warehouses': rows[:, S:S + W]}                    # (B, W)


# --------------------------- pure-JAX reference ---------------------------- #
def reference_forward(obs, params, n_stores):
    mean, std = obs['mean'], obs['std']
    und, hold = obs['underage_costs'], obs['holding_costs']
    sinv, winv = obs['store_inventories'], obs['warehouse_inventories']

    cr = und / (und + hold)
    x = jnp.stack([mean, std, cr], axis=-1)                    # (B, S, 3)
    h1 = jax.nn.relu(x @ params['w1'] + params['b1'])
    h2 = jax.nn.relu(h1 @ params['w2'] + params['b2'])
    out = h2 @ params['w3'] + params['b3']                     # (B, S, 2)
    base, caps = out[..., 0], out[..., 1]

    uncapped = base - sinv.sum(axis=2)
    inter = jnp.minimum(jnp.maximum(uncapped, 0.0), caps)

    total_lim = winv[:, 0, 0]
    sum_alloc = inter.sum(axis=1)
    stores = inter * jnp.minimum(total_lim / (sum_alloc + 1e-15), 1.0)[:, None]

    wh_in = jnp.zeros((1,), jnp.float32)
    wh_h = jax.nn.relu(wh_in @ params['wh_w1'] + params['wh_b1'])
    wh_out = wh_h @ params['wh_w2'] + params['wh_b2']
    wh_base = wh_out[0] * n_stores
    wh_cap = wh_out[1] * n_stores
    wpos = winv.sum(axis=2)
    warehouses = jnp.minimum(jnp.maximum(wh_base - wpos, 0.0), wh_cap)
    return {'stores': stores, 'warehouses': warehouses}


# ------------------------- deterministic params ---------------------------- #
def init_params(key, hidden=32, wh_hidden=16):
    ks = jax.random.split(key, 10)

    def lin(kw, kb, fan_in, fan_out):
        bound = 1.0 / np.sqrt(fan_in)
        w = jax.random.uniform(kw, (fan_in, fan_out), jnp.float32, -bound, bound)
        b = jax.random.uniform(kb, (fan_out,), jnp.float32, -bound, bound)
        return w, b

    w1, b1 = lin(ks[0], ks[1], 3, hidden)
    w2, b2 = lin(ks[2], ks[3], hidden, hidden)
    w3, b3 = lin(ks[4], ks[5], hidden, 2)
    wh_w1, wh_b1 = lin(ks[6], ks[7], 1, wh_hidden)
    wh_w2, wh_b2 = lin(ks[8], ks[9], wh_hidden, 2)
    return dict(w1=w1, b1=b1, w2=w2, b2=b2, w3=w3, b3=b3,
                wh_w1=wh_w1, wh_b1=wh_b1, wh_w2=wh_w2, wh_b2=wh_b2)


# --------------------------------- main ------------------------------------ #
if __name__ == "__main__":
    B, S, L = 64, 8, 3          # batch, n_stores, store lead time
    W, Lw = 1, 2                # n_warehouses, warehouse lead time

    key = jax.random.PRNGKey(0)
    kp, k1, k2, k3, k4, k5, k6 = jax.random.split(key, 7)
    params = init_params(kp)

    obs = {
        'mean': jax.random.uniform(k1, (B, S), jnp.float32, 1.0, 10.0),
        'std': jax.random.uniform(k2, (B, S), jnp.float32, 0.1, 3.0),
        'underage_costs': jax.random.uniform(k3, (B, S), jnp.float32, 1.0, 10.0),
        'holding_costs': jax.random.uniform(k4, (B, S), jnp.float32, 0.1, 2.0),
        'store_inventories': jax.random.uniform(k5, (B, S, L), jnp.float32, 0.0, 3.0),
        'warehouse_inventories': jax.random.uniform(k6, (B, W, Lw), jnp.float32, 0.0, 20.0),
    }

    out = transformed_nv_forward(obs, params, n_stores=S)
    out = jax.tree_util.tree_map(jax.block_until_ready, out)

    ref = reference_forward(obs, params, n_stores=S)
    np.testing.assert_allclose(np.asarray(out['stores']),
                               np.asarray(ref['stores']), rtol=2e-2, atol=1e-2)
    np.testing.assert_allclose(np.asarray(out['warehouses']),
                               np.asarray(ref['warehouses']), rtol=2e-2, atol=1e-2)

    print("KERNEL_OK")
</pallas_src>

<mosaic_0001>
module attributes {stable_mosaic.version = 11 : i64} {
  func.func @_nv_kernel(%arg0: i32, %arg1: memref<1x8x2048xf32, #tpu.memory_space<vmem>>, %arg2: memref<32x8xf32, #tpu.memory_space<vmem>>, %arg3: memref<32x32xf32, #tpu.memory_space<vmem>>, %arg4: memref<32x1xf32, #tpu.memory_space<vmem>>, %arg5: memref<8x32xf32, #tpu.memory_space<vmem>>, %arg6: memref<8x1xf32, #tpu.memory_space<vmem>>, %arg7: memref<1x1x2048xf32, #tpu.memory_space<vmem>>) attributes {dimension_semantics = [#tpu.dimension_semantics<parallel>], iteration_bounds = array<i64: 4>, scalar_prefetch = 0 : i64, scratch_operands = 0 : i64, tpu.core_type = #tpu.core_type<tc>, window_params = [{transform_indices = @transform_0, window_bounds = array<i64: 1, 8, 2048>}, {pipeline_mode = #tpu.pipeline_mode<synchronous>, transform_indices = @transform_1, window_bounds = array<i64: 32, 8>}, {pipeline_mode = #tpu.pipeline_mode<synchronous>, transform_indices = @transform_2, window_bounds = array<i64: 32, 32>}, {pipeline_mode = #tpu.pipeline_mode<synchronous>, transform_indices = @transform_3, window_bounds = array<i64: 32, 1>}, {pipeline_mode = #tpu.pipeline_mode<synchronous>, transform_indices = @transform_4, window_bounds = array<i64: 8, 32>}, {pipeline_mode = #tpu.pipeline_mode<synchronous>, transform_indices = @transform_5, window_bounds = array<i64: 8, 1>}, {transform_indices = @transform_6, window_bounds = array<i64: 1, 1, 2048>}]} {
    %c0 = arith.constant 0 : index
    %c0_0 = arith.constant 0 : index
    %c0_1 = arith.constant 0 : index
    %0 = vector.load %arg1[%c0, %c0_0, %c0_1] : memref<1x8x2048xf32, #tpu.memory_space<vmem>>, vector<1x8x2048xf32>
    %1 = vector.shape_cast %0 : vector<1x8x2048xf32> to vector<8x2048xf32>
    %c0_2 = arith.constant 0 : index
    %c0_3 = arith.constant 0 : index
    %2 = vector.load %arg2[%c0_2, %c0_3] : memref<32x8xf32, #tpu.memory_space<vmem>>, vector<32x8xf32>
    %cst = arith.constant dense<0.000000e+00> : vector<32x2048xf32>
    %3 = tpu.matmul %2, %1, %cst {dimension_numbers = #tpu.dot_dimension_numbers<[1], [0], [0], [1], [0, 0, 1, 1], [], []>} : vector<32x8xf32>, vector<8x2048xf32>, vector<32x2048xf32> -> vector<32x2048xf32>
    %cst_4 = arith.constant 0.000000e+00 : f32
    %4 = vector.broadcast %cst_4 : f32 to vector<32x2048xf32>
    %5 = arith.maximumf %3, %4 : vector<32x2048xf32>
    %c0_5 = arith.constant 0 : index
    %c0_6 = arith.constant 0 : index
    %6 = vector.load %arg3[%c0_5, %c0_6] : memref<32x32xf32, #tpu.memory_space<vmem>>, vector<32x32xf32>
    %cst_7 = arith.constant dense<0.000000e+00> : vector<32x2048xf32>
    %7 = tpu.matmul %6, %5, %cst_7 {dimension_numbers = #tpu.dot_dimension_numbers<[1], [0], [0], [1], [0, 0, 1, 1], [], []>} : vector<32x32xf32>, vector<32x2048xf32>, vector<32x2048xf32> -> vector<32x2048xf32>
    %c0_8 = arith.constant 0 : index
    %c0_9 = arith.constant 0 : index
    %8 = vector.load %arg4[%c0_8, %c0_9] : memref<32x1xf32, #tpu.memory_space<vmem>>, vector<32x1xf32>
    %9 = vector.broadcast %8 : vector<32x1xf32> to vector<32x2048xf32>
    %10 = arith.addf %7, %9 : vector<32x2048xf32>
    %cst_10 = arith.constant 0.000000e+00 : f32
    %11 = vector.broadcast %cst_10 : f32 to vector<32x2048xf32>
    %12 = arith.maximumf %10, %11 : vector<32x2048xf32>
    %c0_11 = arith.constant 0 : index
    %c0_12 = arith.constant 0 : index
    %13 = vector.load %arg5[%c0_11, %c0_12] : memref<8x32xf32, #tpu.memory_space<vmem>>, vector<8x32xf32>
    %cst_13 = arith.constant dense<0.000000e+00> : vector<8x2048xf32>
    %14 = tpu.matmul %13, %12, %cst_13 {dimension_numbers = #tpu.dot_dimension_numbers<[1], [0], [0], [1], [0, 0, 1, 1], [], []>} : vector<8x32xf32>, vector<32x2048xf32>, vector<8x2048xf32> -> vector<8x2048xf32>
    %c0_14 = arith.constant 0 : index
    %c0_15 = arith.constant 0 : index
    %15 = vector.load %arg6[%c0_14, %c0_15] : memref<8x1xf32, #tpu.memory_space<vmem>>, vector<8x1xf32>
    %16 = vector.broadcast %15 : vector<8x1xf32> to vector<8x2048xf32>
    %17 = arith.addf %14, %16 : vector<8x2048xf32>
    %18 = vector.extract_strided_slice %17 {offsets = [0, 0], sizes = [1, 2048], strides = [1, 1]} : vector<8x2048xf32> to vector<1x2048xf32>
    %19 = vector.extract_strided_slice %17 {offsets = [1, 0], sizes = [1, 2048], strides = [1, 1]} : vector<8x2048xf32> to vector<1x2048xf32>
    %20 = vector.extract_strided_slice %1 {offsets = [4, 0], sizes = [1, 2048], strides = [1, 1]} : vector<8x2048xf32> to vector<1x2048xf32>
    %21 = tpu.iota {dimensions = array<i32: 1>} : vector<1x128xi32>
    %c8_i32 = arith.constant 8 : i32
    %22 = vector.broadcast %c8_i32 : i32 to vector<1x128xi32>
    %23 = arith.cmpi slt, %21, %22 : vector<1x128xi32>
    %c8_i32_16 = arith.constant 8 : i32
    %24 = vector.broadcast %c8_i32_16 : i32 to vector<1x128xi32>
    %25 = arith.cmpi sge, %21, %24 : vector<1x128xi32>
    %c9_i32 = arith.constant 9 : i32
    %26 = vector.broadcast %c9_i32 : i32 to vector<1x128xi32>
    %27 = arith.cmpi slt, %21, %26 : vector<1x128xi32>
    %28 = arith.andi %25, %27 : vector<1x128xi1>
    %29 = vector.extract_strided_slice %20 {offsets = [0, 0], sizes = [1, 128], strides = [1, 1]} : vector<1x2048xf32> to vector<1x128xf32>
    %30 = vector.extract_strided_slice %18 {offsets = [0, 0], sizes = [1, 128], strides = [1, 1]} : vector<1x2048xf32> to vector<1x128xf32>
    %31 = arith.subf %30, %29 : vector<1x128xf32>
    %cst_17 = arith.constant 0.000000e+00 : f32
    %32 = vector.broadcast %cst_17 : f32 to vector<1x128xf32>
    %33 = arith.maximumf %31, %32 : vector<1x128xf32>
    %34 = vector.extract_strided_slice %19 {offsets = [0, 0], sizes = [1, 128], strides = [1, 1]} : vector<1x2048xf32> to vector<1x128xf32>
    %35 = arith.minimumf %33, %34 : vector<1x128xf32>
    %cst_18 = arith.constant 0.000000e+00 : f32
    %36 = vector.broadcast %cst_18 : f32 to vector<1x128xf32>
    %37 = arith.select %23, %35, %36 : vector<1x128xi1>, vector<1x128xf32>
    %cst_19 = arith.constant dense<0.000000e+00> : vector<1xf32>
    %38 = vector.multi_reduction <add>, %37, %cst_19 [1] : vector<1x128xf32> to vector<1xf32>
    %39 = vector.shape_cast %38 : vector<1xf32> to vector<1x1xf32>
    %40 = vector.extract_strided_slice %29 {offsets = [0, 9], sizes = [1, 1], strides = [1, 1]} : vector<1x128xf32> to vector<1x1xf32>
    %cst_20 = arith.constant 1.000000e-15 : f32
    %41 = vector.broadcast %cst_20 : f32 to vector<1x1xf32>
    %42 = arith.addf %39, %41 : vector<1x1xf32>
    %43 = tpu.reciprocal %42 {approx = true} : vector<1x1xf32> -> vector<1x1xf32>
    %44 = arith.mulf %40, %43 : vector<1x1xf32>
    %cst_21 = arith.constant 1.000000e+00 : f32
    %45 = vector.broadcast %cst_21 : f32 to vector<1x1xf32>
    %46 = arith.minimumf %44, %45 : vector<1x1xf32>
    %47 = vector.extract_strided_slice %29 {offsets = [0, 10], sizes = [1, 1], strides = [1, 1]} : vector<1x128xf32> to vector<1x1xf32>
    %48 = vector.extract_strided_slice %29 {offsets = [0, 11], sizes = [1, 1], strides = [1, 1]} : vector<1x128xf32> to vector<1x1xf32>
    %49 = vector.broadcast %47 : vector<1x1xf32> to vector<1x128xf32>
    %50 = arith.subf %49, %29 : vector<1x128xf32>
    %cst_22 = arith.constant 0.000000e+00 : f32
    %51 = vector.broadcast %cst_22 : f32 to vector<1x128xf32>
    %52 = arith.maximumf %50, %51 : vector<1x128xf32>
    %53 = vector.broadcast %48 : vector<1x1xf32> to vector<1x128xf32>
    %54 = arith.minimumf %52, %53 : vector<1x128xf32>
    %55 = vector.broadcast %46 : vector<1x1xf32> to vector<1x128xf32>
    %56 = arith.mulf %37, %55 : vector<1x128xf32>
    %cst_23 = arith.constant 0.000000e+00 : f32
    %57 = vector.broadcast %cst_23 : f32 to vector<1x128xf32>
    %58 = arith.select %28, %54, %57 : vector<1x128xi1>, vector<1x128xf32>
    %59 = arith.select %23, %56, %58 : vector<1x128xi1>, vector<1x128xf32>
    %60 = vector.shape_cast %59 : vector<1x128xf32> to vector<1x1x128xf32>
    %c0_24 = arith.constant 0 : index
    %c0_25 = arith.constant 0 : index
    %c0_26 = arith.constant 0 : index
    %61 = vector.load %arg7[%c0_24, %c0_25, %c0_26] : memref<1x1x2048xf32, #tpu.memory_space<vmem>>, vector<1x1x128xf32>
    tpu.vector_store %arg7[%c0_24, %c0_25, %c0_26], %60 {strides = array<i32>} : memref<1x1x2048xf32, #tpu.memory_space<vmem>>, vector<1x1x128xf32>,
    %62 = vector.extract_strided_slice %20 {offsets = [0, 128], sizes = [1, 128], strides = [1, 1]} : vector<1x2048xf32> to vector<1x128xf32>
    %63 = vector.extract_strided_slice %18 {offsets = [0, 128], sizes = [1, 128], strides = [1, 1]} : vector<1x2048xf32> to vector<1x128xf32>
    %64 = arith.subf %63, %62 : vector<1x128xf32>
    %cst_27 = arith.constant 0.000000e+00 : f32
    %65 = vector.broadcast %cst_27 : f32 to vector<1x128xf32>
    %66 = arith.maximumf %64, %65 : vector<1x128xf32>
    %67 = vector.extract_strided_slice %19 {offsets = [0, 128], sizes = [1, 128], strides = [1, 1]} : vector<1x2048xf32> to vector<1x128xf32>
    %68 = arith.minimumf %66, %67 : vector<1x128xf32>
    %cst_28 = arith.constant 0.000000e+00 : f32
    %69 = vector.broadcast %cst_28 : f32 to vector<1x128xf32>
    %70 = arith.select %23, %68, %69 : vector<1x128xi1>, vector<1x128xf32>
    %cst_29 = arith.constant dense<0.000000e+00> : vector<1xf32>
    %71 = vector.multi_reduction <add>, %70, %cst_29 [1] : vector<1x128xf32> to vector<1xf32>
    %72 = vector.shape_cast %71 : vector<1xf32> to vector<1x1xf32>
    %73 = vector.extract_strided_slice %62 {offsets = [0, 9], sizes = [1, 1], strides = [1, 1]} : vector<1x128xf32> to vector<1x1xf32>
    %cst_30 = arith.constant 1.000000e-15 : f32
    %74 = vector.broadcast %cst_30 : f32 to vector<1x1xf32>
    %75 = arith.addf %72, %74 : vector<1x1xf32>
    %76 = tpu.reciprocal %75 {approx = true} : vector<1x1xf32> -> vector<1x1xf32>
    %77 = arith.mulf %73, %76 : vector<1x1xf32>
    %cst_31 = arith.constant 1.000000e+00 : f32
    %78 = vector.broadcast %cst_31 : f32 to vector<1x1xf32>
    %79 = arith.minimumf %77, %78 : vector<1x1xf32>
    %80 = vector.extract_strided_slice %62 {offsets = [0, 10], sizes = [1, 1], strides = [1, 1]} : vector<1x128xf32> to vector<1x1xf32>
    %81 = vector.extract_strided_slice %62 {offsets = [0, 11], sizes = [1, 1], strides = [1, 1]} : vector<1x128xf32> to vector<1x1xf32>
    %82 = vector.broadcast %80 : vector<1x1xf32> to vector<1x128xf32>
    %83 = arith.subf %82, %62 : vector<1x128xf32>
    %cst_32 = arith.constant 0.000000e+00 : f32
    %84 = vector.broadcast %cst_32 : f32 to vector<1x128xf32>
    %85 = arith.maximumf %83, %84 : vector<1x128xf32>
    %86 = vector.broadcast %81 : vector<1x1xf32> to vector<1x128xf32>
    %87 = arith.minimumf %85, %86 : vector<1x128xf32>
    %88 = vector.broadcast %79 : vector<1x1xf32> to vector<1x128xf32>
    %89 = arith.mulf %70, %88 : vector<1x128xf32>
    %cst_33 = arith.constant 0.000000e+00 : f32
    %90 = vector.broadcast %cst_33 : f32 to vector<1x128xf32>
    %91 = arith.select %28, %87, %90 : vector<1x128xi1>, vector<1x128xf32>
    %92 = arith.select %23, %89, %91 : vector<1x128xi1>, vector<1x128xf32>
    %93 = vector.shape_cast %92 : vector<1x128xf32> to vector<1x1x128xf32>
    %c0_34 = arith.constant 0 : index
    %c0_35 = arith.constant 0 : index
    %c128 = arith.constant 128 : index
    %94 = vector.load %arg7[%c0_34, %c0_35, %c128] : memref<1x1x2048xf32, #tpu.memory_space<vmem>>, vector<1x1x128xf32>
    tpu.vector_store %arg7[%c0_34, %c0_35, %c128], %93 {strides = array<i32>} : memref<1x1x2048xf32, #tpu.memory_space<vmem>>, vector<1x1x128xf32>,
    %95 = vector.extract_strided_slice %20 {offsets = [0, 256], sizes = [1, 128], strides = [1, 1]} : vector<1x2048xf32> to vector<1x128xf32>
    %96 = vector.extract_strided_slice %18 {offsets = [0, 256], sizes = [1, 128], strides = [1, 1]} : vector<1x2048xf32> to vector<1x128xf32>
    %97 = arith.subf %96, %95 : vector<1x128xf32>
    %cst_36 = arith.constant 0.000000e+00 : f32
    %98 = vector.broadcast %cst_36 : f32 to vector<1x128xf32>
    %99 = arith.maximumf %97, %98 : vector<1x128xf32>
    %100 = vector.extract_strided_slice %19 {offsets = [0, 256], sizes = [1, 128], strides = [1, 1]} : vector<1x2048xf32> to vector<1x128xf32>
    %101 = arith.minimumf %99, %100 : vector<1x128xf32>
    %cst_37 = arith.constant 0.000000e+00 : f32
    %102 = vector.broadcast %cst_37 : f32 to vector<1x128xf32>
    %103 = arith.select %23, %101, %102 : vector<1x128xi1>, vector<1x128xf32>
    %cst_38 = arith.constant dense<0.000000e+00> : vector<1xf32>
    %104 = vector.multi_reduction <add>, %103, %cst_38 [1] : vector<1x128xf32> to vector<1xf32>
    %105 = vector.shape_cast %104 : vector<1xf32> to vector<1x1xf32>
    %106 = vector.extract_strided_slice %95 {offsets = [0, 9], sizes = [1, 1], strides = [1, 1]} : vector<1x128xf32> to vector<1x1xf32>
    %cst_39 = arith.constant 1.000000e-15 : f32
    %107 = vector.broadcast %cst_39 : f32 to vector<1x1xf32>
    %108 = arith.addf %105, %107 : vector<1x1xf32>
    %109 = tpu.reciprocal %108 {approx = true} : vector<1x1xf32> -> vector<1x1xf32>
    %110 = arith.mulf %106, %109 : vector<1x1xf32>
    %cst_40 = arith.constant 1.000000e+00 : f32
    %111 = vector.broadcast %cst_40 : f32 to vector<1x1xf32>
    %112 = arith.minimumf %110, %111 : vector<1x1xf32>
    %113 = vector.extract_strided_slice %95 {offsets = [0, 10], sizes = [1, 1], strides = [1, 1]} : vector<1x128xf32> to vector<1x1xf32>
    %114 = vector.extract_strided_slice %95 {offsets = [0, 11], sizes = [1, 1], strides = [1, 1]} : vector<1x128xf32> to vector<1x1xf32>
    %115 = vector.broadcast %113 : vector<1x1xf32> to vector<1x128xf32>
    %116 = arith.subf %115, %95 : vector<1x128xf32>
    %cst_41 = arith.constant 0.000000e+00 : f32
    %117 = vector.broadcast %cst_41 : f32 to vector<1x128xf32>
    %118 = arith.maximumf %116, %117 : vector<1x128xf32>
    %119 = vector.broadcast %114 : vector<1x1xf32> to vector<1x128xf32>
    %120 = arith.minimumf %118, %119 : vector<1x128xf32>
    %121 = vector.broadcast %112 : vector<1x1xf32> to vector<1x128xf32>
    %122 = arith.mulf %103, %121 : vector<1x128xf32>
    %cst_42 = arith.constant 0.000000e+00 : f32
    %123 = vector.broadcast %cst_42 : f32 to vector<1x128xf32>
    %124 = arith.select %28, %120, %123 : vector<1x128xi1>, vector<1x128xf32>
    %125 = arith.select %23, %122, %124 : vector<1x128xi1>, vector<1x128xf32>
    %126 = vector.shape_cast %125 : vector<1x128xf32> to vector<1x1x128xf32>
    %c0_43 = arith.constant 0 : index
    %c0_44 = arith.constant 0 : index
    %c256 = arith.constant 256 : index
    %127 = vector.load %arg7[%c0_43, %c0_44, %c256] : memref<1x1x2048xf32, #tpu.memory_space<vmem>>, vector<1x1x128xf32>
    tpu.vector_store %arg7[%c0_43, %c0_44, %c256], %126 {strides = array<i32>} : memref<1x1x2048xf32, #tpu.memory_space<vmem>>, vector<1x1x128xf32>,
    %128 = vector.extract_strided_slice %20 {offsets = [0, 384], sizes = [1, 128], strides = [1, 1]} : vector<1x2048xf32> to vector<1x128xf32>
    %129 = vector.extract_strided_slice %18 {offsets = [0, 384], sizes = [1, 128], strides = [1, 1]} : vector<1x2048xf32> to vector<1x128xf32>
    %130 = arith.subf %129, %128 : vector<1x128xf32>
    %cst_45 = arith.constant 0.000000e+00 : f32
    %131 = vector.broadcast %cst_45 : f32 to vector<1x128xf32>
    %132 = arith.maximumf %130, %131 : vector<1x128xf32>
    %133 = vector.extract_strided_slice %19 {offsets = [0, 384], sizes = [1, 128], strides = [1, 1]} : vector<1x2048xf32> to vector<1x128xf32>
    %134 = arith.minimumf %132, %133 : vector<1x128xf32>
    %cst_46 = arith.constant 0.000000e+00 : f32
    %135 = vector.broadcast %cst_46 : f32 to vector<1x128xf32>
    %136 = arith.select %23, %134, %135 : vector<1x128xi1>, vector<1x128xf32>
    %cst_47 = arith.constant dense<0.000000e+00> : vector<1xf32>
    %137 = vector.multi_reduction <add>, %136, %cst_47 [1] : vector<1x128xf32> to vector<1xf32>
    %138 = vector.shape_cast %137 : vector<1xf32> to vector<1x1xf32>
    %139 = vector.extract_strided_slice %128 {offsets = [0, 9], sizes = [1, 1], strides = [1, 1]} : vector<1x128xf32> to vector<1x1xf32>
    %cst_48 = arith.constant 1.000000e-15 : f32
    %140 = vector.broadcast %cst_48 : f32 to vector<1x1xf32>
    %141 = arith.addf %138, %140 : vector<1x1xf32>
    %142 = tpu.reciprocal %141 {approx = true} : vector<1x1xf32> -> vector<1x1xf32>
    %143 = arith.mulf %139, %142 : vector<1x1xf32>
    %cst_49 = arith.constant 1.000000e+00 : f32
    %144 = vector.broadcast %cst_49 : f32 to vector<1x1xf32>
    %145 = arith.minimumf %143, %144 : vector<1x1xf32>
    %146 = vector.extract_strided_slice %128 {offsets = [0, 10], sizes = [1, 1], strides = [1, 1]} : vector<1x128xf32> to vector<1x1xf32>
    %147 = vector.extract_strided_slice %128 {offsets = [0, 11], sizes = [1, 1], strides = [1, 1]} : vector<1x128xf32> to vector<1x1xf32>
    %148 = vector.broadcast %146 : vector<1x1xf32> to vector<1x128xf32>
    %149 = arith.subf %148, %128 : vector<1x128xf32>
    %cst_50 = arith.constant 0.000000e+00 : f32
    %150 = vector.broadcast %cst_50 : f32 to vector<1x128xf32>
    %151 = arith.maximumf %149, %150 : vector<1x128xf32>
    %152 = vector.broadcast %147 : vector<1x1xf32> to vector<1x128xf32>
    %153 = arith.minimumf %151, %152 : vector<1x128xf32>
    %154 = vector.broadcast %145 : vector<1x1xf32> to vector<1x128xf32>
    %155 = arith.mulf %136, %154 : vector<1x128xf32>
    %cst_51 = arith.constant 0.000000e+00 : f32
    %156 = vector.broadcast %cst_51 : f32 to vector<1x128xf32>
    %157 = arith.select %28, %153, %156 : vector<1x128xi1>, vector<1x128xf32>
    %158 = arith.select %23, %155, %157 : vector<1x128xi1>, vector<1x128xf32>
    %159 = vector.shape_cast %158 : vector<1x128xf32> to vector<1x1x128xf32>
    %c0_52 = arith.constant 0 : index
    %c0_53 = arith.constant 0 : index
    %c384 = arith.constant 384 : index
    %160 = vector.load %arg7[%c0_52, %c0_53, %c384] : memref<1x1x2048xf32, #tpu.memory_space<vmem>>, vector<1x1x128xf32>
    tpu.vector_store %arg7[%c0_52, %c0_53, %c384], %159 {strides = array<i32>} : memref<1x1x2048xf32, #tpu.memory_space<vmem>>, vector<1x1x128xf32>,
    %161 = vector.extract_strided_slice %20 {offsets = [0, 512], sizes = [1, 128], strides = [1, 1]} : vector<1x2048xf32> to vector<1x128xf32>
    %162 = vector.extract_strided_slice %18 {offsets = [0, 512], sizes = [1, 128], strides = [1, 1]} : vector<1x2048xf32> to vector<1x128xf32>
    %163 = arith.subf %162, %161 : vector<1x128xf32>
    %cst_54 = arith.constant 0.000000e+00 : f32
    %164 = vector.broadcast %cst_54 : f32 to vector<1x128xf32>
    %165 = arith.maximumf %163, %164 : vector<1x128xf32>
    %166 = vector.extract_strided_slice %19 {offsets = [0, 512], sizes = [1, 128], strides = [1, 1]} : vector<1x2048xf32> to vector<1x128xf32>
    %167 = arith.minimumf %165, %166 : vector<1x128xf32>
    %cst_55 = arith.constant 0.000000e+00 : f32
    %168 = vector.broadcast %cst_55 : f32 to vector<1x128xf32>
    %169 = arith.select %23, %167, %168 : vector<1x128xi1>, vector<1x128xf32>
    %cst_56 = arith.constant dense<0.000000e+00> : vector<1xf32>
    %170 = vector.multi_reduction <add>, %169, %cst_56 [1] : vector<1x128xf32> to vector<1xf32>
    %171 = vector.shape_cast %170 : vector<1xf32> to vector<1x1xf32>
    %172 = vector.extract_strided_slice %161 {offsets = [0, 9], sizes = [1, 1], strides = [1, 1]} : vector<1x128xf32> to vector<1x1xf32>
    %cst_57 = arith.constant 1.000000e-15 : f32
    %173 = vector.broadcast %cst_57 : f32 to vector<1x1xf32>
    %174 = arith.addf %171, %173 : vector<1x1xf32>
    %175 = tpu.reciprocal %174 {approx = true} : vector<1x1xf32> -> vector<1x1xf32>
    %176 = arith.mulf %172, %175 : vector<1x1xf32>
    %cst_58 = arith.constant 1.000000e+00 : f32
    %177 = vector.broadcast %cst_58 : f32 to vector<1x1xf32>
    %178 = arith.minimumf %176, %177 : vector<1x1xf32>
    %179 = vector.extract_strided_slice %161 {offsets = [0, 10], sizes = [1, 1], strides = [1, 1]} : vector<1x128xf32> to vector<1x1xf32>
    %180 = vector.extract_strided_slice %161 {offsets = [0, 11], sizes = [1, 1], strides = [1, 1]} : vector<1x128xf32> to vector<1x1xf32>
    %181 = vector.broadcast %179 : vector<1x1xf32> to vector<1x128xf32>
    %182 = arith.subf %181, %161 : vector<1x128xf32>
    %cst_59 = arith.constant 0.000000e+00 : f32
    %183 = vector.broadcast %cst_59 : f32 to vector<1x128xf32>
    %184 = arith.maximumf %182, %183 : vector<1x128xf32>
    %185 = vector.broadcast %180 : vector<1x1xf32> to vector<1x128xf32>
    %186 = arith.minimumf %184, %185 : vector<1x128xf32>
    %187 = vector.broadcast %178 : vector<1x1xf32> to vector<1x128xf32>
    %188 = arith.mulf %169, %187 : vector<1x128xf32>
    %cst_60 = arith.constant 0.000000e+00 : f32
    %189 = vector.broadcast %cst_60 : f32 to vector<1x128xf32>
    %190 = arith.select %28, %186, %189 : vector<1x128xi1>, vector<1x128xf32>
    %191 = arith.select %23, %188, %190 : vector<1x128xi1>, vector<1x128xf32>
    %192 = vector.shape_cast %191 : vector<1x128xf32> to vector<1x1x128xf32>
    %c0_61 = arith.constant 0 : index
    %c0_62 = arith.constant 0 : index
    %c512 = arith.constant 512 : index
    %193 = vector.load %arg7[%c0_61, %c0_62, %c512] : memref<1x1x2048xf32, #tpu.memory_space<vmem>>, vector<1x1x128xf32>
    tpu.vector_store %arg7[%c0_61, %c0_62, %c512], %192 {strides = array<i32>} : memref<1x1x2048xf32, #tpu.memory_space<vmem>>, vector<1x1x128xf32>,
    %194 = vector.extract_strided_slice %20 {offsets = [0, 640], sizes = [1, 128], strides = [1, 1]} : vector<1x2048xf32> to vector<1x128xf32>
    %195 = vector.extract_strided_slice %18 {offsets = [0, 640], sizes = [1, 128], strides = [1, 1]} : vector<1x2048xf32> to vector<1x128xf32>
    %196 = arith.subf %195, %194 : vector<1x128xf32>
    %cst_63 = arith.constant 0.000000e+00 : f32
    %197 = vector.broadcast %cst_63 : f32 to vector<1x128xf32>
    %198 = arith.maximumf %196, %197 : vector<1x128xf32>
    %199 = vector.extract_strided_slice %19 {offsets = [0, 640], sizes = [1, 128], strides = [1, 1]} : vector<1x2048xf32> to vector<1x128xf32>
    %200 = arith.minimumf %198, %199 : vector<1x128xf32>
    %cst_64 = arith.constant 0.000000e+00 : f32
    %201 = vector.broadcast %cst_64 : f32 to vector<1x128xf32>
    %202 = arith.select %23, %200, %201 : vector<1x128xi1>, vector<1x128xf32>
    %cst_65 = arith.constant dense<0.000000e+00> : vector<1xf32>
    %203 = vector.multi_reduction <add>, %202, %cst_65 [1] : vector<1x128xf32> to vector<1xf32>
    %204 = vector.shape_cast %203 : vector<1xf32> to vector<1x1xf32>
    %205 = vector.extract_strided_slice %194 {offsets = [0, 9], sizes = [1, 1], strides = [1, 1]} : vector<1x128xf32> to vector<1x1xf32>
    %cst_66 = arith.constant 1.000000e-15 : f32
    %206 = vector.broadcast %cst_66 : f32 to vector<1x1xf32>
    %207 = arith.addf %204, %206 : vector<1x1xf32>
    %208 = tpu.reciprocal %207 {approx = true} : vector<1x1xf32> -> vector<1x1xf32>
    %209 = arith.mulf %205, %208 : vector<1x1xf32>
    %cst_67 = arith.constant 1.000000e+00 : f32
    %210 = vector.broadcast %cst_67 : f32 to vector<1x1xf32>
    %211 = arith.minimumf %209, %210 : vector<1x1xf32>
    %212 = vector.extract_strided_slice %194 {offsets = [0, 10], sizes = [1, 1], strides = [1, 1]} : vector<1x128xf32> to vector<1x1xf32>
    %213 = vector.extract_strided_slice %194 {offsets = [0, 11], sizes = [1, 1], strides = [1, 1]} : vector<1x128xf32> to vector<1x1xf32>
    %214 = vector.broadcast %212 : vector<1x1xf32> to vector<1x128xf32>
    %215 = arith.subf %214, %194 : vector<1x128xf32>
    %cst_68 = arith.constant 0.000000e+00 : f32
    %216 = vector.broadcast %cst_68 : f32 to vector<1x128xf32>
    %217 = arith.maximumf %215, %216 : vector<1x128xf32>
    %218 = vector.broadcast %213 : vector<1x1xf32> to vector<1x128xf32>
    %219 = arith.minimumf %217, %218 : vector<1x128xf32>
    %220 = vector.broadcast %211 : vector<1x1xf32> to vector<1x128xf32>
    %221 = arith.mulf %202, %220 : vector<1x128xf32>
    %cst_69 = arith.constant 0.000000e+00 : f32
    %222 = vector.broadcast %cst_69 : f32 to vector<1x128xf32>
    %223 = arith.select %28, %219, %222 : vector<1x128xi1>, vector<1x128xf32>
    %224 = arith.select %23, %221, %223 : vector<1x128xi1>, vector<1x128xf32>
    %225 = vector.shape_cast %224 : vector<1x128xf32> to vector<1x1x128xf32>
    %c0_70 = arith.constant 0 : index
    %c0_71 = arith.constant 0 : index
    %c640 = arith.constant 640 : index
    %226 = vector.load %arg7[%c0_70, %c0_71, %c640] : memref<1x1x2048xf32, #tpu.memory_space<vmem>>, vector<1x1x128xf32>
    tpu.vector_store %arg7[%c0_70, %c0_71, %c640], %225 {strides = array<i32>} : memref<1x1x2048xf32, #tpu.memory_space<vmem>>, vector<1x1x128xf32>,
    %227 = vector.extract_strided_slice %20 {offsets = [0, 768], sizes = [1, 128], strides = [1, 1]} : vector<1x2048xf32> to vector<1x128xf32>
    %228 = vector.extract_strided_slice %18 {offsets = [0, 768], sizes = [1, 128], strides = [1, 1]} : vector<1x2048xf32> to vector<1x128xf32>
    %229 = arith.subf %228, %227 : vector<1x128xf32>
    %cst_72 = arith.constant 0.000000e+00 : f32
    %230 = vector.broadcast %cst_72 : f32 to vector<1x128xf32>
    %231 = arith.maximumf %229, %230 : vector<1x128xf32>
    %232 = vector.extract_strided_slice %19 {offsets = [0, 768], sizes = [1, 128], strides = [1, 1]} : vector<1x2048xf32> to vector<1x128xf32>
    %233 = arith.minimumf %231, %232 : vector<1x128xf32>
    %cst_73 = arith.constant 0.000000e+00 : f32
    %234 = vector.broadcast %cst_73 : f32 to vector<1x128xf32>
    %235 = arith.select %23, %233, %234 : vector<1x128xi1>, vector<1x128xf32>
    %cst_74 = arith.constant dense<0.000000e+00> : vector<1xf32>
    %236 = vector.multi_reduction <add>, %235, %cst_74 [1] : vector<1x128xf32> to vector<1xf32>
    %237 = vector.shape_cast %236 : vector<1xf32> to vector<1x1xf32>
    %238 = vector.extract_strided_slice %227 {offsets = [0, 9], sizes = [1, 1], strides = [1, 1]} : vector<1x128xf32> to vector<1x1xf32>
    %cst_75 = arith.constant 1.000000e-15 : f32
    %239 = vector.broadcast %cst_75 : f32 to vector<1x1xf32>
    %240 = arith.addf %237, %239 : vector<1x1xf32>
    %241 = tpu.reciprocal %240 {approx = true} : vector<1x1xf32> -> vector<1x1xf32>
    %242 = arith.mulf %238, %241 : vector<1x1xf32>
    %cst_76 = arith.constant 1.000000e+00 : f32
    %243 = vector.broadcast %cst_76 : f32 to vector<1x1xf32>
    %244 = arith.minimumf %242, %243 : vector<1x1xf32>
    %245 = vector.extract_strided_slice %227 {offsets = [0, 10], sizes = [1, 1], strides = [1, 1]} : vector<1x128xf32> to vector<1x1xf32>
    %246 = vector.extract_strided_slice %227 {offsets = [0, 11], sizes = [1, 1], strides = [1, 1]} : vector<1x128xf32> to vector<1x1xf32>
    %247 = vector.broadcast %245 : vector<1x1xf32> to vector<1x128xf32>
    %248 = arith.subf %247, %227 : vector<1x128xf32>
    %cst_77 = arith.constant 0.000000e+00 : f32
    %249 = vector.broadcast %cst_77 : f32 to vector<1x128xf32>
    %250 = arith.maximumf %248, %249 : vector<1x128xf32>
    %251 = vector.broadcast %246 : vector<1x1xf32> to vector<1x128xf32>
    %252 = arith.minimumf %250, %251 : vector<1x128xf32>
    %253 = vector.broadcast %244 : vector<1x1xf32> to vector<1x128xf32>
    %254 = arith.mulf %235, %253 : vector<1x128xf32>
    %cst_78 = arith.constant 0.000000e+00 : f32
    %255 = vector.broadcast %cst_78 : f32 to vector<1x128xf32>
    %256 = arith.select %28, %252, %255 : vector<1x128xi1>, vector<1x128xf32>
    %257 = arith.select %23, %254, %256 : vector<1x128xi1>, vector<1x128xf32>
    %258 = vector.shape_cast %257 : vector<1x128xf32> to vector<1x1x128xf32>
    %c0_79 = arith.constant 0 : index
    %c0_80 = arith.constant 0 : index
    %c768 = arith.constant 768 : index
    %259 = vector.load %arg7[%c0_79, %c0_80, %c768] : memref<1x1x2048xf32, #tpu.memory_space<vmem>>, vector<1x1x128xf32>
    tpu.vector_store %arg7[%c0_79, %c0_80, %c768], %258 {strides = array<i32>} : memref<1x1x2048xf32, #tpu.memory_space<vmem>>, vector<1x1x128xf32>,
    %260 = vector.extract_strided_slice %20 {offsets = [0, 896], sizes = [1, 128], strides = [1, 1]} : vector<1x2048xf32> to vector<1x128xf32>
    %261 = vector.extract_strided_slice %18 {offsets = [0, 896], sizes = [1, 128], strides = [1, 1]} : vector<1x2048xf32> to vector<1x128xf32>
    %262 = arith.subf %261, %260 : vector<1x128xf32>
    %cst_81 = arith.constant 0.000000e+00 : f32
    %263 = vector.broadcast %cst_81 : f32 to vector<1x128xf32>
    %264 = arith.maximumf %262, %263 : vector<1x128xf32>
    %265 = vector.extract_strided_slice %19 {offsets = [0, 896], sizes = [1, 128], strides = [1, 1]} : vector<1x2048xf32> to vector<1x128xf32>
    %266 = arith.minimumf %264, %265 : vector<1x128xf32>
    %cst_82 = arith.constant 0.000000e+00 : f32
    %267 = vector.broadcast %cst_82 : f32 to vector<1x128xf32>
    %268 = arith.select %23, %266, %267 : vector<1x128xi1>, vector<1x128xf32>
    %cst_83 = arith.constant dense<0.000000e+00> : vector<1xf32>
    %269 = vector.multi_reduction <add>, %268, %cst_83 [1] : vector<1x128xf32> to vector<1xf32>
    %270 = vector.shape_cast %269 : vector<1xf32> to vector<1x1xf32>
    %271 = vector.extract_strided_slice %260 {offsets = [0, 9], sizes = [1, 1], strides = [1, 1]} : vector<1x128xf32> to vector<1x1xf32>
    %cst_84 = arith.constant 1.000000e-15 : f32
    %272 = vector.broadcast %cst_84 : f32 to vector<1x1xf32>
    %273 = arith.addf %270, %272 : vector<1x1xf32>
    %274 = tpu.reciprocal %273 {approx = true} : vector<1x1xf32> -> vector<1x1xf32>
    %275 = arith.mulf %271, %274 : vector<1x1xf32>
    %cst_85 = arith.constant 1.000000e+00 : f32
    %276 = vector.broadcast %cst_85 : f32 to vector<1x1xf32>
    %277 = arith.minimumf %275, %276 : vector<1x1xf32>
    %278 = vector.extract_strided_slice %260 {offsets = [0, 10], sizes = [1, 1], strides = [1, 1]} : vector<1x128xf32> to vector<1x1xf32>
    %279 = vector.extract_strided_slice %260 {offsets = [0, 11], sizes = [1, 1], strides = [1, 1]} : vector<1x128xf32> to vector<1x1xf32>
    %280 = vector.broadcast %278 : vector<1x1xf32> to vector<1x128xf32>
    %281 = arith.subf %280, %260 : vector<1x128xf32>
    %cst_86 = arith.constant 0.000000e+00 : f32
    %282 = vector.broadcast %cst_86 : f32 to vector<1x128xf32>
    %283 = arith.maximumf %281, %282 : vector<1x128xf32>
    %284 = vector.broadcast %279 : vector<1x1xf32> to vector<1x128xf32>
    %285 = arith.minimumf %283, %284 : vector<1x128xf32>
    %286 = vector.broadcast %277 : vector<1x1xf32> to vector<1x128xf32>
    %287 = arith.mulf %268, %286 : vector<1x128xf32>
    %cst_87 = arith.constant 0.000000e+00 : f32
    %288 = vector.broadcast %cst_87 : f32 to vector<1x128xf32>
    %289 = arith.select %28, %285, %288 : vector<1x128xi1>, vector<1x128xf32>
    %290 = arith.select %23, %287, %289 : vector<1x128xi1>, vector<1x128xf32>
    %291 = vector.shape_cast %290 : vector<1x128xf32> to vector<1x1x128xf32>
    %c0_88 = arith.constant 0 : index
    %c0_89 = arith.constant 0 : index
    %c896 = arith.constant 896 : index
    %292 = vector.load %arg7[%c0_88, %c0_89, %c896] : memref<1x1x2048xf32, #tpu.memory_space<vmem>>, vector<1x1x128xf32>
    tpu.vector_store %arg7[%c0_88, %c0_89, %c896], %291 {strides = array<i32>} : memref<1x1x2048xf32, #tpu.memory_space<vmem>>, vector<1x1x128xf32>,
    %293 = vector.extract_strided_slice %20 {offsets = [0, 1024], sizes = [1, 128], strides = [1, 1]} : vector<1x2048xf32> to vector<1x128xf32>
    %294 = vector.extract_strided_slice %18 {offsets = [0, 1024], sizes = [1, 128], strides = [1, 1]} : vector<1x2048xf32> to vector<1x128xf32>
    %295 = arith.subf %294, %293 : vector<1x128xf32>
    %cst_90 = arith.constant 0.000000e+00 : f32
    %296 = vector.broadcast %cst_90 : f32 to vector<1x128xf32>
    %297 = arith.maximumf %295, %296 : vector<1x128xf32>
    %298 = vector.extract_strided_slice %19 {offsets = [0, 1024], sizes = [1, 128], strides = [1, 1]} : vector<1x2048xf32> to vector<1x128xf32>
    %299 = arith.minimumf %297, %298 : vector<1x128xf32>
    %cst_91 = arith.constant 0.000000e+00 : f32
    %300 = vector.broadcast %cst_91 : f32 to vector<1x128xf32>
    %301 = arith.select %23, %299, %300 : vector<1x128xi1>, vector<1x128xf32>
    %cst_92 = arith.constant dense<0.000000e+00> : vector<1xf32>
    %302 = vector.multi_reduction <add>, %301, %cst_92 [1] : vector<1x128xf32> to vector<1xf32>
    %303 = vector.shape_cast %302 : vector<1xf32> to vector<1x1xf32>
    %304 = vector.extract_strided_slice %293 {offsets = [0, 9], sizes = [1, 1], strides = [1, 1]} : vector<1x128xf32> to vector<1x1xf32>
    %cst_93 = arith.constant 1.000000e-15 : f32
    %305 = vector.broadcast %cst_93 : f32 to vector<1x1xf32>
    %306 = arith.addf %303, %305 : vector<1x1xf32>
    %307 = tpu.reciprocal %306 {approx = true} : vector<1x1xf32> -> vector<1x1xf32>
    %308 = arith.mulf %304, %307 : vector<1x1xf32>
    %cst_94 = arith.constant 1.000000e+00 : f32
    %309 = vector.broadcast %cst_94 : f32 to vector<1x1xf32>
    %310 = arith.minimumf %308, %309 : vector<1x1xf32>
    %311 = vector.extract_strided_slice %293 {offsets = [0, 10], sizes = [1, 1], strides = [1, 1]} : vector<1x128xf32> to vector<1x1xf32>
    %312 = vector.extract_strided_slice %293 {offsets = [0, 11], sizes = [1, 1], strides = [1, 1]} : vector<1x128xf32> to vector<1x1xf32>
    %313 = vector.broadcast %311 : vector<1x1xf32> to vector<1x128xf32>
    %314 = arith.subf %313, %293 : vector<1x128xf32>
    %cst_95 = arith.constant 0.000000e+00 : f32
    %315 = vector.broadcast %cst_95 : f32 to vector<1x128xf32>
    %316 = arith.maximumf %314, %315 : vector<1x128xf32>
    %317 = vector.broadcast %312 : vector<1x1xf32> to vector<1x128xf32>
    %318 = arith.minimumf %316, %317 : vector<1x128xf32>
    %319 = vector.broadcast %310 : vector<1x1xf32> to vector<1x128xf32>
    %320 = arith.mulf %301, %319 : vector<1x128xf32>
    %cst_96 = arith.constant 0.000000e+00 : f32
    %321 = vector.broadcast %cst_96 : f32 to vector<1x128xf32>
    %322 = arith.select %28, %318, %321 : vector<1x128xi1>, vector<1x128xf32>
    %323 = arith.select %23, %320, %322 : vector<1x128xi1>, vector<1x128xf32>
    %324 = vector.shape_cast %323 : vector<1x128xf32> to vector<1x1x128xf32>
    %c0_97 = arith.constant 0 : index
    %c0_98 = arith.constant 0 : index
    %c1024 = arith.constant 1024 : index
    %325 = vector.load %arg7[%c0_97, %c0_98, %c1024] : memref<1x1x2048xf32, #tpu.memory_space<vmem>>, vector<1x1x128xf32>
    tpu.vector_store %arg7[%c0_97, %c0_98, %c1024], %324 {strides = array<i32>} : memref<1x1x2048xf32, #tpu.memory_space<vmem>>, vector<1x1x128xf32>,
    %326 = vector.extract_strided_slice %20 {offsets = [0, 1152], sizes = [1, 128], strides = [1, 1]} : vector<1x2048xf32> to vector<1x128xf32>
    %327 = vector.extract_strided_slice %18 {offsets = [0, 1152], sizes = [1, 128], strides = [1, 1]} : vector<1x2048xf32> to vector<1x128xf32>
    %328 = arith.subf %327, %326 : vector<1x128xf32>
    %cst_99 = arith.constant 0.000000e+00 : f32
    %329 = vector.broadcast %cst_99 : f32 to vector<1x128xf32>
    %330 = arith.maximumf %328, %329 : vector<1x128xf32>
    %331 = vector.extract_strided_slice %19 {offsets = [0, 1152], sizes = [1, 128], strides = [1, 1]} : vector<1x2048xf32> to vector<1x128xf32>
    %332 = arith.minimumf %330, %331 : vector<1x128xf32>
    %cst_100 = arith.constant 0.000000e+00 : f32
    %333 = vector.broadcast %cst_100 : f32 to vector<1x128xf32>
    %334 = arith.select %23, %332, %333 : vector<1x128xi1>, vector<1x128xf32>
    %cst_101 = arith.constant dense<0.000000e+00> : vector<1xf32>
    %335 = vector.multi_reduction <add>, %334, %cst_101 [1] : vector<1x128xf32> to vector<1xf32>
    %336 = vector.shape_cast %335 : vector<1xf32> to vector<1x1xf32>
    %337 = vector.extract_strided_slice %326 {offsets = [0, 9], sizes = [1, 1], strides = [1, 1]} : vector<1x128xf32> to vector<1x1xf32>
    %cst_102 = arith.constant 1.000000e-15 : f32
    %338 = vector.broadcast %cst_102 : f32 to vector<1x1xf32>
    %339 = arith.addf %336, %338 : vector<1x1xf32>
    %340 = tpu.reciprocal %339 {approx = true} : vector<1x1xf32> -> vector<1x1xf32>
    %341 = arith.mulf %337, %340 : vector<1x1xf32>
    %cst_103 = arith.constant 1.000000e+00 : f32
    %342 = vector.broadcast %cst_103 : f32 to vector<1x1xf32>
    %343 = arith.minimumf %341, %342 : vector<1x1xf32>
    %344 = vector.extract_strided_slice %326 {offsets = [0, 10], sizes = [1, 1], strides = [1, 1]} : vector<1x128xf32> to vector<1x1xf32>
    %345 = vector.extract_strided_slice %326 {offsets = [0, 11], sizes = [1, 1], strides = [1, 1]} : vector<1x128xf32> to vector<1x1xf32>
    %346 = vector.broadcast %344 : vector<1x1xf32> to vector<1x128xf32>
    %347 = arith.subf %346, %326 : vector<1x128xf32>
    %cst_104 = arith.constant 0.000000e+00 : f32
    %348 = vector.broadcast %cst_104 : f32 to vector<1x128xf32>
    %349 = arith.maximumf %347, %348 : vector<1x128xf32>
    %350 = vector.broadcast %345 : vector<1x1xf32> to vector<1x128xf32>
    %351 = arith.minimumf %349, %350 : vector<1x128xf32>
    %352 = vector.broadcast %343 : vector<1x1xf32> to vector<1x128xf32>
    %353 = arith.mulf %334, %352 : vector<1x128xf32>
    %cst_105 = arith.constant 0.000000e+00 : f32
    %354 = vector.broadcast %cst_105 : f32 to vector<1x128xf32>
    %355 = arith.select %28, %351, %354 : vector<1x128xi1>, vector<1x128xf32>
    %356 = arith.select %23, %353, %355 : vector<1x128xi1>, vector<1x128xf32>
    %357 = vector.shape_cast %356 : vector<1x128xf32> to vector<1x1x128xf32>
    %c0_106 = arith.constant 0 : index
    %c0_107 = arith.constant 0 : index
    %c1152 = arith.constant 1152 : index
    %358 = vector.load %arg7[%c0_106, %c0_107, %c1152] : memref<1x1x2048xf32, #tpu.memory_space<vmem>>, vector<1x1x128xf32>
    tpu.vector_store %arg7[%c0_106, %c0_107, %c1152], %357 {strides = array<i32>} : memref<1x1x2048xf32, #tpu.memory_space<vmem>>, vector<1x1x128xf32>,
    %359 = vector.extract_strided_slice %20 {offsets = [0, 1280], sizes = [1, 128], strides = [1, 1]} : vector<1x2048xf32> to vector<1x128xf32>
    %360 = vector.extract_strided_slice %18 {offsets = [0, 1280], sizes = [1, 128], strides = [1, 1]} : vector<1x2048xf32> to vector<1x128xf32>
    %361 = arith.subf %360, %359 : vector<1x128xf32>
    %cst_108 = arith.constant 0.000000e+00 : f32
    %362 = vector.broadcast %cst_108 : f32 to vector<1x128xf32>
    %363 = arith.maximumf %361, %362 : vector<1x128xf32>
    %364 = vector.extract_strided_slice %19 {offsets = [0, 1280], sizes = [1, 128], strides = [1, 1]} : vector<1x2048xf32> to vector<1x128xf32>
    %365 = arith.minimumf %363, %364 : vector<1x128xf32>
    %cst_109 = arith.constant 0.000000e+00 : f32
    %366 = vector.broadcast %cst_109 : f32 to vector<1x128xf32>
    %367 = arith.select %23, %365, %366 : vector<1x128xi1>, vector<1x128xf32>
    %cst_110 = arith.constant dense<0.000000e+00> : vector<1xf32>
    %368 = vector.multi_reduction <add>, %367, %cst_110 [1] : vector<1x128xf32> to vector<1xf32>
    %369 = vector.shape_cast %368 : vector<1xf32> to vector<1x1xf32>
    %370 = vector.extract_strided_slice %359 {offsets = [0, 9], sizes = [1, 1], strides = [1, 1]} : vector<1x128xf32> to vector<1x1xf32>
    %cst_111 = arith.constant 1.000000e-15 : f32
    %371 = vector.broadcast %cst_111 : f32 to vector<1x1xf32>
    %372 = arith.addf %369, %371 : vector<1x1xf32>
    %373 = tpu.reciprocal %372 {approx = true} : vector<1x1xf32> -> vector<1x1xf32>
    %374 = arith.mulf %370, %373 : vector<1x1xf32>
    %cst_112 = arith.constant 1.000000e+00 : f32
    %375 = vector.broadcast %cst_112 : f32 to vector<1x1xf32>
    %376 = arith.minimumf %374, %375 : vector<1x1xf32>
    %377 = vector.extract_strided_slice %359 {offsets = [0, 10], sizes = [1, 1], strides = [1, 1]} : vector<1x128xf32> to vector<1x1xf32>
    %378 = vector.extract_strided_slice %359 {offsets = [0, 11], sizes = [1, 1], strides = [1, 1]} : vector<1x128xf32> to vector<1x1xf32>
    %379 = vector.broadcast %377 : vector<1x1xf32> to vector<1x128xf32>
    %380 = arith.subf %379, %359 : vector<1x128xf32>
    %cst_113 = arith.constant 0.000000e+00 : f32
    %381 = vector.broadcast %cst_113 : f32 to vector<1x128xf32>
    %382 = arith.maximumf %380, %381 : vector<1x128xf32>
    %383 = vector.broadcast %378 : vector<1x1xf32> to vector<1x128xf32>
    %384 = arith.minimumf %382, %383 : vector<1x128xf32>
    %385 = vector.broadcast %376 : vector<1x1xf32> to vector<1x128xf32>
    %386 = arith.mulf %367, %385 : vector<1x128xf32>
    %cst_114 = arith.constant 0.000000e+00 : f32
    %387 = vector.broadcast %cst_114 : f32 to vector<1x128xf32>
    %388 = arith.select %28, %384, %387 : vector<1x128xi1>, vector<1x128xf32>
    %389 = arith.select %23, %386, %388 : vector<1x128xi1>, vector<1x128xf32>
    %390 = vector.shape_cast %389 : vector<1x128xf32> to vector<1x1x128xf32>
    %c0_115 = arith.constant 0 : index
    %c0_116 = arith.constant 0 : index
    %c1280 = arith.constant 1280 : index
    %391 = vector.load %arg7[%c0_115, %c0_116, %c1280] : memref<1x1x2048xf32, #tpu.memory_space<vmem>>, vector<1x1x128xf32>
    tpu.vector_store %arg7[%c0_115, %c0_116, %c1280], %390 {strides = array<i32>} : memref<1x1x2048xf32, #tpu.memory_space<vmem>>, vector<1x1x128xf32>,
    %392 = vector.extract_strided_slice %20 {offsets = [0, 1408], sizes = [1, 128], strides = [1, 1]} : vector<1x2048xf32> to vector<1x128xf32>
    %393 = vector.extract_strided_slice %18 {offsets = [0, 1408], sizes = [1, 128], strides = [1, 1]} : vector<1x2048xf32> to vector<1x128xf32>
    %394 = arith.subf %393, %392 : vector<1x128xf32>
    %cst_117 = arith.constant 0.000000e+00 : f32
    %395 = vector.broadcast %cst_117 : f32 to vector<1x128xf32>
    %396 = arith.maximumf %394, %395 : vector<1x128xf32>
    %397 = vector.extract_strided_slice %19 {offsets = [0, 1408], sizes = [1, 128], strides = [1, 1]} : vector<1x2048xf32> to vector<1x128xf32>
    %398 = arith.minimumf %396, %397 : vector<1x128xf32>
    %cst_118 = arith.constant 0.000000e+00 : f32
    %399 = vector.broadcast %cst_118 : f32 to vector<1x128xf32>
    %400 = arith.select %23, %398, %399 : vector<1x128xi1>, vector<1x128xf32>
    %cst_119 = arith.constant dense<0.000000e+00> : vector<1xf32>
    %401 = vector.multi_reduction <add>, %400, %cst_119 [1] : vector<1x128xf32> to vector<1xf32>
    %402 = vector.shape_cast %401 : vector<1xf32> to vector<1x1xf32>
    %403 = vector.extract_strided_slice %392 {offsets = [0, 9], sizes = [1, 1], strides = [1, 1]} : vector<1x128xf32> to vector<1x1xf32>
    %cst_120 = arith.constant 1.000000e-15 : f32
    %404 = vector.broadcast %cst_120 : f32 to vector<1x1xf32>
    %405 = arith.addf %402, %404 : vector<1x1xf32>
    %406 = tpu.reciprocal %405 {approx = true} : vector<1x1xf32> -> vector<1x1xf32>
    %407 = arith.mulf %403, %406 : vector<1x1xf32>
    %cst_121 = arith.constant 1.000000e+00 : f32
    %408 = vector.broadcast %cst_121 : f32 to vector<1x1xf32>
    %409 = arith.minimumf %407, %408 : vector<1x1xf32>
    %410 = vector.extract_strided_slice %392 {offsets = [0, 10], sizes = [1, 1], strides = [1, 1]} : vector<1x128xf32> to vector<1x1xf32>
    %411 = vector.extract_strided_slice %392 {offsets = [0, 11], sizes = [1, 1], strides = [1, 1]} : vector<1x128xf32> to vector<1x1xf32>
    %412 = vector.broadcast %410 : vector<1x1xf32> to vector<1x128xf32>
    %413 = arith.subf %412, %392 : vector<1x128xf32>
    %cst_122 = arith.constant 0.000000e+00 : f32
    %414 = vector.broadcast %cst_122 : f32 to vector<1x128xf32>
    %415 = arith.maximumf %413, %414 : vector<1x128xf32>
    %416 = vector.broadcast %411 : vector<1x1xf32> to vector<1x128xf32>
    %417 = arith.minimumf %415, %416 : vector<1x128xf32>
    %418 = vector.broadcast %409 : vector<1x1xf32> to vector<1x128xf32>
    %419 = arith.mulf %400, %418 : vector<1x128xf32>
    %cst_123 = arith.constant 0.000000e+00 : f32
    %420 = vector.broadcast %cst_123 : f32 to vector<1x128xf32>
    %421 = arith.select %28, %417, %420 : vector<1x128xi1>, vector<1x128xf32>
    %422 = arith.select %23, %419, %421 : vector<1x128xi1>, vector<1x128xf32>
    %423 = vector.shape_cast %422 : vector<1x128xf32> to vector<1x1x128xf32>
    %c0_124 = arith.constant 0 : index
    %c0_125 = arith.constant 0 : index
    %c1408 = arith.constant 1408 : index
    %424 = vector.load %arg7[%c0_124, %c0_125, %c1408] : memref<1x1x2048xf32, #tpu.memory_space<vmem>>, vector<1x1x128xf32>
    tpu.vector_store %arg7[%c0_124, %c0_125, %c1408], %423 {strides = array<i32>} : memref<1x1x2048xf32, #tpu.memory_space<vmem>>, vector<1x1x128xf32>,
    %425 = vector.extract_strided_slice %20 {offsets = [0, 1536], sizes = [1, 128], strides = [1, 1]} : vector<1x2048xf32> to vector<1x128xf32>
    %426 = vector.extract_strided_slice %18 {offsets = [0, 1536], sizes = [1, 128], strides = [1, 1]} : vector<1x2048xf32> to vector<1x128xf32>
    %427 = arith.subf %426, %425 : vector<1x128xf32>
    %cst_126 = arith.constant 0.000000e+00 : f32
    %428 = vector.broadcast %cst_126 : f32 to vector<1x128xf32>
    %429 = arith.maximumf %427, %428 : vector<1x128xf32>
    %430 = vector.extract_strided_slice %19 {offsets = [0, 1536], sizes = [1, 128], strides = [1, 1]} : vector<1x2048xf32> to vector<1x128xf32>
    %431 = arith.minimumf %429, %430 : vector<1x128xf32>
    %cst_127 = arith.constant 0.000000e+00 : f32
    %432 = vector.broadcast %cst_127 : f32 to vector<1x128xf32>
    %433 = arith.select %23, %431, %432 : vector<1x128xi1>, vector<1x128xf32>
    %cst_128 = arith.constant dense<0.000000e+00> : vector<1xf32>
    %434 = vector.multi_reduction <add>, %433, %cst_128 [1] : vector<1x128xf32> to vector<1xf32>
    %435 = vector.shape_cast %434 : vector<1xf32> to vector<1x1xf32>
    %436 = vector.extract_strided_slice %425 {offsets = [0, 9], sizes = [1, 1], strides = [1, 1]} : vector<1x128xf32> to vector<1x1xf32>
    %cst_129 = arith.constant 1.000000e-15 : f32
    %437 = vector.broadcast %cst_129 : f32 to vector<1x1xf32>
    %438 = arith.addf %435, %437 : vector<1x1xf32>
    %439 = tpu.reciprocal %438 {approx = true} : vector<1x1xf32> -> vector<1x1xf32>
    %440 = arith.mulf %436, %439 : vector<1x1xf32>
    %cst_130 = arith.constant 1.000000e+00 : f32
    %441 = vector.broadcast %cst_130 : f32 to vector<1x1xf32>
    %442 = arith.minimumf %440, %441 : vector<1x1xf32>
    %443 = vector.extract_strided_slice %425 {offsets = [0, 10], sizes = [1, 1], strides = [1, 1]} : vector<1x128xf32> to vector<1x1xf32>
    %444 = vector.extract_strided_slice %425 {offsets = [0, 11], sizes = [1, 1], strides = [1, 1]} : vector<1x128xf32> to vector<1x1xf32>
    %445 = vector.broadcast %443 : vector<1x1xf32> to vector<1x128xf32>
    %446 = arith.subf %445, %425 : vector<1x128xf32>
    %cst_131 = arith.constant 0.000000e+00 : f32
    %447 = vector.broadcast %cst_131 : f32 to vector<1x128xf32>
    %448 = arith.maximumf %446, %447 : vector<1x128xf32>
    %449 = vector.broadcast %444 : vector<1x1xf32> to vector<1x128xf32>
    %450 = arith.minimumf %448, %449 : vector<1x128xf32>
    %451 = vector.broadcast %442 : vector<1x1xf32> to vector<1x128xf32>
    %452 = arith.mulf %433, %451 : vector<1x128xf32>
    %cst_132 = arith.constant 0.000000e+00 : f32
    %453 = vector.broadcast %cst_132 : f32 to vector<1x128xf32>
    %454 = arith.select %28, %450, %453 : vector<1x128xi1>, vector<1x128xf32>
    %455 = arith.select %23, %452, %454 : vector<1x128xi1>, vector<1x128xf32>
    %456 = vector.shape_cast %455 : vector<1x128xf32> to vector<1x1x128xf32>
    %c0_133 = arith.constant 0 : index
    %c0_134 = arith.constant 0 : index
    %c1536 = arith.constant 1536 : index
    %457 = vector.load %arg7[%c0_133, %c0_134, %c1536] : memref<1x1x2048xf32, #tpu.memory_space<vmem>>, vector<1x1x128xf32>
    tpu.vector_store %arg7[%c0_133, %c0_134, %c1536], %456 {strides = array<i32>} : memref<1x1x2048xf32, #tpu.memory_space<vmem>>, vector<1x1x128xf32>,
    %458 = vector.extract_strided_slice %20 {offsets = [0, 1664], sizes = [1, 128], strides = [1, 1]} : vector<1x2048xf32> to vector<1x128xf32>
    %459 = vector.extract_strided_slice %18 {offsets = [0, 1664], sizes = [1, 128], strides = [1, 1]} : vector<1x2048xf32> to vector<1x128xf32>
    %460 = arith.subf %459, %458 : vector<1x128xf32>
    %cst_135 = arith.constant 0.000000e+00 : f32
    %461 = vector.broadcast %cst_135 : f32 to vector<1x128xf32>
    %462 = arith.maximumf %460, %461 : vector<1x128xf32>
    %463 = vector.extract_strided_slice %19 {offsets = [0, 1664], sizes = [1, 128], strides = [1, 1]} : vector<1x2048xf32> to vector<1x128xf32>
    %464 = arith.minimumf %462, %463 : vector<1x128xf32>
    %cst_136 = arith.constant 0.000000e+00 : f32
    %465 = vector.broadcast %cst_136 : f32 to vector<1x128xf32>
    %466 = arith.select %23, %464, %465 : vector<1x128xi1>, vector<1x128xf32>
    %cst_137 = arith.constant dense<0.000000e+00> : vector<1xf32>
    %467 = vector.multi_reduction <add>, %466, %cst_137 [1] : vector<1x128xf32> to vector<1xf32>
    %468 = vector.shape_cast %467 : vector<1xf32> to vector<1x1xf32>
    %469 = vector.extract_strided_slice %458 {offsets = [0, 9], sizes = [1, 1], strides = [1, 1]} : vector<1x128xf32> to vector<1x1xf32>
    %cst_138 = arith.constant 1.000000e-15 : f32
    %470 = vector.broadcast %cst_138 : f32 to vector<1x1xf32>
    %471 = arith.addf %468, %470 : vector<1x1xf32>
    %472 = tpu.reciprocal %471 {approx = true} : vector<1x1xf32> -> vector<1x1xf32>
    %473 = arith.mulf %469, %472 : vector<1x1xf32>
    %cst_139 = arith.constant 1.000000e+00 : f32
    %474 = vector.broadcast %cst_139 : f32 to vector<1x1xf32>
    %475 = arith.minimumf %473, %474 : vector<1x1xf32>
    %476 = vector.extract_strided_slice %458 {offsets = [0, 10], sizes = [1, 1], strides = [1, 1]} : vector<1x128xf32> to vector<1x1xf32>
    %477 = vector.extract_strided_slice %458 {offsets = [0, 11], sizes = [1, 1], strides = [1, 1]} : vector<1x128xf32> to vector<1x1xf32>
    %478 = vector.broadcast %476 : vector<1x1xf32> to vector<1x128xf32>
    %479 = arith.subf %478, %458 : vector<1x128xf32>
    %cst_140 = arith.constant 0.000000e+00 : f32
    %480 = vector.broadcast %cst_140 : f32 to vector<1x128xf32>
    %481 = arith.maximumf %479, %480 : vector<1x128xf32>
    %482 = vector.broadcast %477 : vector<1x1xf32> to vector<1x128xf32>
    %483 = arith.minimumf %481, %482 : vector<1x128xf32>
    %484 = vector.broadcast %475 : vector<1x1xf32> to vector<1x128xf32>
    %485 = arith.mulf %466, %484 : vector<1x128xf32>
    %cst_141 = arith.constant 0.000000e+00 : f32
    %486 = vector.broadcast %cst_141 : f32 to vector<1x128xf32>
    %487 = arith.select %28, %483, %486 : vector<1x128xi1>, vector<1x128xf32>
    %488 = arith.select %23, %485, %487 : vector<1x128xi1>, vector<1x128xf32>
    %489 = vector.shape_cast %488 : vector<1x128xf32> to vector<1x1x128xf32>
    %c0_142 = arith.constant 0 : index
    %c0_143 = arith.constant 0 : index
    %c1664 = arith.constant 1664 : index
    %490 = vector.load %arg7[%c0_142, %c0_143, %c1664] : memref<1x1x2048xf32, #tpu.memory_space<vmem>>, vector<1x1x128xf32>
    tpu.vector_store %arg7[%c0_142, %c0_143, %c1664], %489 {strides = array<i32>} : memref<1x1x2048xf32, #tpu.memory_space<vmem>>, vector<1x1x128xf32>,
    %491 = vector.extract_strided_slice %20 {offsets = [0, 1792], sizes = [1, 128], strides = [1, 1]} : vector<1x2048xf32> to vector<1x128xf32>
    %492 = vector.extract_strided_slice %18 {offsets = [0, 1792], sizes = [1, 128], strides = [1, 1]} : vector<1x2048xf32> to vector<1x128xf32>
    %493 = arith.subf %492, %491 : vector<1x128xf32>
    %cst_144 = arith.constant 0.000000e+00 : f32
    %494 = vector.broadcast %cst_144 : f32 to vector<1x128xf32>
    %495 = arith.maximumf %493, %494 : vector<1x128xf32>
    %496 = vector.extract_strided_slice %19 {offsets = [0, 1792], sizes = [1, 128], strides = [1, 1]} : vector<1x2048xf32> to vector<1x128xf32>
    %497 = arith.minimumf %495, %496 : vector<1x128xf32>
    %cst_145 = arith.constant 0.000000e+00 : f32
    %498 = vector.broadcast %cst_145 : f32 to vector<1x128xf32>
    %499 = arith.select %23, %497, %498 : vector<1x128xi1>, vector<1x128xf32>
    %cst_146 = arith.constant dense<0.000000e+00> : vector<1xf32>
    %500 = vector.multi_reduction <add>, %499, %cst_146 [1] : vector<1x128xf32> to vector<1xf32>
    %501 = vector.shape_cast %500 : vector<1xf32> to vector<1x1xf32>
    %502 = vector.extract_strided_slice %491 {offsets = [0, 9], sizes = [1, 1], strides = [1, 1]} : vector<1x128xf32> to vector<1x1xf32>
    %cst_147 = arith.constant 1.000000e-15 : f32
    %503 = vector.broadcast %cst_147 : f32 to vector<1x1xf32>
    %504 = arith.addf %501, %503 : vector<1x1xf32>
    %505 = tpu.reciprocal %504 {approx = true} : vector<1x1xf32> -> vector<1x1xf32>
    %506 = arith.mulf %502, %505 : vector<1x1xf32>
    %cst_148 = arith.constant 1.000000e+00 : f32
    %507 = vector.broadcast %cst_148 : f32 to vector<1x1xf32>
    %508 = arith.minimumf %506, %507 : vector<1x1xf32>
    %509 = vector.extract_strided_slice %491 {offsets = [0, 10], sizes = [1, 1], strides = [1, 1]} : vector<1x128xf32> to vector<1x1xf32>
    %510 = vector.extract_strided_slice %491 {offsets = [0, 11], sizes = [1, 1], strides = [1, 1]} : vector<1x128xf32> to vector<1x1xf32>
    %511 = vector.broadcast %509 : vector<1x1xf32> to vector<1x128xf32>
    %512 = arith.subf %511, %491 : vector<1x128xf32>
    %cst_149 = arith.constant 0.000000e+00 : f32
    %513 = vector.broadcast %cst_149 : f32 to vector<1x128xf32>
    %514 = arith.maximumf %512, %513 : vector<1x128xf32>
    %515 = vector.broadcast %510 : vector<1x1xf32> to vector<1x128xf32>
    %516 = arith.minimumf %514, %515 : vector<1x128xf32>
    %517 = vector.broadcast %508 : vector<1x1xf32> to vector<1x128xf32>
    %518 = arith.mulf %499, %517 : vector<1x128xf32>
    %cst_150 = arith.constant 0.000000e+00 : f32
    %519 = vector.broadcast %cst_150 : f32 to vector<1x128xf32>
    %520 = arith.select %28, %516, %519 : vector<1x128xi1>, vector<1x128xf32>
    %521 = arith.select %23, %518, %520 : vector<1x128xi1>, vector<1x128xf32>
    %522 = vector.shape_cast %521 : vector<1x128xf32> to vector<1x1x128xf32>
    %c0_151 = arith.constant 0 : index
    %c0_152 = arith.constant 0 : index
    %c1792 = arith.constant 1792 : index
    %523 = vector.load %arg7[%c0_151, %c0_152, %c1792] : memref<1x1x2048xf32, #tpu.memory_space<vmem>>, vector<1x1x128xf32>
    tpu.vector_store %arg7[%c0_151, %c0_152, %c1792], %522 {strides = array<i32>} : memref<1x1x2048xf32, #tpu.memory_space<vmem>>, vector<1x1x128xf32>,
    %524 = vector.extract_strided_slice %20 {offsets = [0, 1920], sizes = [1, 128], strides = [1, 1]} : vector<1x2048xf32> to vector<1x128xf32>
    %525 = vector.extract_strided_slice %18 {offsets = [0, 1920], sizes = [1, 128], strides = [1, 1]} : vector<1x2048xf32> to vector<1x128xf32>
    %526 = arith.subf %525, %524 : vector<1x128xf32>
    %cst_153 = arith.constant 0.000000e+00 : f32
    %527 = vector.broadcast %cst_153 : f32 to vector<1x128xf32>
    %528 = arith.maximumf %526, %527 : vector<1x128xf32>
    %529 = vector.extract_strided_slice %19 {offsets = [0, 1920], sizes = [1, 128], strides = [1, 1]} : vector<1x2048xf32> to vector<1x128xf32>
    %530 = arith.minimumf %528, %529 : vector<1x128xf32>
    %cst_154 = arith.constant 0.000000e+00 : f32
    %531 = vector.broadcast %cst_154 : f32 to vector<1x128xf32>
    %532 = arith.select %23, %530, %531 : vector<1x128xi1>, vector<1x128xf32>
    %cst_155 = arith.constant dense<0.000000e+00> : vector<1xf32>
    %533 = vector.multi_reduction <add>, %532, %cst_155 [1] : vector<1x128xf32> to vector<1xf32>
    %534 = vector.shape_cast %533 : vector<1xf32> to vector<1x1xf32>
    %535 = vector.extract_strided_slice %524 {offsets = [0, 9], sizes = [1, 1], strides = [1, 1]} : vector<1x128xf32> to vector<1x1xf32>
    %cst_156 = arith.constant 1.000000e-15 : f32
    %536 = vector.broadcast %cst_156 : f32 to vector<1x1xf32>
    %537 = arith.addf %534, %536 : vector<1x1xf32>
    %538 = tpu.reciprocal %537 {approx = true} : vector<1x1xf32> -> vector<1x1xf32>
    %539 = arith.mulf %535, %538 : vector<1x1xf32>
    %cst_157 = arith.constant 1.000000e+00 : f32
    %540 = vector.broadcast %cst_157 : f32 to vector<1x1xf32>
    %541 = arith.minimumf %539, %540 : vector<1x1xf32>
    %542 = vector.extract_strided_slice %524 {offsets = [0, 10], sizes = [1, 1], strides = [1, 1]} : vector<1x128xf32> to vector<1x1xf32>
    %543 = vector.extract_strided_slice %524 {offsets = [0, 11], sizes = [1, 1], strides = [1, 1]} : vector<1x128xf32> to vector<1x1xf32>
    %544 = vector.broadcast %542 : vector<1x1xf32> to vector<1x128xf32>
    %545 = arith.subf %544, %524 : vector<1x128xf32>
    %cst_158 = arith.constant 0.000000e+00 : f32
    %546 = vector.broadcast %cst_158 : f32 to vector<1x128xf32>
    %547 = arith.maximumf %545, %546 : vector<1x128xf32>
    %548 = vector.broadcast %543 : vector<1x1xf32> to vector<1x128xf32>
    %549 = arith.minimumf %547, %548 : vector<1x128xf32>
    %550 = vector.broadcast %541 : vector<1x1xf32> to vector<1x128xf32>
    %551 = arith.mulf %532, %550 : vector<1x128xf32>
    %cst_159 = arith.constant 0.000000e+00 : f32
    %552 = vector.broadcast %cst_159 : f32 to vector<1x128xf32>
    %553 = arith.select %28, %549, %552 : vector<1x128xi1>, vector<1x128xf32>
    %554 = arith.select %23, %551, %553 : vector<1x128xi1>, vector<1x128xf32>
    %555 = vector.shape_cast %554 : vector<1x128xf32> to vector<1x1x128xf32>
    %c0_160 = arith.constant 0 : index
    %c0_161 = arith.constant 0 : index
    %c1920 = arith.constant 1920 : index
    %556 = vector.load %arg7[%c0_160, %c0_161, %c1920] : memref<1x1x2048xf32, #tpu.memory_space<vmem>>, vector<1x1x128xf32>
    tpu.vector_store %arg7[%c0_160, %c0_161, %c1920], %555 {strides = array<i32>} : memref<1x1x2048xf32, #tpu.memory_space<vmem>>, vector<1x1x128xf32>,
    return
  }
  func.func @transform_0(%arg0: i32) -> (i32, i32, i32) {
    %c0_i32 = arith.constant 0 : i32
    %c0_i32_0 = arith.constant 0 : i32
    %c0_i32_1 = arith.constant 0 : i32
    return %arg0, %c0_i32, %c0_i32_0 : i32, i32, i32
  }
  func.func @transform_1(%arg0: i32) -> (i32, i32) {
    %c0_i32 = arith.constant 0 : i32
    %c0_i32_0 = arith.constant 0 : i32
    %c0_i32_1 = arith.constant 0 : i32
    return %c0_i32, %c0_i32_0 : i32, i32
  }
  func.func @transform_2(%arg0: i32) -> (i32, i32) {
    %c0_i32 = arith.constant 0 : i32
    %c0_i32_0 = arith.constant 0 : i32
    %c0_i32_1 = arith.constant 0 : i32
    return %c0_i32, %c0_i32_0 : i32, i32
  }
  func.func @transform_3(%arg0: i32) -> (i32, i32) {
    %c0_i32 = arith.constant 0 : i32
    %c0_i32_0 = arith.constant 0 : i32
    %c0_i32_1 = arith.constant 0 : i32
    return %c0_i32, %c0_i32_0 : i32, i32
  }
  func.func @transform_4(%arg0: i32) -> (i32, i32) {
    %c0_i32 = arith.constant 0 : i32
    %c0_i32_0 = arith.constant 0 : i32
    %c0_i32_1 = arith.constant 0 : i32
    return %c0_i32, %c0_i32_0 : i32, i32
  }
  func.func @transform_5(%arg0: i32) -> (i32, i32) {
    %c0_i32 = arith.constant 0 : i32
    %c0_i32_0 = arith.constant 0 : i32
    %c0_i32_1 = arith.constant 0 : i32
    return %c0_i32, %c0_i32_0 : i32, i32
  }
  func.func @transform_6(%arg0: i32) -> (i32, i32, i32) {
    %c0_i32 = arith.constant 0 : i32
    %c0_i32_0 = arith.constant 0 : i32
    %c0_i32_1 = arith.constant 0 : i32
    return %arg0, %c0_i32, %c0_i32_0 : i32, i32, i32
  }
}

</mosaic_0001>

<bundles_post_ra>
// kernel: tpu_custom_call.1
= control target key start
LH: loop header
LB: loop body
LE: loop exit
PB: predicated region body
PF: predicated region fallthrough
CT: control target
= control target key end

     0   :  { %11 = vsyncpa [#allocation3], 0  ;;  %s4821_s0 = inlined_call_operand.hbm [shape: f32[4,8,2048], index: 0, kind: input, shape index: {}]   ;;  %s4822_s1 = inlined_call_operand.vmem [shape: f32[32,8], index: 1, kind: input, shape index: {}]   ;;  %s4823_s2 = inlined_call_operand.vmem [shape: f32[32,32], index: 2, kind: input, shape index: {}]   ;;  %s4824_s3 = inlined_call_operand.vmem [shape: f32[32,1], index: 3, kind: input, shape index: {}]   ;;  %s4825_s4 = inlined_call_operand.vmem [shape: f32[8,32], index: 4, kind: input, shape index: {}]   ;;  %s4826_s5 = inlined_call_operand.vmem [shape: f32[8,1], index: 5, kind: input, shape index: {}]   ;;  %s4827_s6 = inlined_call_operand.hbm [shape: f32[4,1,2048], index: 6, kind: output, shape index: {}]  }
   0x1   :  { %13 = vsyncpa [#allocation3 + $0x1], 0 }
   0x2   :  { %14 = vsyncpa [#allocation4], 0 }
   0x3   :  { %16 = vsyncpa [#allocation4 + $0x1], 0  ;;  %s3748_s21 = smov 0   ;;  %s3750_s22 = smov 0  }
   0x4   :  { %s3752_s23 = smov 0   ;;  %s3754_s24 = smov 0  }
   0x5 LB: > { %s3769_s25 = sadd.s32 4294967295, %s3704_s24   ;;  %s3272_s26 = sadd.s32 4294967294, %s3704_s24   ;;  %s3704_s24 = sphi %s3754_s24, %s4906_s24   ;;  %s3700_s23 = sphi %s3752_s23, %s4905_s23   ;;  %s3696_s22 = sphi %s3750_s22, %s4904_s22   ;;  %s3692_s21 = sphi %s3748_s21, %s4903_s21  }
   0x6   : > { %s3773_s27 = sadd.s32 1, %s3704_s24   ;;  %s29_s28 = sadd.s32 1, %s3700_s23 }
   0x7   : > { %s26_s29 = ssub.s32 %s3704_s24, %s3773_s27  ;;  %p36_p0 = scmp.ne.s32.totalorder %s3700_s23, %s3696_s22 }
   0x8   : > { %p27_p1 = scmp.eq.s32.totalorder %s26_s29, 0  ;;  %p37_p2 = scmp.eq.s32.totalorder %s3704_s24, 0 }
   0x9   : > { %p42_p3 = scmp.ne.s32.totalorder %s3696_s22, %s3692_s21  ;;  %p43_p4 = scmp.eq.s32.totalorder %s3769_s25, 0 }
   0xa   : > { %s3785_s30 = scalar_select %p27_p1, %s3700_s23, %s29_s28  }
   0xb   : > { %p3787_p5 = por %p37_p2, %p36_p0  ;;  %p3791_p6 = por %p43_p4, %p42_p3 }
   0xc   : > { %p171_p7 = scmp.eq.s32.totalorder %s3769_s25, 3  ;;  %p177_p8 = scmp.eq.s32.totalorder %s3272_s26, 3 }
   0xd   : > { %p3500_p9 = scmp.lt.s32.totalorder %s3704_s24, 4  ;;  %s212_s11 = sand.u32 1, %s3700_s23  }
   0xe   : > { %p3797_p10 = por %p171_p7, %p36_p0  ;;  %p3801_p11 = por %p177_p8, %p42_p3 }
   0xf   : > { %s3358_s12 = sshll.u32 %s3704_s24, 11  ;;  %s3275_s13 = sshll.u32 %s212_s11, 7 }
  0x10   : > { %s4851_s9 = scalar_select %p3797_p10, 1, 0 }
  0x11   : > { %s4852_s10 = scalar_select %p3801_p11, 1, 0 }
  0x12   : > { %s3810_s16 = scalar_lea.hbm %s4821_s0, %s3358_s12  ;;  %s216_s17 = scalar_lea.vmem [#allocation2], %s3275_s13 }
  0x13   : > { %s224_s18 = sshll.u32 %s216_s17, 4  ;;  %p3814_p12 = pnand %p3500_p9, %p3787_p5  ;;  %s3818_s18 = int_to_ptr.vmem [resolvable:$true] %s224_s18 }
  0x14   : > { %s213_s20 = scalar_lea.sflag [#allocation3], %s212_s11  ;;  %s3608_s26 = scalar_lea.hbm %s3810_s16, 2048 }
  0x15   : > { %p3609_p1 = scmp.ne.s32.totalorder %s3810_s16, %s3608_s26  ;;  %p3610_p2 = pneg %p3814_p12 }
  0x16   : > { %s3613_s7 = scalar_lea.hbm %s4821_s0, 8192  ;;  %p3614_p5 = scmp.lt.u32.totalorder %s3810_s16, %s4821_s0 }
  0x17   : > { %p3611_p3 = pnand %p3610_p2, %p3609_p1  ;;  %p3615_p7 = scmp.lt.u32.totalorder %s3613_s7, %s3608_s26 }
  0x18   : > { %p3617_p9 = scmp.lt.u32.totalorder %s3608_s26, %s3810_s16 }
  0x19   : > { %p3612_p4 = pneg %p3611_p3  ;;  %p3616_p8 = por %p3615_p7, %p3614_p5 }
  0x1b   : > { %p3618_p13 = por %p3617_p9, %p3616_p8 }
  0x1d   : > { %p3619_p0 = pnand %p3618_p13, %p3612_p4 }
  0x1f   : > { %3622 = shalt.err (!%p3619_p0)
}
  0x20   : > { %s3623_s11 = scalar_lea.vmem %s3818_s18, 2048  ;;  %s3706_s14 = smov [#allocation2]  }
  0x21   : > { %p3624_p1 = scmp.ne.s32.totalorder %s3818_s18, %s3623_s11  ;;  %s3628_s15 = sshll.u32 %s3706_s14, 4  ;;  %s3629_s15 = int_to_ptr.vmem [resolvable:$false] %s3628_s15 }
  0x22   : > { %s3630_s17 = scalar_lea.vmem %s3629_s15, 4096  ;;  %p3631_p10 = scmp.lt.s32.totalorder %s3818_s18, %s3629_s15 }
  0x23   : > { %p3626_p3 = pnand %p3624_p1, %p3610_p2  ;;  %p3632_p5 = scmp.lt.s32.totalorder %s3630_s17, %s3623_s11 }
  0x25   : > { %p3627_p11 = pneg %p3626_p3  ;;  %p3633_p7 = por %p3632_p5, %p3631_p10 }
  0x27   : > { %p3634_p8 = pnand %p3633_p7, %p3627_p11 }
  0x29   : > { %3637 = shalt.err (!%p3634_p8)
}
  0x2a   : > { %3495 = dma.hbm_to_vmem [thread:$0]  (!%p3814_p12), %s3810_s16, 2048, %s3818_s18, %s213_s20  }
  0x2b   : > { %p4854_p13 = scmp.lt.s32.totalorder %s3704_s24, 5  ;;  %p4855_p0 = scmp.ge.s32.totalorder %s3704_s24, 1 }
  0x2d   : > { %p230_p2 = pnand %p4855_p0, %p4854_p13 }
  0x2f   : > { %233 = sbr.rel (%p230_p2) target bundleno = 1125 (0x465), region = 44 }
  0x36   : > { %s3852_s26 = sand.u32 1, %s3696_s22  }
  0x37   : > { %s3279_s28 = sshll.u32 %s3852_s26, 7  ;;  %s236_s29 = scalar_lea.sflag [#allocation3], %s3852_s26 }
  0x38   : > { %s3856_s7 = scalar_lea.vmem [#allocation2], %s3279_s28 }
  0x39   : > { %3683 = dma.done.wait (%p3791_p6), %s236_s29, 2048  }
  0x3a   : > { %3685 = vsyncadd (%p3791_p6), %s236_s29, 4294965248  ;;  %v3707_v0 = vmov 0.0   ;;  %v3865_v1 = vld [vmem:[%s3856_s7 + $0x8] sm:$0xff]  ;;  %v3868_v2 = vld [vmem:[%s3856_s7 + $0x18] sm:$0xff]  ;;  %vm288_vm0 = vcmask 64512   ;;  %v3708_v23 = vmov 0  }
  0x3b   : > { %365 = vmatprep.mubr.f32.mxu0 %v3707_v0  ;;  %454 = vmatprep.mubr.f32.mxu1 %v3707_v0  ;;  %v3871_v3 = vld [vmem:[%s3856_s7] sm:$0xff]  ;;  %v3876_v4 = vld [vmem:[%s3856_s7 + $0x10] sm:$0xff]  ;;  %v3886_v6 = vld [vmem:[%s3856_s7 + $0x28] sm:$0xff]  ;;  %vm1105_vm1 = vcmask 261120   ;;  %vm2488_vm3 = vcmask 1040384   ;;  %s3359_s19 = sshll.u32 %s3769_s25, 8 }
  0x3c   : > { %301 = vmatprep.subr.mxu0 %v3865_v1  ;;  %390 = vmatprep.subr.mxu1 %v3868_v2  ;;  %v3881_v5 = vld [vmem:[%s4822_s1] sm:$0xff]  ;;  %v3889_v7 = vld [vmem:[%s3856_s7 + $0x38] sm:$0xff]  ;;  %v3899_v9 = vld [vmem:[%s3856_s7 + $0x30] sm:$0xff]  ;;  %s4773_s11 = scalar_lea.hbm %s4827_s6, %s3359_s19  ;;  %s3188_s25 = scalar_lea.sflag [#allocation4], %s3852_s26 }
  0x3d   : > { %302 = vmatpush1.msra.mxu0 %v3871_v3  ;;  %391 = vmatpush1.msra.mxu1 %v3876_v4  ;;  %v3896_v8 = vld [vmem:[%s3856_s7 + $0x20] sm:$0xff]  ;;  %v3906_v10 = vld [vmem:[%s4822_s1 + $0x8] sm:$0xff]  ;;  %v3916_v12 = vld [vmem:[%s3856_s7 + $0x58] sm:$0xff]  ;;  %p4901_p10 = scmp.ne.s32.totalorder %s4851_s9, 0  ;;  %s3712_s15 = smov [#allocation5]  }
  0x3e   : > { %3281 = vmatmul.mubr.msk.f32.vlgmr.msra.gmra.mrb[0].mxu0 %vm288_vm0, %v3881_v5  ;;  %3285 = vmatmul.mubr.msk.f32.vlgmr.msra.gmra.mrb[0].mxu1 %vm288_vm0, %v3881_v5  ;;  %v3913_v11 = vld [vmem:[%s3856_s7 + $0x48] sm:$0xff]  ;;  %v3927_v13 = vld [vmem:[%s4822_s1 + $0x10] sm:$0xff]  ;;  %v287_v14 = vld [vmem:[%s4822_s1 + $0x18] sm:$0xff]  ;;  %s3642_s17 = sshll.u32 %s3712_s15, 4  ;;  %s3643_s17 = int_to_ptr.vmem [resolvable:$false] %s3642_s17 }
  0x3f   : > { %371 = vmatprep.mubr.f32.mxu0 %v3707_v0  ;;  %460 = vmatprep.mubr.f32.mxu1 %v3707_v0  ;;  %v3945_v15 = vld [vmem:[%s3856_s7 + $0x40] sm:$0xff]  ;;  %v3948_v16 = vld [vmem:[%s3856_s7 + $0x50] sm:$0xff]  ;;  %v281_v17 = vld [vmem:[%s3856_s7 + $0x68] sm:$0xff]  ;;  %s3644_s28 = scalar_lea.vmem %s3643_s17, 512 }
  0x40   : > { %479 = vmatprep.subr.mxu0 %v3886_v6  ;;  %568 = vmatprep.subr.mxu1 %v3889_v7  ;;  %v283_v18 = vld [vmem:[%s3856_s7 + $0x78] sm:$0xff]  ;;  %v3977_v19 = vld [vmem:[%s3856_s7 + $0x60] sm:$0xff]  ;;  %v282_v20 = vld [vmem:[%s3856_s7 + $0x70] sm:$0xff] }
  0x41   : > { %480 = vmatpush1.msra.mxu0 %v3896_v8  ;;  %569 = vmatpush1.msra.mxu1 %v3899_v9  ;;  %v1081_v21 = vld [vmem:[%s4824_s3] sm:$0xff]  ;;  %v1083_v22 = vld [vmem:[%s4824_s3 + $0x10] sm:$0xff]  ;;  %v1082_v24 = vld [vmem:[%s4824_s3 + $0x8] sm:$0xff] }
  0x42   : > { %3282 = vmatmul.mubr.msk.f32.gmra.mrb[2].mxu0 %vm288_vm0, %v3906_v10  ;;  %3286 = vmatmul.mubr.msk.f32.gmra.mrb[2].mxu1 %vm288_vm0, %v3906_v10  ;;  %v1084_v25 = vld [vmem:[%s4824_s3 + $0x18] sm:$0xff]  ;;  %v1895_v26 = vld [vmem:[%s4826_s5] sm:$0xff] }
  0x43   : > { %377 = vmatprep.mubr.f32.mxu0 %v3707_v0  ;;  %466 = vmatprep.mubr.f32.mxu1 %v3707_v0 }
  0x44   : > { %657 = vmatprep.subr.mxu0 %v3913_v11  ;;  %746 = vmatprep.subr.mxu1 %v3916_v12 }
  0x45   : > { %3539 = vset.pattern.permute.xlu0 %v3708_v23  ;;  %3540 = vset.pattern.permute.xlu1 %v3708_v23 }
  0x46   : > { %3283 = vmatmul.mubr.msk.f32.gmra.mrb[4].mxu0 %vm288_vm0, %v3927_v13  ;;  %3287 = vmatmul.mubr.msk.f32.gmra.mrb[4].mxu1 %vm288_vm0, %v3927_v13 }
  0x47   : > { %383 = vmatprep.mubr.f32.mxu0 %v3707_v0  ;;  %472 = vmatprep.mubr.f32.mxu1 %v3707_v0 }
  0x48   : > { %1087 = vperm.xlu0 %3539, %v1081_v21   ;;  %1097 = vperm.xlu1 %3540, %v1083_v22   ;;  %v4043_v21 = vld [vmem:[%s4823_s2] sm:$0xff] }
  0x4a   : > { %3284 = vmatmul.mubr.msk.f32.gmra.mrb[6].mxu0 %vm288_vm0, %v287_v14  ;;  %3288 = vmatmul.mubr.msk.f32.gmra.mrb[6].mxu1 %vm288_vm0, %v287_v14 }
  0x4b   : > { %543 = vmatprep.mubr.f32.mxu0 %v3707_v0  ;;  %632 = vmatprep.mubr.f32.mxu1 %v3707_v0 }
  0x4c   : > { %1092 = vperm.xlu0 %3539, %v1082_v24   ;;  %1102 = vperm.xlu1 %3540, %v1084_v25  }
  0x4e   : > { %3289 = vmatmul.mubr.msk.f32.vlgmr.msra.gmra.mrb[8].mxu0 %vm288_vm0, %v3881_v5  ;;  %3293 = vmatmul.mubr.msk.f32.vlgmr.msra.gmra.mrb[8].mxu1 %vm288_vm0, %v3881_v5 }
  0x4f   : > { %549 = vmatprep.mubr.f32.mxu0 %v3707_v0  ;;  %638 = vmatprep.mubr.f32.mxu1 %v3707_v0 }
  0x50   : > { %658 = vmatpush1.msra.mxu0 %v3945_v15  ;;  %747 = vmatpush1.msra.mxu1 %v3948_v16 }
  0x51   : > { %835 = vmatprep.subr.mxu0 %v281_v17  ;;  %924 = vmatprep.subr.mxu1 %v283_v18 }
  0x52   : > { %3290 = vmatmul.mubr.msk.f32.gmra.mrb[10].mxu0 %vm288_vm0, %v3906_v10  ;;  %3294 = vmatmul.mubr.msk.f32.gmra.mrb[10].mxu1 %vm288_vm0, %v3906_v10 }
  0x53   : > { %555 = vmatprep.mubr.f32.mxu0 %v3707_v0  ;;  %644 = vmatprep.mubr.f32.mxu1 %v3707_v0 }
  0x54   : > { %1898 = vperm.xlu0 %3539, %v1895_v26  }
  0x56   : > { %3291 = vmatmul.mubr.msk.f32.gmra.mrb[12].mxu0 %vm288_vm0, %v3927_v13  ;;  %3295 = vmatmul.mubr.msk.f32.gmra.mrb[12].mxu1 %vm288_vm0, %v3927_v13 }
  0x57   : > { %561 = vmatprep.mubr.f32.mxu0 %v3707_v0  ;;  %650 = vmatprep.mubr.f32.mxu1 %v3707_v0 }
  0x5a   : > { %3292 = vmatmul.mubr.msk.f32.gmra.mrb[14].mxu0 %vm288_vm0, %v287_v14  ;;  %3296 = vmatmul.mubr.msk.f32.gmra.mrb[14].mxu1 %vm288_vm0, %v287_v14 }
  0x5b   : > { %721 = vmatprep.mubr.f32.mxu0 %v3707_v0  ;;  %810 = vmatprep.mubr.f32.mxu1 %v3707_v0 }
  0x5e   : > { %3297 = vmatmul.mubr.msk.f32.vlgmr.msra.gmra.mrb[16].mxu0 %vm288_vm0, %v3881_v5  ;;  %3301 = vmatmul.mubr.msk.f32.vlgmr.msra.gmra.mrb[16].mxu1 %vm288_vm0, %v3881_v5 }
  0x5f   : > { %727 = vmatprep.mubr.f32.mxu0 %v3707_v0  ;;  %816 = vmatprep.mubr.f32.mxu1 %v3707_v0 }
  0x60   : > { %836 = vmatpush1.msra.mxu0 %v3977_v19  ;;  %925 = vmatpush1.msra.mxu1 %v282_v20 }
  0x62   : > { %3298 = vmatmul.mubr.msk.f32.gmra.mrb[18].mxu0 %vm288_vm0, %v3906_v10  ;;  %3302 = vmatmul.mubr.msk.f32.gmra.mrb[18].mxu1 %vm288_vm0, %v3906_v10 }
  0x63   : > { %733 = vmatprep.mubr.f32.mxu0 %v3707_v0  ;;  %822 = vmatprep.mubr.f32.mxu1 %v3707_v0 }
  0x66   : > { %3299 = vmatmul.mubr.msk.f32.gmra.mrb[20].mxu0 %vm288_vm0, %v3927_v13  ;;  %3303 = vmatmul.mubr.msk.f32.gmra.mrb[20].mxu1 %vm288_vm0, %v3927_v13 }
  0x67   : > { %739 = vmatprep.mubr.f32.mxu0 %v3707_v0  ;;  %828 = vmatprep.mubr.f32.mxu1 %v3707_v0 }
  0x6a   : > { %3300 = vmatmul.mubr.msk.f32.gmra.mrb[22].mxu0 %vm288_vm0, %v287_v14  ;;  %3304 = vmatmul.mubr.msk.f32.gmra.mrb[22].mxu1 %vm288_vm0, %v287_v14 }
  0x6b   : > { %899 = vmatprep.mubr.f32.mxu0 %v3707_v0  ;;  %988 = vmatprep.mubr.f32.mxu1 %v3707_v0 }
  0x6e   : > { %3305 = vmatmul.mubr.msk.f32.vlgmr.msra.gmra.mrb[24].mxu0 %vm288_vm0, %v3881_v5  ;;  %3309 = vmatmul.mubr.msk.f32.vlgmr.msra.gmra.mrb[24].mxu1 %vm288_vm0, %v3881_v5 }
  0x6f   : > { %905 = vmatprep.mubr.f32.mxu0 %v3707_v0  ;;  %994 = vmatprep.mubr.f32.mxu1 %v3707_v0 }
  0x72   : > { %3306 = vmatmul.mubr.msk.f32.gmra.mrb[26].mxu0 %vm288_vm0, %v3906_v10  ;;  %3310 = vmatmul.mubr.msk.f32.gmra.mrb[26].mxu1 %vm288_vm0, %v3906_v10 }
  0x73   : > { %911 = vmatprep.mubr.f32.mxu0 %v3707_v0  ;;  %1000 = vmatprep.mubr.f32.mxu1 %v3707_v0 }
  0x76   : > { %3307 = vmatmul.mubr.msk.f32.gmra.mrb[28].mxu0 %vm288_vm0, %v3927_v13  ;;  %3311 = vmatmul.mubr.msk.f32.gmra.mrb[28].mxu1 %vm288_vm0, %v3927_v13 }
  0x77   : > { %917 = vmatprep.mubr.f32.mxu0 %v3707_v0  ;;  %1006 = vmatprep.mubr.f32.mxu1 %v3707_v0 }
  0x7a   : > { %3308 = vmatmul.mubr.msk.f32.gmra.mrb[30].mxu0 %vm288_vm0, %v287_v14  ;;  %3312 = vmatmul.mubr.msk.f32.gmra.mrb[30].mxu1 %vm288_vm0, %v287_v14 }
  0x7b   : > { %1182 = vmatprep.mubr.f32.mxu0 %v3707_v0  ;;  %1271 = vmatprep.mubr.f32.mxu1 %v3707_v0 }
 0x111   : > { %v367_v27 = vpop.f32.mrb[0].mxu0  ;;  %v456_v28 = vpop.f32.mrb[0].mxu1 }
 0x112   : > { %v369_v29 = vpop.f32.mrb[1].mxu0  ;;  %v458_v30 = vpop.f32.mrb[1].mxu1  ;;  %v1013_v33 = vmax.f32 %v367_v27, 0.0  ;;  %v1015_v34 = vmax.f32 %v456_v28, 0.0 }
 0x113   : > { %v1014_v39 = vmax.f32 %v369_v29, 0.0  ;;  %v1016_v40 = vmax.f32 %v458_v30, 0.0 }
 0x115   : > { %v373_v31 = vpop.f32.mrb[2].mxu0  ;;  %v462_v32 = vpop.f32.mrb[2].mxu1 }
 0x116   : > { %v1029_v35 = vmax.f32 %v373_v31, 0.0  ;;  %v1031_v36 = vmax.f32 %v462_v32, 0.0  ;;  %v375_v37 = vpop.f32.mrb[3].mxu0  ;;  %v464_v38 = vpop.f32.mrb[3].mxu1 }
 0x117   : > { %v1030_v41 = vmax.f32 %v375_v37, 0.0  ;;  %v1032_v42 = vmax.f32 %v464_v38, 0.0 }
 0x118   : > { %v3362_v43 = vpack.c.bf16 %v1029_v35, %v1013_v33  ;;  %v3370_v44 = vpack.c.bf16 %v1031_v36, %v1015_v34  ;;  %v4054_v36 = vld [vmem:[%s4823_s2 + $0x8] sm:$0xff] }
 0x119   : > { %v3360_v45 = vpack.c.bf16 %v1030_v41, %v1014_v39  ;;  %v3368_v46 = vpack.c.bf16 %v1032_v42, %v1016_v40  ;;  %v379_v47 = vpop.f32.mrb[4].mxu0  ;;  %v468_v48 = vpop.f32.mrb[4].mxu1 }
 0x11a   : > { %v381_v49 = vpop.f32.mrb[5].mxu0  ;;  %v470_v50 = vpop.f32.mrb[5].mxu1  ;;  %v1045_v53 = vmax.f32 %v379_v47, 0.0  ;;  %v1047_v54 = vmax.f32 %v468_v48, 0.0 }
 0x11b   : > { %3361 = vmatprep.subr.bf16.mxu0 %v3360_v45  ;;  %3369 = vmatprep.subr.bf16.mxu1 %v3368_v46  ;;  %v1046_v59 = vmax.f32 %v381_v49, 0.0  ;;  %v1048_v60 = vmax.f32 %v470_v50, 0.0 }
 0x11c   : > { %3363 = vmatpush1.bf16.msra.mxu0 %v3362_v43  ;;  %3371 = vmatpush1.bf16.msra.mxu1 %v3370_v44  ;;  %v4063_v43 = vld [vmem:[%s4823_s2 + $0x10] sm:$0xff] }
 0x11d   : > { %v385_v51 = vpop.f32.mrb[6].mxu0  ;;  %v474_v52 = vpop.f32.mrb[6].mxu1 }
 0x11e   : > { %v1061_v55 = vmax.f32 %v385_v51, 0.0  ;;  %v1063_v56 = vmax.f32 %v474_v52, 0.0  ;;  %v387_v57 = vpop.f32.mrb[7].mxu0  ;;  %v476_v58 = vpop.f32.mrb[7].mxu1 }
 0x11f   : > { %v1062_v61 = vmax.f32 %v387_v57, 0.0  ;;  %v1064_v62 = vmax.f32 %v476_v58, 0.0  ;;  %v4076_v58 = vld [vmem:[%s4823_s2 + $0x18] sm:$0xff] }
 0x120   : > { %v3366_v63 = vpack.c.bf16 %v1061_v55, %v1045_v53  ;;  %v3374_v5 = vpack.c.bf16 %v1063_v56, %v1047_v54 }
 0x121   : > { %v3364_v10 = vpack.c.bf16 %v1062_v61, %v1046_v59  ;;  %v3372_v13 = vpack.c.bf16 %v1064_v62, %v1048_v60  ;;  %v545_v14 = vpop.f32.mrb[8].mxu0  ;;  %v634_v17 = vpop.f32.mrb[8].mxu1 }
 0x122   : > { %v547_v18 = vpop.f32.mrb[9].mxu0  ;;  %v636_v20 = vpop.f32.mrb[9].mxu1  ;;  %v1017_v24 = vmax.f32 %v545_v14, 0.0  ;;  %v1019_v25 = vmax.f32 %v634_v17, 0.0 }
 0x123   : > { %3365 = vmatprep.subr.bf16.mxu0 %v3364_v10  ;;  %3373 = vmatprep.subr.bf16.mxu1 %v3372_v13  ;;  %v1018_v30 = vmax.f32 %v547_v18, 0.0  ;;  %v1020_v31 = vmax.f32 %v636_v20, 0.0 }
 0x124   : > { %3367 = vmatpush1.bf16.msra.mxu0 %v3366_v63  ;;  %3375 = vmatpush1.bf16.msra.mxu1 %v3374_v5 }
 0x125   : > { %v551_v22 = vpop.f32.mrb[10].mxu0  ;;  %v640_v23 = vpop.f32.mrb[10].mxu1 }
 0x126   : > { %v1033_v26 = vmax.f32 %v551_v22, 0.0  ;;  %v1035_v27 = vmax.f32 %v640_v23, 0.0  ;;  %v553_v28 = vpop.f32.mrb[11].mxu0  ;;  %v642_v29 = vpop.f32.mrb[11].mxu1 }
 0x127   : > { %v1034_v32 = vmax.f32 %v553_v28, 0.0  ;;  %v1036_v33 = vmax.f32 %v642_v29, 0.0  ;;  %3313 = vmatmul.mubr.msk.f32.vlgmr.msra.gmra.mrb[32].mxu0 %vm1105_vm1, %v4043_v21  ;;  %3317 = vmatmul.mubr.msk.f32.vlgmr.msra.gmra.mrb[32].mxu1 %vm1105_vm1, %v4043_v21 }
 0x128   : > { %v3378_v34 = vpack.c.bf16 %v1033_v26, %v1017_v24  ;;  %v3386_v35 = vpack.c.bf16 %v1035_v27, %v1019_v25  ;;  %1188 = vmatprep.mubr.f32.mxu0 %v3707_v0  ;;  %1277 = vmatprep.mubr.f32.mxu1 %v3707_v0 }
 0x129   : > { %v3376_v37 = vpack.c.bf16 %v1034_v32, %v1018_v30  ;;  %v3384_v38 = vpack.c.bf16 %v1036_v33, %v1020_v31  ;;  %v557_v39 = vpop.f32.mrb[12].mxu0  ;;  %v646_v40 = vpop.f32.mrb[12].mxu1 }
 0x12a   : > { %v559_v41 = vpop.f32.mrb[13].mxu0  ;;  %v648_v42 = vpop.f32.mrb[13].mxu1  ;;  %v1049_v46 = vmax.f32 %v557_v39, 0.0  ;;  %v1051_v47 = vmax.f32 %v646_v40, 0.0 }
 0x12b   : > { %3314 = vmatmul.mubr.msk.f32.gmra.mrb[34].mxu0 %vm1105_vm1, %v4054_v36  ;;  %3318 = vmatmul.mubr.msk.f32.gmra.mrb[34].mxu1 %vm1105_vm1, %v4054_v36  ;;  %v1050_v52 = vmax.f32 %v559_v41, 0.0  ;;  %v1052_v53 = vmax.f32 %v648_v42, 0.0 }
 0x12c   : > { %3377 = vmatprep.subr.bf16.mxu0 %v3376_v37  ;;  %3385 = vmatprep.subr.bf16.mxu1 %v3384_v38 }
 0x12d   : > { %3379 = vmatpush1.bf16.msra.mxu0 %v3378_v34  ;;  %3387 = vmatpush1.bf16.msra.mxu1 %v3386_v35  ;;  %v563_v44 = vpop.f32.mrb[14].mxu0  ;;  %v652_v45 = vpop.f32.mrb[14].mxu1 }
 0x12e   : > { %v1065_v48 = vmax.f32 %v563_v44, 0.0  ;;  %v1067_v49 = vmax.f32 %v652_v45, 0.0  ;;  %v565_v50 = vpop.f32.mrb[15].mxu0  ;;  %v654_v51 = vpop.f32.mrb[15].mxu1  ;;  %1194 = vmatprep.mubr.f32.mxu0 %v3707_v0  ;;  %1283 = vmatprep.mubr.f32.mxu1 %v3707_v0 }
 0x12f   : > { %v1066_v54 = vmax.f32 %v565_v50, 0.0  ;;  %v1068_v55 = vmax.f32 %v654_v51, 0.0  ;;  %3315 = vmatmul.mubr.msk.f32.gmra.mrb[36].mxu0 %vm1105_vm1, %v4063_v43  ;;  %3319 = vmatmul.mubr.msk.f32.gmra.mrb[36].mxu1 %vm1105_vm1, %v4063_v43 }
 0x130   : > { %v3382_v56 = vpack.c.bf16 %v1065_v48, %v1049_v46  ;;  %v3390_v57 = vpack.c.bf16 %v1067_v49, %v1051_v47  ;;  %1200 = vmatprep.mubr.f32.mxu0 %v3707_v0  ;;  %1289 = vmatprep.mubr.f32.mxu1 %v3707_v0 }
 0x131   : > { %v3380_v59 = vpack.c.bf16 %v1066_v54, %v1050_v52  ;;  %v3388_v60 = vpack.c.bf16 %v1068_v55, %v1052_v53  ;;  %v723_v61 = vpop.f32.mrb[16].mxu0  ;;  %v812_v62 = vpop.f32.mrb[16].mxu1 }
 0x132   : > { %v725_v63 = vpop.f32.mrb[17].mxu0  ;;  %v814_v5 = vpop.f32.mrb[17].mxu1  ;;  %v1021_v10 = vmax.f32 %v723_v61, 0.0  ;;  %v1023_v13 = vmax.f32 %v812_v62, 0.0 }
 0x133   : > { %3316 = vmatmul.mubr.msk.f32.gmra.mrb[38].mxu0 %vm1105_vm1, %v4076_v58  ;;  %3320 = vmatmul.mubr.msk.f32.gmra.mrb[38].mxu1 %vm1105_vm1, %v4076_v58  ;;  %v1024_v17 = vmax.f32 %v814_v5, 0.0  ;;  %v1022_v25 = vmax.f32 %v725_v63, 0.0 }
 0x134   : > { %3381 = vmatprep.subr.bf16.mxu0 %v3380_v59  ;;  %3389 = vmatprep.subr.bf16.mxu1 %v3388_v60 }
 0x135   : > { %3383 = vmatpush1.bf16.msra.mxu0 %v3382_v56  ;;  %3391 = vmatpush1.bf16.msra.mxu1 %v3390_v57  ;;  %v729_v14 = vpop.f32.mrb[18].mxu0  ;;  %v818_v18 = vpop.f32.mrb[18].mxu1 }
 0x136   : > { %v1037_v20 = vmax.f32 %v729_v14, 0.0  ;;  %v731_v22 = vpop.f32.mrb[19].mxu0  ;;  %v1039_v23 = vmax.f32 %v818_v18, 0.0  ;;  %1360 = vmatprep.mubr.f32.mxu0 %v3707_v0  ;;  %1449 = vmatprep.mubr.f32.mxu1 %v3707_v0  ;;  %v820_v24 = vpop.f32.mrb[19].mxu1 }
 0x137   : > { %v1038_v26 = vmax.f32 %v731_v22, 0.0  ;;  %v1040_v27 = vmax.f32 %v820_v24, 0.0 }
 0x138   : > { %v3394_v28 = vpack.c.bf16 %v1037_v20, %v1021_v10  ;;  %v3402_v29 = vpack.c.bf16 %v1039_v23, %v1023_v13  ;;  %3321 = vmatmul.mubr.msk.f32.vlgmr.msra.gmra.mrb[40].mxu0 %vm1105_vm1, %v4043_v21  ;;  %3325 = vmatmul.mubr.msk.f32.vlgmr.msra.gmra.mrb[40].mxu1 %vm1105_vm1, %v4043_v21 }
 0x139   : > { %v3392_v30 = vpack.c.bf16 %v1038_v26, %v1022_v25  ;;  %v3400_v31 = vpack.c.bf16 %v1040_v27, %v1024_v17  ;;  %1366 = vmatprep.mubr.f32.mxu0 %v3707_v0  ;;  %1455 = vmatprep.mubr.f32.mxu1 %v3707_v0  ;;  %v735_v32 = vpop.f32.mrb[20].mxu0  ;;  %v824_v33 = vpop.f32.mrb[20].mxu1 }
 0x13a   : > { %v737_v34 = vpop.f32.mrb[21].mxu0  ;;  %v826_v35 = vpop.f32.mrb[21].mxu1  ;;  %v1053_v37 = vmax.f32 %v735_v32, 0.0  ;;  %v1055_v38 = vmax.f32 %v824_v33, 0.0 }
 0x13b   : > { %3393 = vmatprep.subr.bf16.mxu0 %v3392_v30  ;;  %3401 = vmatprep.subr.bf16.mxu1 %v3400_v31  ;;  %v1056_v39 = vmax.f32 %v826_v35, 0.0  ;;  %v1054_v47 = vmax.f32 %v737_v34, 0.0 }
 0x13c   : > { %3322 = vmatmul.mubr.msk.f32.gmra.mrb[42].mxu0 %vm1105_vm1, %v4054_v36  ;;  %3326 = vmatmul.mubr.msk.f32.gmra.mrb[42].mxu1 %vm1105_vm1, %v4054_v36 }
 0x13d   : > { %3395 = vmatpush1.bf16.msra.mxu0 %v3394_v28  ;;  %v741_v40 = vpop.f32.mrb[22].mxu0  ;;  %v830_v41 = vpop.f32.mrb[22].mxu1  ;;  %3403 = vmatpush1.bf16.msra.mxu1 %v3402_v29 }
 0x13e   : > { %v1069_v42 = vmax.f32 %v741_v40, 0.0  ;;  %v1071_v44 = vmax.f32 %v830_v41, 0.0  ;;  %v743_v45 = vpop.f32.mrb[23].mxu0  ;;  %v832_v46 = vpop.f32.mrb[23].mxu1  ;;  %1372 = vmatprep.mubr.f32.mxu0 %v3707_v0  ;;  %1461 = vmatprep.mubr.f32.mxu1 %v3707_v0 }
 0x13f   : > { %v1070_v48 = vmax.f32 %v743_v45, 0.0  ;;  %v1072_v49 = vmax.f32 %v832_v46, 0.0 }
 0x140   : > { %v3398_v50 = vpack.c.bf16 %v1069_v42, %v1053_v37  ;;  %v3406_v51 = vpack.c.bf16 %v1071_v44, %v1055_v38  ;;  %3323 = vmatmul.mubr.msk.f32.gmra.mrb[44].mxu0 %vm1105_vm1, %v4063_v43  ;;  %3327 = vmatmul.mubr.msk.f32.gmra.mrb[44].mxu1 %vm1105_vm1, %v4063_v43 }
 0x141   : > { %v3396_v52 = vpack.c.bf16 %v1070_v48, %v1054_v47  ;;  %v3404_v53 = vpack.c.bf16 %v1072_v49, %v1056_v39  ;;  %1378 = vmatprep.mubr.f32.mxu0 %v3707_v0  ;;  %1467 = vmatprep.mubr.f32.mxu1 %v3707_v0  ;;  %v901_v54 = vpop.f32.mrb[24].mxu0  ;;  %v990_v55 = vpop.f32.mrb[24].mxu1 }
 0x142   : > { %v903_v56 = vpop.f32.mrb[25].mxu0  ;;  %v992_v57 = vpop.f32.mrb[25].mxu1  ;;  %v1025_v59 = vmax.f32 %v901_v54, 0.0  ;;  %v1027_v60 = vmax.f32 %v990_v55, 0.0 }
 0x143   : > { %3397 = vmatprep.subr.bf16.mxu0 %v3396_v52  ;;  %3405 = vmatprep.subr.bf16.mxu1 %v3404_v53  ;;  %v1028_v62 = vmax.f32 %v992_v57, 0.0  ;;  %v1026_v17 = vmax.f32 %v903_v56, 0.0 }
 0x144   : > { %3324 = vmatmul.mubr.msk.f32.gmra.mrb[46].mxu0 %vm1105_vm1, %v4076_v58  ;;  %3328 = vmatmul.mubr.msk.f32.gmra.mrb[46].mxu1 %vm1105_vm1, %v4076_v58 }
 0x145   : > { %3399 = vmatpush1.bf16.msra.mxu0 %v3398_v50  ;;  %3407 = vmatpush1.bf16.msra.mxu1 %v3406_v51  ;;  %v907_v61 = vpop.f32.mrb[26].mxu0  ;;  %v996_v63 = vpop.f32.mrb[26].mxu1 }
 0x146   : > { %v1041_v5 = vmax.f32 %v907_v61, 0.0  ;;  %v909_v10 = vpop.f32.mrb[27].mxu0  ;;  %v1043_v13 = vmax.f32 %v996_v63, 0.0  ;;  %1538 = vmatprep.mubr.f32.mxu0 %v3707_v0  ;;  %1627 = vmatprep.mubr.f32.mxu1 %v3707_v0  ;;  %v998_v14 = vpop.f32.mrb[27].mxu1 }
 0x147   : > { %v1042_v18 = vmax.f32 %v909_v10, 0.0  ;;  %v1044_v20 = vmax.f32 %v998_v14, 0.0 }
 0x148   : > { %v3410_v22 = vpack.c.bf16 %v1041_v5, %v1025_v59  ;;  %v3418_v23 = vpack.c.bf16 %v1043_v13, %v1027_v60  ;;  %3329 = vmatmul.mubr.msk.f32.vlgmr.msra.gmra.mrb[48].mxu0 %vm1105_vm1, %v4043_v21  ;;  %3333 = vmatmul.mubr.msk.f32.vlgmr.msra.gmra.mrb[48].mxu1 %vm1105_vm1, %v4043_v21 }
 0x149   : > { %v3408_v24 = vpack.c.bf16 %v1042_v18, %v1026_v17  ;;  %v3416_v25 = vpack.c.bf16 %v1044_v20, %v1028_v62  ;;  %1544 = vmatprep.mubr.f32.mxu0 %v3707_v0  ;;  %1633 = vmatprep.mubr.f32.mxu1 %v3707_v0  ;;  %v913_v26 = vpop.f32.mrb[28].mxu0  ;;  %v1002_v27 = vpop.f32.mrb[28].mxu1 }
 0x14a   : > { %v915_v28 = vpop.f32.mrb[29].mxu0  ;;  %v1004_v29 = vpop.f32.mrb[29].mxu1  ;;  %v1057_v30 = vmax.f32 %v913_v26, 0.0  ;;  %v1059_v31 = vmax.f32 %v1002_v27, 0.0 }
 0x14b   : > { %3409 = vmatprep.subr.bf16.mxu0 %v3408_v24  ;;  %3417 = vmatprep.subr.bf16.mxu1 %v3416_v25  ;;  %v1060_v32 = vmax.f32 %v1004_v29, 0.0  ;;  %v1058_v40 = vmax.f32 %v915_v28, 0.0 }
 0x14c   : > { %3330 = vmatmul.mubr.msk.f32.gmra.mrb[50].mxu0 %vm1105_vm1, %v4054_v36  ;;  %3334 = vmatmul.mubr.msk.f32.gmra.mrb[50].mxu1 %vm1105_vm1, %v4054_v36 }
 0x14d   : > { %3411 = vmatpush1.bf16.msra.mxu0 %v3410_v22  ;;  %v919_v33 = vpop.f32.mrb[30].mxu0  ;;  %v1008_v34 = vpop.f32.mrb[30].mxu1  ;;  %3419 = vmatpush1.bf16.msra.mxu1 %v3418_v23 }
 0x14e   : > { %v1073_v35 = vmax.f32 %v919_v33, 0.0  ;;  %v1075_v37 = vmax.f32 %v1008_v34, 0.0  ;;  %v921_v38 = vpop.f32.mrb[31].mxu0  ;;  %v1010_v39 = vpop.f32.mrb[31].mxu1  ;;  %1550 = vmatprep.mubr.f32.mxu0 %v3707_v0  ;;  %1639 = vmatprep.mubr.f32.mxu1 %v3707_v0 }
 0x14f   : > { %v1074_v41 = vmax.f32 %v921_v38, 0.0  ;;  %v1076_v42 = vmax.f32 %v1010_v39, 0.0 }
 0x150   : > { %v3414_v44 = vpack.c.bf16 %v1073_v35, %v1057_v30  ;;  %v3422_v45 = vpack.c.bf16 %v1075_v37, %v1059_v31  ;;  %3331 = vmatmul.mubr.msk.f32.gmra.mrb[52].mxu0 %vm1105_vm1, %v4063_v43  ;;  %3335 = vmatmul.mubr.msk.f32.gmra.mrb[52].mxu1 %vm1105_vm1, %v4063_v43 }
 0x151   : > { %v3412_v46 = vpack.c.bf16 %v1074_v41, %v1058_v40  ;;  %v3420_v47 = vpack.c.bf16 %v1076_v42, %v1060_v32  ;;  %1556 = vmatprep.mubr.f32.mxu0 %v3707_v0  ;;  %1645 = vmatprep.mubr.f32.mxu1 %v3707_v0 }
 0x153   : > { %3413 = vmatprep.subr.bf16.mxu0 %v3412_v46  ;;  %3421 = vmatprep.subr.bf16.mxu1 %v3420_v47 }
 0x154   : > { %3332 = vmatmul.mubr.msk.f32.gmra.mrb[54].mxu0 %vm1105_vm1, %v4076_v58  ;;  %3336 = vmatmul.mubr.msk.f32.gmra.mrb[54].mxu1 %vm1105_vm1, %v4076_v58 }
 0x155   : > { %3415 = vmatpush1.bf16.msra.mxu0 %v3414_v44  ;;  %3423 = vmatpush1.bf16.msra.mxu1 %v3422_v45 }
 0x156   : > { %1716 = vmatprep.mubr.f32.mxu0 %v3707_v0  ;;  %1805 = vmatprep.mubr.f32.mxu1 %v3707_v0 }
 0x158   : > { %3337 = vmatmul.mubr.msk.f32.vlgmr.msra.gmra.mrb[56].mxu0 %vm1105_vm1, %v4043_v21  ;;  %3341 = vmatmul.mubr.msk.f32.vlgmr.msra.gmra.mrb[56].mxu1 %vm1105_vm1, %v4043_v21  ;;  %v4830_v21 = vmov 11  }
 0x159   : > { %1722 = vmatprep.mubr.f32.mxu0 %v3707_v0  ;;  %1811 = vmatprep.mubr.f32.mxu1 %v3707_v0 }
 0x15a   : > { %3541 = vset.pattern.permute.xlu0 %v4830_v21 }
 0x15b   : > { %2506 = vperm.xlu0 %3541, %v3871_v3  }
 0x15c   : > { %3338 = vmatmul.mubr.msk.f32.gmra.mrb[58].mxu0 %vm1105_vm1, %v4054_v36  ;;  %3342 = vmatmul.mubr.msk.f32.gmra.mrb[58].mxu1 %vm1105_vm1, %v4054_v36  ;;  %v4832_v36 = vmov 10  }
 0x15d   : > { %1728 = vmatprep.mubr.f32.mxu0 %v3707_v0  ;;  %1817 = vmatprep.mubr.f32.mxu1 %v3707_v0 }
 0x15e   : > { %3542 = vset.pattern.permute.xlu1 %v4832_v36 }
 0x15f   : > { %2548 = vperm.xlu1 %3542, %v3865_v1   ;;  %2598 = vperm.xlu0 %3541, %v3876_v4  }
 0x160   : > { %3339 = vmatmul.mubr.msk.f32.gmra.mrb[60].mxu0 %vm1105_vm1, %v4063_v43  ;;  %3343 = vmatmul.mubr.msk.f32.gmra.mrb[60].mxu1 %vm1105_vm1, %v4063_v43 }
 0x161   : > { %1734 = vmatprep.mubr.f32.mxu0 %v3707_v0  ;;  %1823 = vmatprep.mubr.f32.mxu1 %v3707_v0 }
 0x163   : > { %3543 = vset.pattern.permute.xlu1 %v4830_v21  ;;  %2642 = vperm.xlu0 %3541, %v3868_v2  }
 0x164   : > { %3340 = vmatmul.mubr.msk.f32.gmra.mrb[62].mxu0 %vm1105_vm1, %v4076_v58  ;;  %3344 = vmatmul.mubr.msk.f32.gmra.mrb[62].mxu1 %vm1105_vm1, %v4076_v58 }
 0x165   : > { %1968 = vmatprep.mubr.f32.mxu0 %v3707_v0  ;;  %2039 = vmatprep.mubr.f32.mxu1 %v3707_v0 }
 0x166   : > { %2554 = vperm.xlu1 %3543, %v3865_v1   ;;  %v4188_v1 = vpop.permute.xlu0 %1087 }
 0x167   : > { %2774 = vperm.xlu0 %3541, %v3899_v9  }
 0x16a   : > { %3544 = vset.pattern.permute.xlu1 %v4832_v36 }
 0x16b   : > { %2592 = vperm.xlu1 %3544, %v3876_v4   ;;  %2862 = vperm.xlu0 %3541, %v3945_v15  }
 0x16f   : > { %2636 = vperm.xlu1 %3544, %v3868_v2   ;;  %2906 = vperm.xlu0 %3541, %v3913_v11  }
 0x173   : > { %2680 = vperm.xlu1 %3544, %v3896_v8   ;;  %2950 = vperm.xlu0 %3541, %v3948_v16  }
 0x177   : > { %3545 = vset.pattern.permute.xlu1 %v4830_v21  ;;  %3549 = vset.pattern.permute.xlu0 %v4832_v36 }
 0x178   : > { %2686 = vperm.xlu1 %3545, %v3896_v8   ;;  %2500 = vperm.xlu0 %3549, %v3871_v3  }
 0x17c   : > { %2730 = vperm.xlu1 %3545, %v3886_v6   ;;  %2724 = vperm.xlu0 %3549, %v3886_v6  }
 0x180   : > { %3546 = vset.pattern.permute.xlu1 %v4832_v36  ;;  %2768 = vperm.xlu0 %3549, %v3899_v9  }
 0x181   : > { %2812 = vperm.xlu1 %3546, %v3889_v7  }
 0x184   : > { %2856 = vperm.xlu0 %3549, %v3945_v15  }
 0x185   : > { %3547 = vset.pattern.permute.xlu1 %v4830_v21 }
 0x186   : > { %2818 = vperm.xlu1 %3547, %v3889_v7   ;;  %v4192_v7 = vpop.permute.xlu0 %1092 }
 0x188   : > { %2944 = vperm.xlu0 %3549, %v3948_v16  }
 0x18a   : > { %3548 = vset.pattern.permute.xlu1 %v4832_v36 }
 0x18b   : > { %2900 = vperm.xlu1 %3548, %v3913_v11   ;;  %v4196_v11 = vpop.permute.xlu1 %1097 }
 0x18c   : > { %3032 = vperm.xlu0 %3549, %v3977_v19  }
 0x18f   : > { %2988 = vperm.xlu1 %3548, %v3916_v12   ;;  %v4204_v18 = vpop.permute.xlu1 %1102 }
 0x193   : > { %3550 = vset.pattern.permute.xlu1 %v4830_v21 }
 0x1fa   : > { %v1184_v2 = vpop.f32.mrb[32].mxu0  ;;  %v1273_v3 = vpop.f32.mrb[32].mxu1 }
 0x1fb   : > { %v1186_v4 = vpop.f32.mrb[33].mxu0  ;;  %v1275_v6 = vpop.f32.mrb[33].mxu1  ;;  %v1185_v8 = vadd.f32 %v1184_v2, %v4188_v1  ;;  %v1274_v9 = vadd.f32 %v1273_v3, %v4188_v1 }
 0x1fc   : > { %v1187_v12 = vadd.f32 %v1186_v4, %v4188_v1  ;;  %v1276_v15 = vadd.f32 %v1275_v6, %v4188_v1 }
 0x1fd   : > { %v1830_v52 = vmax.f32 %v1185_v8, 0.0  ;;  %v1832_v53 = vmax.f32 %v1274_v9, 0.0 }
 0x1fe   : > { %v1190_v16 = vpop.f32.mrb[34].mxu0  ;;  %v1279_v19 = vpop.f32.mrb[34].mxu1  ;;  %v1831_v56 = vmax.f32 %v1187_v12, 0.0  ;;  %v1833_v57 = vmax.f32 %v1276_v15, 0.0 }
 0x1ff   : > { %v1192_v43 = vpop.f32.mrb[35].mxu0  ;;  %v1281_v58 = vpop.f32.mrb[35].mxu1  ;;  %v1191_v48 = vadd.f32 %v1190_v16, %v4192_v7  ;;  %v1280_v49 = vadd.f32 %v1279_v19, %v4192_v7  ;;  %v4221_v19 = vld [vmem:[%s4825_s4] sm:$0xff] }
 0x200   : > { %v1193_v50 = vadd.f32 %v1192_v43, %v4192_v7  ;;  %v1282_v51 = vadd.f32 %v1281_v58, %v4192_v7 }
 0x201   : > { %v1846_v54 = vmax.f32 %v1191_v48, 0.0  ;;  %v1848_v55 = vmax.f32 %v1280_v49, 0.0 }
 0x202   : > { %v1847_v59 = vmax.f32 %v1193_v50, 0.0  ;;  %v1849_v60 = vmax.f32 %v1282_v51, 0.0  ;;  %v1196_v61 = vpop.f32.mrb[36].mxu0  ;;  %v1285_v62 = vpop.f32.mrb[36].mxu1 }
 0x203   : > { %v1198_v63 = vpop.f32.mrb[37].mxu0  ;;  %v1287_v5 = vpop.f32.mrb[37].mxu1  ;;  %v3426_v10 = vpack.c.bf16 %v1846_v54, %v1830_v52  ;;  %v3434_v13 = vpack.c.bf16 %v1848_v55, %v1832_v53  ;;  %v1197_v20 = vadd.f32 %v1196_v61, %v4196_v11  ;;  %v1286_v22 = vadd.f32 %v1285_v62, %v4196_v11 }
 0x204   : > { %v3424_v14 = vpack.c.bf16 %v1847_v59, %v1831_v56  ;;  %v3432_v17 = vpack.c.bf16 %v1849_v60, %v1833_v57  ;;  %v1199_v23 = vadd.f32 %v1198_v63, %v4196_v11  ;;  %v1288_v24 = vadd.f32 %v1287_v5, %v4196_v11 }
 0x205   : > { %v1862_v33 = vmax.f32 %v1197_v20, 0.0  ;;  %v1864_v34 = vmax.f32 %v1286_v22, 0.0 }
 0x206   : > { %v1202_v25 = vpop.f32.mrb[38].mxu0  ;;  %v1291_v26 = vpop.f32.mrb[38].mxu1  ;;  %3425 = vmatprep.subr.bf16.mxu0 %v3424_v14  ;;  %3433 = vmatprep.subr.bf16.mxu1 %v3432_v17  ;;  %v1863_v38 = vmax.f32 %v1199_v23, 0.0  ;;  %v1865_v39 = vmax.f32 %v1288_v24, 0.0 }
 0x207   : > { %v1204_v27 = vpop.f32.mrb[39].mxu0  ;;  %v1293_v28 = vpop.f32.mrb[39].mxu1  ;;  %3427 = vmatpush1.bf16.msra.mxu0 %v3426_v10  ;;  %3435 = vmatpush1.bf16.msra.mxu1 %v3434_v13  ;;  %v1203_v29 = vadd.f32 %v1202_v25, %v4204_v18  ;;  %v1292_v30 = vadd.f32 %v1291_v26, %v4204_v18 }
 0x208   : > { %v1205_v31 = vadd.f32 %v1204_v27, %v4204_v18  ;;  %v1294_v32 = vadd.f32 %v1293_v28, %v4204_v18 }
 0x209   : > { %v1878_v35 = vmax.f32 %v1203_v29, 0.0  ;;  %v1880_v37 = vmax.f32 %v1292_v30, 0.0 }
 0x20a   : > { %v1879_v40 = vmax.f32 %v1205_v31, 0.0  ;;  %v1881_v41 = vmax.f32 %v1294_v32, 0.0 }
 0x20b   : > { %v1362_v42 = vpop.f32.mrb[40].mxu0  ;;  %v1451_v44 = vpop.f32.mrb[40].mxu1  ;;  %v3430_v45 = vpack.c.bf16 %v1878_v35, %v1862_v33  ;;  %v3438_v46 = vpack.c.bf16 %v1880_v37, %v1864_v34 }
 0x20c   : > { %v3428_v47 = vpack.c.bf16 %v1879_v40, %v1863_v38  ;;  %v3436_v2 = vpack.c.bf16 %v1881_v41, %v1865_v39  ;;  %v1364_v3 = vpop.f32.mrb[41].mxu0  ;;  %v1453_v4 = vpop.f32.mrb[41].mxu1  ;;  %v1363_v6 = vadd.f32 %v1362_v42, %v4188_v1  ;;  %v1452_v8 = vadd.f32 %v1451_v44, %v4188_v1 }
 0x20d   : > { %v1365_v9 = vadd.f32 %v1364_v3, %v4188_v1  ;;  %v1454_v12 = vadd.f32 %v1453_v4, %v4188_v1 }
 0x20e   : > { %3429 = vmatprep.subr.bf16.mxu0 %v3428_v47  ;;  %3437 = vmatprep.subr.bf16.mxu1 %v3436_v2  ;;  %v1834_v52 = vmax.f32 %v1363_v6, 0.0  ;;  %v1836_v53 = vmax.f32 %v1452_v8, 0.0 }
 0x20f   : > { %v1368_v15 = vpop.f32.mrb[42].mxu0  ;;  %v1457_v16 = vpop.f32.mrb[42].mxu1  ;;  %3431 = vmatpush1.bf16.msra.mxu0 %v3430_v45  ;;  %3439 = vmatpush1.bf16.msra.mxu1 %v3438_v46  ;;  %v1835_v56 = vmax.f32 %v1365_v9, 0.0  ;;  %v1837_v57 = vmax.f32 %v1454_v12, 0.0 }
 0x210   : > { %v1369_v43 = vadd.f32 %v1368_v15, %v4192_v7  ;;  %v1458_v58 = vadd.f32 %v1457_v16, %v4192_v7  ;;  %v1370_v48 = vpop.f32.mrb[43].mxu0  ;;  %v1459_v49 = vpop.f32.mrb[43].mxu1 }
 0x211   : > { %v1371_v50 = vadd.f32 %v1370_v48, %v4192_v7  ;;  %v1460_v51 = vadd.f32 %v1459_v49, %v4192_v7 }
 0x212   : > { %v1850_v54 = vmax.f32 %v1369_v43, 0.0  ;;  %v1852_v55 = vmax.f32 %v1458_v58, 0.0  ;;  %3345 = vmatmul.mubr.msk.f32.vlgmr.msra.gmra.mrb[64].mxu0 %vm1105_vm1, %v4221_v19  ;;  %3346 = vmatmul.mubr.msk.f32.vlgmr.msra.gmra.mrb[64].mxu1 %vm1105_vm1, %v4221_v19 }
 0x213   : > { %v1851_v59 = vmax.f32 %v1371_v50, 0.0  ;;  %v1853_v60 = vmax.f32 %v1460_v51, 0.0  ;;  %v1374_v61 = vpop.f32.mrb[44].mxu0  ;;  %v1463_v62 = vpop.f32.mrb[44].mxu1  ;;  %2110 = vmatprep.mubr.f32.mxu0 %v3707_v0  ;;  %2181 = vmatprep.mubr.f32.mxu1 %v3707_v0 }
 0x214   : > { %v3442_v63 = vpack.c.bf16 %v1850_v54, %v1834_v52  ;;  %v3450_v5 = vpack.c.bf16 %v1852_v55, %v1836_v53  ;;  %v1376_v10 = vpop.f32.mrb[45].mxu0  ;;  %v1465_v13 = vpop.f32.mrb[45].mxu1  ;;  %v1375_v20 = vadd.f32 %v1374_v61, %v4196_v11  ;;  %v1464_v22 = vadd.f32 %v1463_v62, %v4196_v11 }
 0x215   : > { %v3440_v14 = vpack.c.bf16 %v1851_v59, %v1835_v56  ;;  %v3448_v17 = vpack.c.bf16 %v1853_v60, %v1837_v57  ;;  %v1377_v23 = vadd.f32 %v1376_v10, %v4196_v11  ;;  %v1466_v24 = vadd.f32 %v1465_v13, %v4196_v11 }
 0x216   : > { %v1866_v33 = vmax.f32 %v1375_v20, 0.0  ;;  %v1868_v34 = vmax.f32 %v1464_v22, 0.0 }
 0x217   : > { %v1380_v25 = vpop.f32.mrb[46].mxu0  ;;  %v1469_v26 = vpop.f32.mrb[46].mxu1  ;;  %3441 = vmatprep.subr.bf16.mxu0 %v3440_v14  ;;  %3449 = vmatprep.subr.bf16.mxu1 %v3448_v17  ;;  %v1867_v38 = vmax.f32 %v1377_v23, 0.0  ;;  %v1869_v39 = vmax.f32 %v1466_v24, 0.0 }
 0x218   : > { %v1381_v27 = vadd.f32 %v1380_v25, %v4204_v18  ;;  %v1470_v28 = vadd.f32 %v1469_v26, %v4204_v18  ;;  %v1382_v29 = vpop.f32.mrb[47].mxu0  ;;  %v1471_v30 = vpop.f32.mrb[47].mxu1  ;;  %3443 = vmatpush1.bf16.msra.mxu0 %v3442_v63  ;;  %3451 = vmatpush1.bf16.msra.mxu1 %v3450_v5 }
 0x219   : > { %v1383_v31 = vadd.f32 %v1382_v29, %v4204_v18  ;;  %v1472_v32 = vadd.f32 %v1471_v30, %v4204_v18 }
 0x21a   : > { %v1882_v35 = vmax.f32 %v1381_v27, 0.0  ;;  %v1884_v37 = vmax.f32 %v1470_v28, 0.0 }
 0x21b   : > { %v1883_v40 = vmax.f32 %v1383_v31, 0.0  ;;  %v1885_v41 = vmax.f32 %v1472_v32, 0.0  ;;  %v1540_v42 = vpop.f32.mrb[48].mxu0  ;;  %v1629_v44 = vpop.f32.mrb[48].mxu1 }
 0x21c   : > { %v3446_v45 = vpack.c.bf16 %v1882_v35, %v1866_v33  ;;  %v3454_v46 = vpack.c.bf16 %v1884_v37, %v1868_v34  ;;  %v1542_v47 = vpop.f32.mrb[49].mxu0  ;;  %v1631_v2 = vpop.f32.mrb[49].mxu1  ;;  %v1541_v6 = vadd.f32 %v1540_v42, %v4188_v1  ;;  %v1630_v8 = vadd.f32 %v1629_v44, %v4188_v1 }
 0x21d   : > { %v3444_v3 = vpack.c.bf16 %v1883_v40, %v1867_v38  ;;  %v3452_v4 = vpack.c.bf16 %v1885_v41, %v1869_v39  ;;  %v1543_v9 = vadd.f32 %v1542_v47, %v4188_v1  ;;  %v1632_v12 = vadd.f32 %v1631_v2, %v4188_v1 }
 0x21e   : > { %v1838_v52 = vmax.f32 %v1541_v6, 0.0  ;;  %v1840_v53 = vmax.f32 %v1630_v8, 0.0 }
 0x21f   : > { %v1546_v15 = vpop.f32.mrb[50].mxu0  ;;  %v1635_v16 = vpop.f32.mrb[50].mxu1  ;;  %3445 = vmatprep.subr.bf16.mxu0 %v3444_v3  ;;  %3453 = vmatprep.subr.bf16.mxu1 %v3452_v4  ;;  %v1839_v56 = vmax.f32 %v1543_v9, 0.0  ;;  %v1841_v57 = vmax.f32 %v1632_v12, 0.0 }
 0x220   : > { %v1547_v43 = vadd.f32 %v1546_v15, %v4192_v7  ;;  %v1636_v58 = vadd.f32 %v1635_v16, %v4192_v7  ;;  %v1548_v48 = vpop.f32.mrb[51].mxu0  ;;  %v1637_v49 = vpop.f32.mrb[51].mxu1  ;;  %3447 = vmatpush1.bf16.msra.mxu0 %v3446_v45  ;;  %3455 = vmatpush1.bf16.msra.mxu1 %v3454_v46 }
 0x221   : > { %v1549_v50 = vadd.f32 %v1548_v48, %v4192_v7  ;;  %v1638_v51 = vadd.f32 %v1637_v49, %v4192_v7 }
 0x222   : > { %v1854_v54 = vmax.f32 %v1547_v43, 0.0  ;;  %v1856_v55 = vmax.f32 %v1636_v58, 0.0 }
 0x223   : > { %v1855_v59 = vmax.f32 %v1549_v50, 0.0  ;;  %v1857_v60 = vmax.f32 %v1638_v51, 0.0  ;;  %v1552_v61 = vpop.f32.mrb[52].mxu0  ;;  %v1641_v62 = vpop.f32.mrb[52].mxu1  ;;  %3347 = vmatmul.mubr.msk.f32.vlgmr.msra.gmra.mrb[66].mxu0 %vm1105_vm1, %v4221_v19  ;;  %3348 = vmatmul.mubr.msk.f32.vlgmr.msra.gmra.mrb[66].mxu1 %vm1105_vm1, %v4221_v19 }
 0x224   : > { %v3458_v63 = vpack.c.bf16 %v1854_v54, %v1838_v52  ;;  %v3466_v5 = vpack.c.bf16 %v1856_v55, %v1840_v53  ;;  %v1554_v10 = vpop.f32.mrb[53].mxu0  ;;  %v1643_v13 = vpop.f32.mrb[53].mxu1  ;;  %2252 = vmatprep.mubr.f32.mxu0 %v3707_v0  ;;  %2323 = vmatprep.mubr.f32.mxu1 %v3707_v0  ;;  %v1553_v20 = vadd.f32 %v1552_v61, %v4196_v11 }
 0x225   : > { %v3456_v14 = vpack.c.bf16 %v1855_v59, %v1839_v56  ;;  %v3464_v17 = vpack.c.bf16 %v1857_v60, %v1841_v57  ;;  %v1642_v22 = vadd.f32 %v1641_v62, %v4196_v11  ;;  %v1555_v23 = vadd.f32 %v1554_v10, %v4196_v11 }
 0x226   : > { %v1644_v24 = vadd.f32 %v1643_v13, %v4196_v11  ;;  %v1870_v33 = vmax.f32 %v1553_v20, 0.0 }
 0x227   : > { %v1558_v25 = vpop.f32.mrb[54].mxu0  ;;  %v1647_v26 = vpop.f32.mrb[54].mxu1  ;;  %3457 = vmatprep.subr.bf16.mxu0 %v3456_v14  ;;  %3465 = vmatprep.subr.bf16.mxu1 %v3464_v17  ;;  %v1872_v34 = vmax.f32 %v1642_v22, 0.0  ;;  %v1871_v38 = vmax.f32 %v1555_v23, 0.0 }
 0x228   : > { %v1559_v27 = vadd.f32 %v1558_v25, %v4204_v18  ;;  %v1648_v28 = vadd.f32 %v1647_v26, %v4204_v18  ;;  %v1560_v29 = vpop.f32.mrb[55].mxu0  ;;  %v1649_v30 = vpop.f32.mrb[55].mxu1  ;;  %3459 = vmatpush1.bf16.msra.mxu0 %v3458_v63  ;;  %3467 = vmatpush1.bf16.msra.mxu1 %v3466_v5  ;;  %v1873_v39 = vmax.f32 %v1644_v24, 0.0 }
 0x229   : > { %v1561_v31 = vadd.f32 %v1560_v29, %v4204_v18  ;;  %v1650_v32 = vadd.f32 %v1649_v30, %v4204_v18 }
 0x22a   : > { %v1886_v35 = vmax.f32 %v1559_v27, 0.0  ;;  %v1888_v37 = vmax.f32 %v1648_v28, 0.0 }
 0x22b   : > { %v1887_v40 = vmax.f32 %v1561_v31, 0.0  ;;  %v1889_v41 = vmax.f32 %v1650_v32, 0.0  ;;  %v1718_v42 = vpop.f32.mrb[56].mxu0  ;;  %v1807_v44 = vpop.f32.mrb[56].mxu1 }
 0x22c   : > { %v3462_v45 = vpack.c.bf16 %v1886_v35, %v1870_v33  ;;  %v3470_v46 = vpack.c.bf16 %v1888_v37, %v1872_v34  ;;  %v1720_v47 = vpop.f32.mrb[57].mxu0  ;;  %v1809_v2 = vpop.f32.mrb[57].mxu1  ;;  %v1719_v6 = vadd.f32 %v1718_v42, %v4188_v1  ;;  %v1808_v8 = vadd.f32 %v1807_v44, %v4188_v1 }
 0x22d   : > { %v3460_v3 = vpack.c.bf16 %v1887_v40, %v1871_v38  ;;  %v3468_v4 = vpack.c.bf16 %v1889_v41, %v1873_v39  ;;  %v1721_v9 = vadd.f32 %v1720_v47, %v4188_v1  ;;  %v1810_v12 = vadd.f32 %v1809_v2, %v4188_v1  ;;  %v4298_v47 = vld [vmem:[%s3856_s7 + $0x8] sm:$0xff] }
 0x22e   : > { %v1842_v52 = vmax.f32 %v1719_v6, 0.0  ;;  %v1844_v53 = vmax.f32 %v1808_v8, 0.0 }
 0x22f   : > { %v1724_v15 = vpop.f32.mrb[58].mxu0  ;;  %v1813_v16 = vpop.f32.mrb[58].mxu1  ;;  %3461 = vmatprep.subr.bf16.mxu0 %v3460_v3  ;;  %3469 = vmatprep.subr.bf16.mxu1 %v3468_v4  ;;  %v1843_v55 = vmax.f32 %v1721_v9, 0.0  ;;  %v1845_v56 = vmax.f32 %v1810_v12, 0.0  ;;  %v4312_v12 = vld [vmem:[%s3856_s7 + $0x10] sm:$0xff] }
 0x230   : > { %v1725_v43 = vadd.f32 %v1724_v15, %v4192_v7  ;;  %v1814_v58 = vadd.f32 %v1813_v16, %v4192_v7  ;;  %v1726_v48 = vpop.f32.mrb[59].mxu0  ;;  %v1815_v49 = vpop.f32.mrb[59].mxu1  ;;  %3463 = vmatpush1.bf16.msra.mxu0 %v3462_v45  ;;  %3471 = vmatpush1.bf16.msra.mxu1 %v3470_v46 }
 0x231   : > { %v1727_v50 = vadd.f32 %v1726_v48, %v4192_v7  ;;  %v1816_v51 = vadd.f32 %v1815_v49, %v4192_v7  ;;  %v2549_v45 = vpop.permute.xlu1 %2548 }
 0x232   : > { %v1858_v54 = vmax.f32 %v1725_v43, 0.0  ;;  %v1860_v1 = vmax.f32 %v1814_v58, 0.0  ;;  %v2551_v2 = vsub.f32 %v2549_v45, %v4298_v47  ;;  %v4318_v58 = vld [vmem:[%s3856_s7 + $0x18] sm:$0xff] }
 0x233   : > { %v1859_v57 = vmax.f32 %v1727_v50, 0.0  ;;  %v1861_v59 = vmax.f32 %v1816_v51, 0.0  ;;  %v1730_v60 = vpop.f32.mrb[60].mxu0  ;;  %v1819_v61 = vpop.f32.mrb[60].mxu1  ;;  %3349 = vmatmul.mubr.msk.f32.vlgmr.msra.gmra.mrb[68].mxu0 %vm1105_vm1, %v4221_v19  ;;  %3350 = vmatmul.mubr.msk.f32.vlgmr.msra.gmra.mrb[68].mxu1 %vm1105_vm1, %v4221_v19 }
 0x234   : > { %v3474_v62 = vpack.c.bf16 %v1858_v54, %v1842_v52  ;;  %v3482_v63 = vpack.c.bf16 %v1860_v1, %v1844_v53  ;;  %v1732_v5 = vpop.f32.mrb[61].mxu0  ;;  %v1821_v7 = vpop.f32.mrb[61].mxu1  ;;  %2394 = vmatprep.mubr.f32.mxu0 %v3707_v0  ;;  %2465 = vmatprep.mubr.f32.mxu1 %v3707_v0  ;;  %v1731_v14 = vadd.f32 %v1730_v60, %v4196_v11  ;;  %v4305_v6 = vmax.f32 %v2551_v2, 0.0  ;;  %v4332_v1 = vld [vmem:[%s3856_s7 + $0x20] sm:$0xff] }
 0x235   : > { %v3472_v10 = vpack.c.bf16 %v1859_v57, %v1843_v55  ;;  %v3480_v13 = vpack.c.bf16 %v1861_v59, %v1845_v56  ;;  %v1820_v17 = vadd.f32 %v1819_v61, %v4196_v11  ;;  %v1733_v20 = vadd.f32 %v1732_v5, %v4196_v11  ;;  %v4301_v3 = vpop.permute.xlu1 %2554 }
 0x236   : > { %v1822_v22 = vadd.f32 %v1821_v7, %v4196_v11  ;;  %v1874_v30 = vmax.f32 %v1731_v14, 0.0  ;;  %v4348_v7 = vld [vmem:[%s3856_s7 + $0x28] sm:$0xff] }
 0x237   : > { %v1736_v23 = vpop.f32.mrb[62].mxu0  ;;  %v1825_v24 = vpop.f32.mrb[62].mxu1  ;;  %3473 = vmatprep.subr.bf16.mxu0 %v3472_v10  ;;  %3481 = vmatprep.subr.bf16.mxu1 %v3480_v13  ;;  %v1876_v31 = vmax.f32 %v1820_v17, 0.0  ;;  %v1875_v33 = vmax.f32 %v1733_v20, 0.0  ;;  %v4352_v17 = vld [vmem:[%s3856_s7 + $0x38] sm:$0xff] }
 0x238   : > { %v1737_v25 = vadd.f32 %v1736_v23, %v4204_v18  ;;  %v1826_v26 = vadd.f32 %v1825_v24, %v4204_v18  ;;  %v1738_v27 = vpop.f32.mrb[63].mxu0  ;;  %v1827_v28 = vpop.f32.mrb[63].mxu1  ;;  %3475 = vmatpush1.bf16.msra.mxu0 %v3474_v62  ;;  %3483 = vmatpush1.bf16.msra.mxu1 %v3482_v63  ;;  %v1877_v34 = vmax.f32 %v1822_v22, 0.0  ;;  %v4344_v63 = vld [vmem:[%s3856_s7] sm:$0xff]  ;;  %v4356_v22 = vld [vmem:[%s3856_s7 + $0x30] sm:$0xff] }
 0x239   : > { %v1739_v0 = vadd.f32 %v1738_v27, %v4204_v18  ;;  %v1828_v29 = vadd.f32 %v1827_v28, %v4204_v18  ;;  %v4289_v18 = vpop.permute.xlu0 %1898 }
 0x23a   : > { %v1890_v32 = vmax.f32 %v1737_v25, 0.0  ;;  %v1892_v11 = vmax.f32 %v1826_v26, 0.0 }
 0x23b   : > { %v1891_v35 = vmax.f32 %v1739_v0, 0.0  ;;  %v1893_v37 = vmax.f32 %v1828_v29, 0.0 }
 0x23c   : > { %v3478_v38 = vpack.c.bf16 %v1890_v32, %v1874_v30  ;;  %v3486_v39 = vpack.c.bf16 %v1892_v11, %v1876_v31  ;;  %v4378_v11 = vld [vmem:[%s3856_s7 + $0x40] sm:$0xff] }
 0x23d   : > { %v3476_v40 = vpack.c.bf16 %v1891_v35, %v1875_v33  ;;  %v3484_v41 = vpack.c.bf16 %v1893_v37, %v1877_v34  ;;  %v4291_v42 = vpop.permute.xlu0 %2506 }
 0x23f   : > { %3477 = vmatprep.subr.bf16.mxu0 %v3476_v40  ;;  %3485 = vmatprep.subr.bf16.mxu1 %v3484_v41  ;;  %v4388_v40 = vld [vmem:[%s3856_s7 + $0x50] sm:$0xff] }
 0x240   : > { %3479 = vmatpush1.bf16.msra.mxu0 %v3478_v38  ;;  %3487 = vmatpush1.bf16.msra.mxu1 %v3486_v39  ;;  %v4384_v38 = vld [vmem:[%s3856_s7 + $0x48] sm:$0xff] }
 0x241   : > { %v4293_v44 = vpop.permute.xlu0 %2598 }
 0x243   : > { %3351 = vmatmul.mubr.msk.f32.vlgmr.msra.gmra.mrb[70].mxu0 %vm1105_vm1, %v4221_v19  ;;  %3352 = vmatmul.mubr.msk.f32.vlgmr.msra.gmra.mrb[70].mxu1 %vm1105_vm1, %v4221_v19  ;;  %v2593_v19 = vpop.permute.xlu1 %2592 }
 0x244   : > { %v2595_v15 = vsub.f32 %v2593_v19, %v4312_v12 }
 0x245   : > { %v4295_v46 = vpop.permute.xlu0 %2642 }
 0x246   : > { %v4321_v49 = vmax.f32 %v2595_v15, 0.0 }
 0x247   : > { %v2637_v16 = vpop.permute.xlu1 %2636 }
 0x248   : > { %v2639_v48 = vsub.f32 %v2637_v16, %v4318_v58 }
 0x249   : > { %v4303_v4 = vpop.permute.xlu0 %2774 }
 0x24a   : > { %v4323_v50 = vmax.f32 %v2639_v48, 0.0  ;;  %v4829_v48 = vlaneseq }
 0x24b   : > { %v2681_v52 = vpop.permute.xlu1 %2680 }
 0x24c   : > { %v2683_v55 = vsub.f32 %v2681_v52, %v4332_v1  ;;  %v2479_v52 = vrot.slane %v4344_v63, 4 }
 0x24d   : > { %v4307_v8 = vpop.permute.xlu0 %2862 }
 0x24e   : > { %4856 = vst [vmem:[#allocation8_spill] sm:$0xff] %v4307_v8  ;;  %v4337_v59 = vmax.f32 %v2683_v55, 0.0  ;;  %v2572_v55 = vrot.slane %v4312_v12, 4 }
 0x24f   : > { %v4335_v56 = vpop.permute.xlu1 %2686 }
 0x251   : > { %v4315_v43 = vpop.permute.xlu0 %2906 }
 0x252   : > { %4857 = vst [vmem:[#allocation9_spill] sm:$0xff] %v4315_v43 }
 0x253   : > { %v4339_v60 = vpop.permute.xlu1 %2730 }
 0x255   : > { %v4327_v53 = vpop.permute.xlu0 %2950 }
 0x256   : > { %4858 = vst [vmem:[#allocation10_spill] sm:$0xff] %v4327_v53 }
 0x257   : > { %v2813_v13 = vpop.permute.xlu1 %2812 }
 0x258   : > { %v2815_v20 = vsub.f32 %v2813_v13, %v4352_v17  ;;  %v4406_v13 = vand.u32 127, %v4829_v48 }
 0x259   : > { %v2501_v57 = vpop.permute.xlu0 %2500 }
 0x25a   : > { %v2503_v5 = vsub.f32 %v2501_v57, %v4344_v63  ;;  %v4363_v26 = vmax.f32 %v2815_v20, 0.0  ;;  %vm2474_vm2 = vcmp.lt.s32.totalorder %v4406_v13, 8  ;;  %vm2475_vm4 = vcmp.ge.s32.totalorder %v4406_v13, 8 }
 0x25b   : > { %v4371_v29 = vpop.permute.xlu1 %2818  ;;  %vm2476_vm5 = vcmp.lt.s32.totalorder %v4406_v13, 9 }
 0x25c   : > { %v4359_v24 = vmax.f32 %v2503_v5, 0.0  ;;  %4859 = vst [vmem:[#allocation11_spill] sm:$0xff] %v4363_v26  ;;  %4860 = vst [vmem:[#allocation12_spill] sm:$0xff] %v4371_v29  ;;  %v2528_v5 = vrot.slane %v4298_v47, 4 }
 0x25d   : > { %v2725_v61 = vpop.permute.xlu0 %2724  ;;  %vm4591_vm6 = vmand %vm2475_vm4, %vm2476_vm5 }
 0x25e   : > { %v2727_v10 = vsub.f32 %v2725_v61, %v4348_v7 }
 0x25f   : > { %v2901_v35 = vpop.permute.xlu1 %2900 }
 0x260   : > { %v4361_v25 = vmax.f32 %v2727_v10, 0.0  ;;  %v2903_v39 = vsub.f32 %v2901_v35, %v4384_v38  ;;  %v2616_v10 = vrot.slane %v4318_v58, 4 }
 0x261   : > { %v2769_v14 = vpop.permute.xlu0 %2768 }
 0x262   : > { %v2771_v23 = vsub.f32 %v2769_v14, %v4356_v22  ;;  %v4393_v2 = vmax.f32 %v2903_v39, 0.0 }
 0x264   : > { %v4365_v27 = vmax.f32 %v2771_v23, 0.0  ;;  %4862 = vst [vmem:[#allocation14_spill] sm:$0xff] %v4393_v2 }
 0x265   : > { %v2857_v30 = vpop.permute.xlu0 %2856 }
 0x266   : > { %v2859_v33 = vsub.f32 %v2857_v30, %v4378_v11 }
 0x268   : > { %v4381_v34 = vmax.f32 %v2859_v33, 0.0 }
 0x269   : > { %v2945_v37 = vpop.permute.xlu0 %2944 }
 0x26a   : > { %4861 = vst [vmem:[#allocation13_spill] sm:$0xff] %v4381_v34  ;;  %v2947_v41 = vsub.f32 %v2945_v37, %v4388_v40 }
 0x26c   : > { %v4395_v19 = vmax.f32 %v2947_v41, 0.0 }
 0x26e   : > { %4863 = vst [vmem:[#allocation15_spill] sm:$0xff] %v4395_v19 }
 0x2e5   : > { %v1970_v57 = vpop.f32.mrb[64].mxu0  ;;  %v2041_v61 = vpop.f32.mrb[64].mxu1 }
 0x2e6   : > { %v1971_v14 = vadd.f32 %v1970_v57, %v4289_v18  ;;  %v2042_v20 = vadd.f32 %v2041_v61, %v4289_v18  ;;  %v1972_v23 = vpop.f32.mrb[65].mxu0  ;;  %v2043_v30 = vpop.f32.mrb[65].mxu1 }
 0x2e7   : > { %v1973_v33 = vadd.f32 %v1972_v23, %v4289_v18  ;;  %v2044_v35 = vadd.f32 %v2043_v30, %v4289_v18 }
 0x2e8   : > { %v2481_v37 = vsub.f32 %v1971_v14, %v2479_v52  ;;  %v2574_v39 = vsub.f32 %v2042_v20, %v2572_v55  ;;  %v2484_v45 = vrot.slane %v1971_v14, 1  ;;  %v2577_v0 = vrot.slane %v2042_v20, 1 }
 0x2e9   : > { %v2530_v41 = vsub.f32 %v1973_v33, %v2528_v5  ;;  %v2618_v15 = vsub.f32 %v2044_v35, %v2616_v10  ;;  %v2533_v57 = vrot.slane %v1973_v33, 1  ;;  %v2621_v61 = vrot.slane %v2044_v35, 1 }
 0x2ea   : > { %v2482_v16 = vmax.f32 %v2481_v37, 0.0  ;;  %v2575_v32 = vmax.f32 %v2574_v39, 0.0  ;;  %v2704_v10 = vrot.slane %v4348_v7, 4  ;;  %v2792_v14 = vrot.slane %v4352_v17, 4 }
 0x2eb   : > { %v2531_v31 = vmax.f32 %v2530_v41, 0.0  ;;  %v2619_v62 = vmax.f32 %v2618_v15, 0.0 }
 0x2ec   : > { %v2579_v54 = vmin.f32 %v2575_v32, %v2577_v0  ;;  %v2486_v9 = vmin.f32 %v2482_v16, %v2484_v45  ;;  %v2748_v32 = vrot.slane %v4356_v22, 4 }
 0x2ed   : > { %v2535_v23 = vmin.f32 %v2531_v31, %v2533_v57  ;;  %v2623_v48 = vmin.f32 %v2619_v62, %v2621_v61  ;;  %v2660_v31 = vrot.slane %v4332_v1, 4 }
 0x2ee   : > { %v4415_v52 = vsel %vm2474_vm2, %v2579_v54, 0.0  ;;  %v4419_v55 = vsel %vm2474_vm2, %v2486_v9, 0.0 }
 0x2ef   : > { %v2581_v5 = vsel %vm2488_vm3, %v4415_v52, 0.0  ;;  %v2489_v15 = vsel %vm2488_vm3, %v4419_v55, 0.0  ;;  %v4427_v0 = vsel %vm2474_vm2, %v2535_v23, 0.0  ;;  %v4431_v54 = vsel %vm2474_vm2, %v2623_v48, 0.0 }
 0x2f0   : > { %2582 = vadd.xlane.f32.xlu0 %v2581_v5  ;;  %2490 = vadd.xlane.f32.xlu1 %v2489_v15  ;;  %v2537_v9 = vsel %vm2488_vm3, %v4427_v0, 0.0  ;;  %v2625_v62 = vsel %vm2488_vm3, %v4431_v54, 0.0 }
 0x2f4   : > { %2538 = vadd.xlane.f32.xlu0 %v2537_v9  ;;  %2626 = vadd.xlane.f32.xlu1 %v2625_v62 }
 0x2f6   : > { %v2112_v45 = vpop.f32.mrb[66].mxu0  ;;  %v2183_v16 = vpop.f32.mrb[66].mxu1 }
 0x2f7   : > { %v2113_v48 = vadd.f32 %v2112_v45, %v4289_v18  ;;  %v2184_v20 = vadd.f32 %v2183_v16, %v4289_v18  ;;  %v2114_v30 = vpop.f32.mrb[67].mxu0  ;;  %v2185_v33 = vpop.f32.mrb[67].mxu1 }
 0x2f8   : > { %v2115_v35 = vadd.f32 %v2114_v30, %v4289_v18  ;;  %v2186_v37 = vadd.f32 %v2185_v33, %v4289_v18 }
 0x2f9   : > { %v2662_v39 = vsub.f32 %v2113_v48, %v2660_v31  ;;  %v2750_v41 = vsub.f32 %v2184_v20, %v2748_v32  ;;  %v2665_v5 = vrot.slane %v2113_v48, 1  ;;  %v2753_v9 = vrot.slane %v2184_v20, 1 }
 0x2fa   : > { %v2706_v57 = vsub.f32 %v2115_v35, %v2704_v10  ;;  %v2794_v61 = vsub.f32 %v2186_v37, %v2792_v14  ;;  %v2709_v28 = vrot.slane %v2115_v35, 1  ;;  %v2797_v45 = vrot.slane %v2186_v37, 1  ;;  %v4473_v37 = vld [vmem:[%s3856_s7 + $0x58] sm:$0xff] }
 0x2fb   : > { %v2663_v23 = vmax.f32 %v2662_v39, 0.0  ;;  %v2751_v15 = vmax.f32 %v2750_v41, 0.0  ;;  %v2836_v48 = vrot.slane %v4378_v11, 4  ;;  %v2924_v20 = vrot.slane %v4388_v40, 4 }
 0x2fc   : > { %v2707_v62 = vmax.f32 %v2706_v57, 0.0  ;;  %v2795_v51 = vmax.f32 %v2794_v61, 0.0 }
 0x2fd   : > { %v2667_v21 = vmin.f32 %v2663_v23, %v2665_v5  ;;  %v2755_v16 = vmin.f32 %v2751_v15, %v2753_v9 }
 0x2fe   : > { %v2799_v36 = vmin.f32 %v2795_v51, %v2797_v45  ;;  %v2711_v43 = vmin.f32 %v2707_v62, %v2709_v28 }
 0x2ff   : > { %v4447_v30 = vsel %vm2474_vm2, %v2667_v21, 0.0  ;;  %v4451_v31 = vsel %vm2474_vm2, %v2755_v16, 0.0 }
 0x300   : > { %v2669_v32 = vsel %vm2488_vm3, %v4447_v30, 0.0  ;;  %v2757_v10 = vsel %vm2488_vm3, %v4451_v31, 0.0  ;;  %v4459_v51 = vsel %vm2474_vm2, %v2799_v36, 0.0  ;;  %v4463_v21 = vsel %vm2474_vm2, %v2711_v43, 0.0 }
 0x301   : > { %2670 = vadd.xlane.f32.xlu0 %v2669_v32  ;;  %2758 = vadd.xlane.f32.xlu1 %v2757_v10  ;;  %4864 = vst [vmem:[#allocation16_spill] sm:$0xff] %v4459_v51  ;;  %4865 = vst [vmem:[#allocation17_spill] sm:$0xff] %v4463_v21  ;;  %v2801_v28 = vsel %vm2488_vm3, %v4459_v51, 0.0  ;;  %v2713_v14 = vsel %vm2488_vm3, %v4463_v21, 0.0  ;;  %v2880_v36 = vrot.slane %v4384_v38, 4  ;;  %v2968_v43 = vrot.slane %v4473_v37, 4 }
 0x305   : > { %2802 = vadd.xlane.f32.xlu0 %v2801_v28  ;;  %2714 = vadd.xlane.f32.xlu1 %v2713_v14 }
 0x306   : > { %v2254_v33 = vpop.f32.mrb[68].mxu0  ;;  %v2325_v35 = vpop.f32.mrb[68].mxu1 }
 0x307   : > { %v2255_v39 = vadd.f32 %v2254_v33, %v4289_v18  ;;  %v2326_v41 = vadd.f32 %v2325_v35, %v4289_v18  ;;  %v2256_v57 = vpop.f32.mrb[69].mxu0  ;;  %v2327_v61 = vpop.f32.mrb[69].mxu1 }
 0x308   : > { %v2257_v23 = vadd.f32 %v2256_v57, %v4289_v18  ;;  %v2328_v5 = vadd.f32 %v2327_v61, %v4289_v18 }
 0x309   : > { %v2838_v15 = vsub.f32 %v2255_v39, %v2836_v48  ;;  %v2926_v9 = vsub.f32 %v2326_v41, %v2924_v20  ;;  %v2841_v32 = vrot.slane %v2255_v39, 1  ;;  %v2929_v28 = vrot.slane %v2326_v41, 1 }
 0x30a   : > { %v2882_v62 = vsub.f32 %v2257_v23, %v2880_v36  ;;  %v2970_v45 = vsub.f32 %v2328_v5, %v2968_v43  ;;  %v2973_v2 = vrot.slane %v2328_v5, 1  ;;  %v2885_v8 = vrot.slane %v2257_v23, 1  ;;  %v4504_v23 = vld [vmem:[%s3856_s7 + $0x70] sm:$0xff] }
 0x30b   : > { %v2839_v16 = vmax.f32 %v2838_v15, 0.0  ;;  %v2927_v10 = vmax.f32 %v2926_v9, 0.0  ;;  %v4839_v39 = vmov 9   ;;  %v3100_v5 = vrot.slane %v4504_v23, 4  ;;  %v4512_v9 = vld [vmem:[%s3856_s7 + $0x68] sm:$0xff] }
 0x30c   : > { %v2971_v14 = vmax.f32 %v2970_v45, 0.0  ;;  %v2883_v53 = vmax.f32 %v2882_v62, 0.0  ;;  %3551 = vset.pattern.permute.xlu0 %v4839_v39  ;;  %v3056_v62 = vrot.slane %v4512_v9, 4  ;;  %v4516_v45 = vld [vmem:[%s3856_s7 + $0x78] sm:$0xff] }
 0x30d   : > { %v2843_v33 = vmin.f32 %v2839_v16, %v2841_v32  ;;  %v2931_v35 = vmin.f32 %v2927_v10, %v2929_v28  ;;  %v3144_v16 = vrot.slane %v4516_v45, 4 }
 0x30e   : > { %v2975_v19 = vmin.f32 %v2971_v14, %v2973_v2  ;;  %v2887_v43 = vmin.f32 %v2883_v53, %v2885_v8 }
 0x30f   : > { %v4482_v57 = vsel %vm2474_vm2, %v2843_v33, 0.0  ;;  %v4494_v2 = vsel %vm2474_vm2, %v2931_v35, 0.0 }
 0x310   : > { %4866 = vst [vmem:[#allocation18_spill] sm:$0xff] %v4482_v57  ;;  %v2845_v48 = vsel %vm2488_vm3, %v4482_v57, 0.0  ;;  %v4488_v20 = vsel %vm2474_vm2, %v2975_v19, 0.0  ;;  %4868 = vst [vmem:[#allocation20_spill] sm:$0xff] %v4494_v2  ;;  %v2933_v41 = vsel %vm2488_vm3, %v4494_v2, 0.0  ;;  %v4500_v19 = vld [vmem:[%s3856_s7 + $0x60] sm:$0xff] }
 0x311   : > { %4867 = vst [vmem:[#allocation19_spill] sm:$0xff] %v4488_v20  ;;  %2846 = vadd.xlane.f32.xlu1 %v2845_v48  ;;  %v2977_v36 = vsel %vm2488_vm3, %v4488_v20, 0.0  ;;  %v3012_v61 = vrot.slane %v4500_v19, 4  ;;  %v4509_v15 = vsel %vm2474_vm2, %v2887_v43, 0.0  ;;  %s3280_s7 = sshll.u32 %s3852_s26, 4 }
 0x312   : > { %2978 = vadd.xlane.f32.xlu0 %v2977_v36  ;;  %v2889_v48 = vsel %vm2488_vm3, %v4509_v15, 0.0  ;;  %s4627_s18 = scalar_lea.vmem [#allocation5], %s3280_s7 }
 0x313   : > { %s3202_s20 = sshll.u32 %s4627_s18, 4  ;;  %s4775_s20 = int_to_ptr.vmem [resolvable:$true] %s3202_s20 }
 0x314   : > { %s3638_s14 = scalar_lea.vmem %s4775_s20, 256  ;;  %p3645_p4 = scmp.lt.s32.totalorder %s4775_s20, %s3643_s17 }
 0x315   : > { %2934 = vadd.xlane.f32.xlu1 %v2933_v41  ;;  %p3639_p6 = scmp.ne.s32.totalorder %s4775_s20, %s3638_s14  ;;  %p3646_p9 = scmp.lt.s32.totalorder %s3644_s28, %s3638_s14 }
 0x316   : > { %v2396_v8 = vpop.f32.mrb[70].mxu0  ;;  %v2467_v53 = vpop.f32.mrb[70].mxu1 }
 0x317   : > { %v2397_v32 = vadd.f32 %v2396_v8, %v4289_v18  ;;  %v2468_v10 = vadd.f32 %v2467_v53, %v4289_v18  ;;  %v2398_v28 = vpop.f32.mrb[71].mxu0  ;;  %v2469_v14 = vpop.f32.mrb[71].mxu1  ;;  %p3640_p11 = pnand %p3639_p6, %p4901_p10  ;;  %p3647_p1 = por %p3646_p9, %p3645_p4 }
 0x318   : > { %v2399_v33 = vadd.f32 %v2398_v28, %v4289_v18  ;;  %v2470_v35 = vadd.f32 %v2469_v14, %v4289_v18 }
 0x319   : > { %v3014_v36 = vsub.f32 %v2397_v32, %v3012_v61  ;;  %v3102_v43 = vsub.f32 %v2468_v10, %v3100_v5  ;;  %2890 = vadd.xlane.f32.xlu1 %v2889_v48  ;;  %v3017_v2 = vrot.slane %v2397_v32, 1  ;;  %v3105_v8 = vrot.slane %v2468_v10, 1  ;;  %p3641_p12 = pneg %p3640_p11 }
 0x31a   : > { %v3058_v41 = vsub.f32 %v2399_v33, %v3056_v62  ;;  %v3146_v39 = vsub.f32 %v2470_v35, %v3144_v16  ;;  %v3061_v53 = vrot.slane %v2399_v33, 1  ;;  %v3149_v26 = vrot.slane %v2470_v35, 1 }
 0x31b   : > { %v3015_v20 = vmax.f32 %v3014_v36, 0.0  ;;  %v3103_v57 = vmax.f32 %v3102_v43, 0.0  ;;  %p3648_p3 = pnand %p3647_p1, %p3641_p12 }
 0x31c   : > { %v3059_v34 = vmax.f32 %v3058_v41, 0.0  ;;  %v3147_v21 = vmax.f32 %v3146_v39, 0.0 }
 0x31d   : > { %v3019_v51 = vmin.f32 %v3015_v20, %v3017_v2  ;;  %v3107_v29 = vmin.f32 %v3103_v57, %v3105_v8 }
 0x31e   : > { %v3063_v28 = vmin.f32 %v3059_v34, %v3061_v53  ;;  %v3151_v34 = vmin.f32 %v3147_v21, %v3149_v26  ;;  %v4552_v26 = vpop.permute.xlu0 %3032  ;;  %v4554_v21 = vpop.permute.xlu1 %2988 }
 0x31f   : > { %v4527_v18 = vsel %vm2474_vm2, %v3019_v51, 0.0  ;;  %v4539_v57 = vsel %vm2474_vm2, %v3107_v29, 0.0  ;;  %v4869_v29 = vmov 9  }
 0x320   : > { %v3021_v61 = vsel %vm2488_vm3, %v4527_v18, 0.0  ;;  %v4533_v5 = vsel %vm2474_vm2, %v3063_v28, 0.0  ;;  %v3109_v51 = vsel %vm2488_vm3, %v4539_v57, 0.0  ;;  %v4545_v20 = vsel %vm2474_vm2, %v3151_v34, 0.0 }
 0x321   : > { %3022 = vadd.xlane.f32.xlu1 %v3021_v61  ;;  %v3065_v62 = vsel %vm2488_vm3, %v4533_v5, 0.0  ;;  %v3153_v2 = vsel %vm2488_vm3, %v4545_v20, 0.0 }
 0x322   : > { %3066 = vadd.xlane.f32.xlu0 %v3065_v62 }
 0x325   : > { %3110 = vadd.xlane.f32.xlu1 %v3109_v51 }
 0x329   : > { %3154 = vadd.xlane.f32.xlu1 %v3153_v2 }
 0x33a   : > { %2994 = vperm.xlu1 %3550, %v4473_v37  }
 0x33e   : > { %3038 = vperm.xlu1 %3550, %v4500_v19  }
 0x342   : > { %3552 = vset.pattern.permute.xlu1 %v4869_v29 }
 0x37d   : > { %v2583_v39 = vpop.xlane.xlu0 %2582  ;;  %v2491_v16 = vpop.xlane.xlu1 %2490 }
 0x37e   : > { %v2584_v32 = vadd.f32 1e-15, %v2583_v39  ;;  %v2492_v10 = vadd.f32 1e-15, %v2491_v16 }
 0x380   : > { %3560 = vrcp.f32 %v2584_v32 }
 0x381   : > { %3562 = vrcp.f32 %v2492_v10  ;;  %v2539_v14 = vpop.xlane.xlu0 %2538  ;;  %v2627_v33 = vpop.xlane.xlu1 %2626 }
 0x382   : > { %v2540_v35 = vadd.f32 1e-15, %v2539_v14  ;;  %v2628_v48 = vadd.f32 1e-15, %v2627_v33 }
 0x384   : > { %3564 = vrcp.f32 %v2540_v35 }
 0x385   : > { %3566 = vrcp.f32 %v2628_v48 }
 0x38a   : > { %v3561_v36 = vpop.eup %3560 }
 0x38b   : > { %v3563_v43 = vpop.eup %3562  ;;  %v2587_v41 = vrot.slane %v3561_v36, 4 }
 0x38c   : > { %v2495_v8 = vrot.slane %v3563_v43, 4 }
 0x38d   : > { %v2589_v53 = vmul.f32 %v4312_v12, %v2587_v41 }
 0x38e   : > { %v3565_v28 = vpop.eup %3564  ;;  %v2671_v61 = vpop.xlane.xlu0 %2670  ;;  %v2497_v34 = vmul.f32 %v4344_v63, %v2495_v8 }
 0x38f   : > { %v2759_v62 = vpop.xlane.xlu1 %2758  ;;  %v3567_v51 = vpop.eup %3566  ;;  %v2543_v2 = vrot.slane %v3565_v28, 4  ;;  %v2672_v39 = vadd.f32 1e-15, %v2671_v61  ;;  %v2590_v32 = vmin.f32 %v2589_v53, 1.0 }
 0x390   : > { %v2760_v16 = vadd.f32 1e-15, %v2759_v62  ;;  %v2631_v10 = vrot.slane %v3567_v51, 4  ;;  %v2498_v14 = vmin.f32 %v2497_v34, 1.0 }
 0x391   : > { %3568 = vrcp.f32 %v2672_v39  ;;  %2604 = vperm.xlu1 %3552, %v2590_v32   ;;  %v2545_v33 = vmul.f32 %v4298_v47, %v2543_v2 }
 0x392   : > { %3570 = vrcp.f32 %v2760_v16  ;;  %v2803_v35 = vpop.xlane.xlu0 %2802  ;;  %2512 = vperm.xlu0 %3551, %v2498_v14   ;;  %v2633_v12 = vmul.f32 %v4318_v58, %v2631_v10 }
 0x393   : > { %v2715_v48 = vpop.xlane.xlu1 %2714  ;;  %v2804_v36 = vadd.f32 1e-15, %v2803_v35  ;;  %v2546_v63 = vmin.f32 %v2545_v33, 1.0 }
 0x394   : > { %v2716_v43 = vadd.f32 1e-15, %v2715_v48  ;;  %v2634_v41 = vmin.f32 %v2633_v12, 1.0 }
 0x395   : > { %3572 = vrcp.f32 %v2804_v36  ;;  %2560 = vperm.xlu1 %3552, %v2546_v63  }
 0x396   : > { %3574 = vrcp.f32 %v2716_v43  ;;  %2648 = vperm.xlu0 %3551, %v2634_v41  }
 0x39b   : > { %v3569_v8 = vpop.eup %3568 }
 0x39c   : > { %v3571_v53 = vpop.eup %3570  ;;  %v2675_v28 = vrot.slane %v3569_v8, 4  ;;  %v4870_v8 = vmov 10  }
 0x39d   : > { %v2763_v61 = vrot.slane %v3571_v53, 4 }
 0x39e   : > { %v2847_v62 = vpop.xlane.xlu1 %2846  ;;  %v2677_v47 = vmul.f32 %v4332_v1, %v2675_v28 }
 0x39f   : > { %v3573_v34 = vpop.eup %3572  ;;  %v2848_v51 = vadd.f32 1e-15, %v2847_v62  ;;  %v2765_v2 = vmul.f32 %v4356_v22, %v2763_v61  ;;  %v2979_v16 = vpop.xlane.xlu0 %2978 }
 0x3a0   : > { %v3575_v58 = vpop.eup %3574  ;;  %v2807_v39 = vrot.slane %v3573_v34, 4  ;;  %v2678_v32 = vmin.f32 %v2677_v47, 1.0  ;;  %v2980_v48 = vadd.f32 1e-15, %v2979_v16  ;;  %v4871_v34 = vmov 11  }
 0x3a1   : > { %v2719_v10 = vrot.slane %v3575_v58, 4  ;;  %3576 = vrcp.f32 %v2848_v51  ;;  %v2766_v14 = vmin.f32 %v2765_v2, 1.0 }
 0x3a2   : > { %v2935_v33 = vpop.xlane.xlu1 %2934  ;;  %2692 = vperm.xlu1 %3552, %v2678_v32   ;;  %v2809_v35 = vmul.f32 %v4352_v17, %v2807_v39 }
 0x3a3   : > { %v2936_v12 = vadd.f32 1e-15, %v2935_v33  ;;  %2780 = vperm.xlu0 %3551, %v2766_v14   ;;  %v2721_v1 = vmul.f32 %v4348_v7, %v2719_v10 }
 0x3a4   : > { %v2810_v36 = vmin.f32 %v2809_v35, 1.0 }
 0x3a5   : > { %3578 = vrcp.f32 %v2936_v12  ;;  %v2722_v43 = vmin.f32 %v2721_v1, 1.0 }
 0x3a6   : > { %v2891_v22 = vpop.xlane.xlu1 %2890  ;;  %3580 = vrcp.f32 %v2980_v48 }
 0x3a7   : > { %v2892_v63 = vadd.f32 1e-15, %v2891_v22  ;;  %2824 = vperm.xlu0 %3551, %v2810_v36   ;;  %2736 = vperm.xlu1 %3552, %v2722_v43  }
 0x3a9   : > { %3582 = vrcp.f32 %v2892_v63 }
 0x3ab   : > { %v3577_v41 = vpop.eup %3576  ;;  %3553 = vset.pattern.permute.xlu1 %v4870_v8 }
 0x3ac   : > { %v2851_v53 = vrot.slane %v3577_v41, 4  ;;  %3076 = vperm.xlu1 %3553, %v4512_v9  }
 0x3ae   : > { %v3023_v17 = vpop.xlane.xlu1 %3022  ;;  %v2853_v28 = vmul.f32 %v4378_v11, %v2851_v53 }
 0x3af   : > { %v3579_v61 = vpop.eup %3578  ;;  %v3024_v7 = vadd.f32 1e-15, %v3023_v17  ;;  %v3067_v47 = vpop.xlane.xlu0 %3066 }
 0x3b0   : > { %v2939_v62 = vrot.slane %v3579_v61, 4  ;;  %3554 = vset.pattern.permute.xlu1 %v4871_v34  ;;  %v2854_v51 = vmin.f32 %v2853_v28, 1.0  ;;  %v3581_v2 = vpop.eup %3580  ;;  %v3068_v32 = vadd.f32 1e-15, %v3067_v47 }
 0x3b1   : > { %3584 = vrcp.f32 %v3024_v7  ;;  %3082 = vperm.xlu1 %3554, %v4512_v9   ;;  %v2983_v14 = vrot.slane %v3581_v2, 4 }
 0x3b2   : > { %2868 = vperm.xlu0 %3551, %v2854_v51   ;;  %v3111_v58 = vpop.xlane.xlu1 %3110  ;;  %v2941_v39 = vmul.f32 %v4388_v40, %v2939_v62 }
 0x3b3   : > { %v3583_v16 = vpop.eup %3582  ;;  %v3112_v10 = vadd.f32 1e-15, %v3111_v58  ;;  %v2985_v40 = vmul.f32 %v4473_v37, %v2983_v14  ;;  %v4875_v14 = vmin.f32 %v4359_v24, %v4291_v42 }
 0x3b4   : > { %v2895_v11 = vrot.slane %v3583_v16, 4  ;;  %v2942_v33 = vmin.f32 %v2941_v39, 1.0 }
 0x3b5   : > { %3586 = vrcp.f32 %v3112_v10  ;;  %3555 = vset.pattern.permute.xlu1 %v4870_v8  ;;  %v2986_v22 = vmin.f32 %v2985_v40, 1.0 }
 0x3b6   : > { %3120 = vperm.xlu1 %3555, %v4504_v23   ;;  %2956 = vperm.xlu0 %3551, %v2942_v33   ;;  %v3155_v35 = vpop.xlane.xlu1 %3154  ;;  %v2897_v48 = vmul.f32 %v4384_v38, %v2895_v11  ;;  %3588 = vrcp.f32 %v3068_v32  ;;  %v2517_v11 = vsel %vm4591_vm6, %v4875_v14, 0.0 }
 0x3b7   : > { %v3156_v12 = vadd.f32 1e-15, %v3155_v35  ;;  %v2519_v24 = vrot.slane %v2517_v11, 4 }
 0x3b8   : > { %v2898_v1 = vmin.f32 %v2897_v48, 1.0 }
 0x3b9   : > { %3590 = vrcp.f32 %v3156_v12 }
 0x3ba   : > { %3556 = vset.pattern.permute.xlu1 %v4871_v34  ;;  %2912 = vperm.xlu0 %3551, %v2898_v1   ;;  %v4876_v1 = vlaneseq }
 0x3bb   : > { %v3585_v36 = vpop.eup %3584  ;;  %3126 = vperm.xlu1 %3556, %v4504_v23  }
 0x3bc   : > { %v3027_v43 = vrot.slane %v3585_v36, 4  ;;  %vm4607_vm7 = vcmp.lt.s32.totalorder %v4876_v1, 128 }
 0x3be   : > { %3000 = vperm.xlu0 %3551, %v2986_v22   ;;  %v3029_v63 = vmul.f32 %v4500_v19, %v3027_v43  ;;  %v4880_v22 = vmin.f32 %v4323_v50, %v4295_v46 }
 0x3bf   : > { %v3587_v41 = vpop.eup %3586  ;;  %3557 = vset.pattern.permute.xlu1 %v4870_v8 }
 0x3c0   : > { %v3115_v38 = vrot.slane %v3587_v41, 4  ;;  %3164 = vperm.xlu1 %3557, %v4516_v45   ;;  %v3030_v53 = vmin.f32 %v3029_v63, 1.0  ;;  %v3589_v17 = vpop.eup %3588  ;;  %v2653_v63 = vsel %vm4591_vm6, %v4880_v22, 0.0  ;;  %v4889_v22 = vld [vmem:[#allocation13_spill] sm:$0xff] }
 0x3c1   : > { %v3071_v28 = vrot.slane %v3589_v17, 4 }
 0x3c2   : > { %3044 = vperm.xlu0 %3551, %v3030_v53   ;;  %v3117_v61 = vmul.f32 %v4504_v23, %v3115_v38 }
 0x3c3   : > { %v3591_v7 = vpop.eup %3590  ;;  %v3073_v51 = vmul.f32 %v4512_v9, %v3071_v28 }
 0x3c4   : > { %3558 = vset.pattern.permute.xlu1 %v4871_v34  ;;  %v3159_v62 = vrot.slane %v3591_v7, 4  ;;  %v3118_v47 = vmin.f32 %v3117_v61, 1.0  ;;  %v4585_v34 = vpop.permute.xlu1 %2994  ;;  %v4881_v61 = vmin.f32 %v4337_v59, %v4335_v56  ;;  %v4882_v7 = vmin.f32 %v4365_v27, %v4303_v4  ;;  %v4884_v4 = vld [vmem:[#allocation11_spill] sm:$0xff]  ;;  %v4885_v27 = vld [vmem:[#allocation12_spill] sm:$0xff] }
 0x3c5   : > { %3170 = vperm.xlu1 %3558, %v4516_v45   ;;  %v3074_v8 = vmin.f32 %v3073_v51, 1.0  ;;  %v4883_v59 = vmin.f32 %v4361_v25, %v4339_v60 }
 0x3c6   : > { %v3161_v2 = vmul.f32 %v4516_v45, %v3159_v62  ;;  %v2785_v62 = vsel %vm4591_vm6, %v4882_v7, 0.0 }
 0x3c8   : > { %v3162_v58 = vmin.f32 %v3161_v2, 1.0  ;;  %v4589_v39 = vpop.permute.xlu1 %3038 }
 0x3c9   : > { %3559 = vset.pattern.permute.xlu1 %v4869_v29  ;;  %v4874_v29 = vmin.f32 %v4321_v49, %v4293_v44  ;;  %v4879_v49 = vmin.f32 %v4305_v6, %v4301_v3 }
 0x3ca   : > { %3132 = vperm.xlu1 %3559, %v3118_v47  }
 0x3cb   : > { %v2609_v32 = vsel %vm4591_vm6, %v4874_v29, 0.0  ;;  %v2565_v42 = vsel %vm4591_vm6, %v4879_v49, 0.0  ;;  %v2787_v29 = vrot.slane %v2785_v62, 4 }
 0x3cc   : > { %v2611_v12 = vrot.slane %v2609_v32, 4  ;;  %v2567_v6 = vrot.slane %v2565_v42, 4  ;;  %v2741_v32 = vsel %vm4591_vm6, %v4883_v59, 0.0 }
 0x3ce   : > { %3088 = vperm.xlu1 %3559, %v3074_v8  }
 0x3d2   : > { %3176 = vperm.xlu1 %3559, %v3162_v58  }
 0x410   : > { %v2605_v10 = vpop.permute.xlu1 %2604 }
 0x411   : > { %v2513_v33 = vpop.permute.xlu0 %2512  ;;  %v2606_v35 = vrot.slane %v2605_v10, 4  ;;  %v4886_v10 = vmin.f32 %v4884_v4, %v4885_v27 }
 0x412   : > { %v2514_v48 = vrot.slane %v2513_v33, 4 }
 0x413   : > { %v2608_v44 = vmul.f32 %v2606_v35, %v4415_v52  ;;  %v2829_v14 = vsel %vm4591_vm6, %v4886_v10, 0.0  ;;  %v2743_v35 = vrot.slane %v2741_v32, 4 }
 0x414   : > { %v2516_v36 = vmul.f32 %v2514_v48, %v4419_v55  ;;  %v2561_v43 = vpop.permute.xlu1 %2560  ;;  %v2655_v55 = vrot.slane %v2653_v63, 4  ;;  %v2831_v48 = vrot.slane %v2829_v14, 4  ;;  %v4890_v63 = vld [vmem:[#allocation8_spill] sm:$0xff] }
 0x415   : > { %v2613_v41 = vsel %vm2474_vm2, %v2608_v44, %v2611_v12  ;;  %v2649_v52 = vpop.permute.xlu0 %2648  ;;  %v2562_v38 = vrot.slane %v2561_v43, 4  ;;  %v4887_v12 = vld [vmem:[#allocation16_spill] sm:$0xff]  ;;  %v4888_v44 = vld [vmem:[#allocation17_spill] sm:$0xff] }
 0x416   : > { %v2521_v3 = vsel %vm2474_vm2, %v2516_v36, %v2519_v24  ;;  %2614 = vst.msk [vmem:[%s4627_s18 + $0x2] sm:$0x1] %vm4607_vm7, %v2613_v41  ;;  %v2650_v46 = vrot.slane %v2649_v52, 4  ;;  %v4891_v41 = vmin.f32 %v4889_v22, %v4890_v63 }
 0x417   : > { %2526 = vst.msk [vmem:[%s4627_s18] sm:$0x1] %vm4607_vm7, %v2521_v3  ;;  %v2564_v50 = vmul.f32 %v2562_v38, %v4427_v0  ;;  %v2697_v0 = vsel %vm4591_vm6, %v4881_v61, 0.0 }
 0x418   : > { %v2652_v53 = vmul.f32 %v2650_v46, %v4431_v54  ;;  %v2699_v2 = vrot.slane %v2697_v0, 4  ;;  %v2873_v52 = vsel %vm4591_vm6, %v4891_v41, 0.0  ;;  %v2991_v46 = vsub.f32 %v4554_v21, %v4473_v37 }
 0x419   : > { %v2569_v17 = vsel %vm2474_vm2, %v2564_v50, %v2567_v6  ;;  %v2875_v6 = vrot.slane %v2873_v52, 4  ;;  %v4892_v50 = vld [vmem:[#allocation18_spill] sm:$0xff] }
 0x41a   : > { %v2657_v28 = vsel %vm2474_vm2, %v2652_v53, %v2655_v55  ;;  %2570 = vst.msk [vmem:[%s4627_s18 + $0x1] sm:$0x1] %vm4607_vm7, %v2569_v17  ;;  %v4893_v53 = vld [vmem:[#allocation15_spill] sm:$0xff]  ;;  %v4894_v17 = vld [vmem:[#allocation10_spill] sm:$0xff]  ;;  %v2992_v37 = vmax.f32 %v2991_v46, 0.0 }
 0x41b   : > { %2658 = vst.msk [vmem:[%s4627_s18 + $0x3] sm:$0x1] %vm4607_vm7, %v2657_v28  ;;  %v4895_v28 = vmin.f32 %v4893_v53, %v4894_v17 }
 0x41c   : > { %v2997_v59 = vmin.f32 %v2992_v37, %v4585_v34 }
 0x41d   : > { %v2961_v61 = vsel %vm4591_vm6, %v4895_v28, 0.0 }
 0x41e   : > { %v2963_v21 = vrot.slane %v2961_v61, 4 }
 0x421   : > { %v2693_v54 = vpop.permute.xlu1 %2692 }
 0x422   : > { %v2781_v47 = vpop.permute.xlu0 %2780  ;;  %v2694_v51 = vrot.slane %v2693_v54, 4 }
 0x423   : > { %v2782_v8 = vrot.slane %v2781_v47, 4  ;;  %v3035_v47 = vsub.f32 %v4552_v26, %v4500_v19 }
 0x424   : > { %v2696_v58 = vmul.f32 %v2694_v51, %v4447_v30  ;;  %v4896_v51 = vld [vmem:[#allocation20_spill] sm:$0xff] }
 0x425   : > { %v2784_v56 = vmul.f32 %v2782_v8, %v4451_v31  ;;  %v3036_v27 = vmax.f32 %v3035_v47, 0.0 }
 0x426   : > { %v2701_v11 = vsel %vm2474_vm2, %v2696_v58, %v2699_v2  ;;  %v2825_v30 = vpop.permute.xlu0 %2824  ;;  %v2737_v33 = vpop.permute.xlu1 %2736  ;;  %v4897_v2 = vld [vmem:[#allocation14_spill] sm:$0xff]  ;;  %v4898_v58 = vld [vmem:[#allocation9_spill] sm:$0xff] }
 0x427   : > { %v2789_v31 = vsel %vm2474_vm2, %v2784_v56, %v2787_v29  ;;  %2702 = vst.msk [vmem:[%s4627_s18 + $0x4] sm:$0x1] %vm4607_vm7, %v2701_v11  ;;  %v2826_v60 = vrot.slane %v2825_v30, 4  ;;  %v2738_v25 = vrot.slane %v2737_v33, 4  ;;  %v4899_v29 = vmin.f32 %v4897_v2, %v4898_v58 }
 0x428   : > { %2790 = vst.msk [vmem:[%s4627_s18 + $0x6] sm:$0x1] %vm4607_vm7, %v2789_v31  ;;  %v3005_v11 = vsel %vm4591_vm6, %v2997_v59, 0.0  ;;  %v3041_v30 = vmin.f32 %v3036_v27, %v4589_v39 }
 0x429   : > { %v2828_v1 = vmul.f32 %v2826_v60, %v4887_v12  ;;  %v2740_v49 = vmul.f32 %v2738_v25, %v4888_v44  ;;  %v2917_v56 = vsel %vm4591_vm6, %v4899_v29, 0.0 }
 0x42a   : > { %v2919_v10 = vrot.slane %v2917_v56, 4  ;;  %v3049_v12 = vsel %vm4591_vm6, %v3041_v30, 0.0 }
 0x42b   : > { %v2833_v42 = vsel %vm2474_vm2, %v2828_v1, %v2831_v48  ;;  %v2745_v24 = vsel %vm2474_vm2, %v2740_v49, %v2743_v35  ;;  %v3077_v36 = vpop.permute.xlu1 %3076  ;;  %v3007_v35 = vrot.slane %v3005_v11, 4  ;;  %v4900_v48 = vld [vmem:[#allocation19_spill] sm:$0xff] }
 0x42c   : > { %2834 = vst.msk [vmem:[%s4627_s18 + $0x7] sm:$0x1] %vm4607_vm7, %v2833_v42  ;;  %2746 = vst.msk [vmem:[%s4627_s18 + $0x5] sm:$0x1] %vm4607_vm7, %v2745_v24  ;;  %v3079_v39 = vsub.f32 %v3077_v36, %v4512_v9  ;;  %v3051_v42 = vrot.slane %v3049_v12, 4 }
 0x42e   : > { %v3080_v63 = vmax.f32 %v3079_v39, 0.0 }
 0x430   : > { %v3083_v43 = vpop.permute.xlu1 %3082 }
 0x431   : > { %v2869_v38 = vpop.permute.xlu0 %2868  ;;  %v3085_v36 = vmin.f32 %v3080_v63, %v3083_v43 }
 0x432   : > { %v2870_v3 = vrot.slane %v2869_v38, 4 }
 0x434   : > { %v2872_v55 = vmul.f32 %v2870_v3, %v4892_v50 }
 0x435   : > { %v2957_v0 = vpop.permute.xlu0 %2956  ;;  %v3121_v54 = vpop.permute.xlu1 %3120 }
 0x436   : > { %v2877_v7 = vsel %vm2474_vm2, %v2872_v55, %v2875_v6  ;;  %v2958_v62 = vrot.slane %v2957_v0, 4  ;;  %v3123_v34 = vsub.f32 %v3121_v54, %v4504_v23 }
 0x437   : > { %2878 = vst.msk [vmem:[%s4627_s18 + $0x8] sm:$0x1] %vm4607_vm7, %v2877_v7 }
 0x438   : > { %v2960_v8 = vmul.f32 %v2958_v62, %v4896_v51  ;;  %v3124_v1 = vmax.f32 %v3123_v34, 0.0 }
 0x439   : > { %v2913_v32 = vpop.permute.xlu0 %2912 }
 0x43a   : > { %v2965_v19 = vsel %vm2474_vm2, %v2960_v8, %v2963_v21  ;;  %v2914_v26 = vrot.slane %v2913_v32, 4  ;;  %v3127_v4 = vpop.permute.xlu1 %3126 }
 0x43b   : > { %2966 = vst.msk [vmem:[%s4627_s18 + $0xa] sm:$0x1] %vm4607_vm7, %v2965_v19  ;;  %v3129_v41 = vmin.f32 %v3124_v1, %v3127_v4 }
 0x43c   : > { %v2916_v14 = vmul.f32 %v2914_v26, %v4509_v15 }
 0x43d   : > { %v3001_v33 = vpop.permute.xlu0 %3000  ;;  %v3137_v38 = vsel %vm4591_vm6, %v3129_v41, 0.0 }
 0x43e   : > { %v2921_v31 = vsel %vm2474_vm2, %v2916_v14, %v2919_v10  ;;  %v3002_v60 = vrot.slane %v3001_v33, 4  ;;  %v3139_v6 = vrot.slane %v3137_v38, 4 }
 0x43f   : > { %2922 = vst.msk [vmem:[%s4627_s18 + $0x9] sm:$0x1] %vm4607_vm7, %v2921_v31  ;;  %v3165_v25 = vpop.permute.xlu1 %3164 }
 0x440   : > { %v3004_v15 = vmul.f32 %v3002_v60, %v4900_v48  ;;  %v3167_v52 = vsub.f32 %v3165_v25, %v4516_v45  ;;  %v3093_v45 = vsel %vm4591_vm6, %v3085_v36, 0.0 }
 0x441   : > { %v3045_v23 = vpop.permute.xlu0 %3044  ;;  %v3095_v28 = vrot.slane %v3093_v45, 4 }
 0x442   : > { %v3009_v44 = vsel %vm2474_vm2, %v3004_v15, %v3007_v35  ;;  %v3046_v49 = vrot.slane %v3045_v23, 4  ;;  %v3168_v3 = vmax.f32 %v3167_v52, 0.0 }
 0x443   : > { %3010 = vst.msk [vmem:[%s4627_s18 + $0xb] sm:$0x1] %vm4607_vm7, %v3009_v44 }
 0x444   : > { %v3048_v24 = vmul.f32 %v3046_v49, %v4527_v18  ;;  %v3171_v22 = vpop.permute.xlu1 %3170 }
 0x445   : > { %v3173_v55 = vmin.f32 %v3168_v3, %v3171_v22 }
 0x446   : > { %v3053_v9 = vsel %vm2474_vm2, %v3048_v24, %v3051_v42 }
 0x447   : > { %3054 = vst.msk [vmem:[%s4627_s18 + $0xc] sm:$0x1] %vm4607_vm7, %v3053_v9 }
 0x449   : > { %v3133_v46 = vpop.permute.xlu1 %3132 }
 0x44a   : > { %v3134_v18 = vrot.slane %v3133_v46, 4 }
 0x44c   : > { %v3136_v50 = vmul.f32 %v3134_v18, %v4539_v57  ;;  %v3181_v57 = vsel %vm4591_vm6, %v3173_v55, 0.0 }
 0x44d   : > { %v3089_v53 = vpop.permute.xlu1 %3088  ;;  %v3183_v62 = vrot.slane %v3181_v57, 4 }
 0x44e   : > { %v3141_v43 = vsel %vm2474_vm2, %v3136_v50, %v3139_v6  ;;  %v3090_v17 = vrot.slane %v3089_v53, 4 }
 0x44f   : > { %3142 = vst.msk [vmem:[%s4627_s18 + $0xe] sm:$0x1] %vm4607_vm7, %v3141_v43 }
 0x450   : > { %v3092_v61 = vmul.f32 %v3090_v17, %v4533_v5 }
 0x451   : > { %v3177_v0 = vpop.permute.xlu1 %3176 }
 0x452   : > { %v3097_v54 = vsel %vm2474_vm2, %v3092_v61, %v3095_v28  ;;  %v3178_v7 = vrot.slane %v3177_v0, 4 }
 0x453   : > { %3098 = vst.msk [vmem:[%s4627_s18 + $0xd] sm:$0x1] %vm4607_vm7, %v3097_v54 }
 0x454   : > { %v3180_v47 = vmul.f32 %v3178_v7, %v4545_v20 }
 0x456   : > { %v3185_v5 = vsel %vm2474_vm2, %v3180_v47, %v3183_v62 }
 0x457   : > { %3186 = vst.msk [vmem:[%s4627_s18 + $0xf] sm:$0x1] %vm4607_vm7, %v3185_v5 }
 0x458   : > { %3651 = shalt.err (!%p3648_p3)
}
 0x459   : > { %s3652_s26 = scalar_lea.hbm %s4773_s11, 256  ;;  %s3656_s16 = scalar_lea.hbm %s4827_s6, 1024 }
 0x45a   : > { %p3653_p5 = scmp.ne.s32.totalorder %s4773_s11, %s3652_s26  ;;  %p3657_p13 = scmp.lt.u32.totalorder %s4773_s11, %s4827_s6 }
 0x45b   : > { %p3658_p0 = scmp.lt.u32.totalorder %s3656_s16, %s3652_s26  ;;  %p3660_p6 = scmp.lt.u32.totalorder %s3652_s26, %s4773_s11 }
 0x45c   : > { %p3654_p7 = pnand %p3653_p5, %p4901_p10 }
 0x45d   : > { %p3659_p2 = por %p3658_p0, %p3657_p13 }
 0x45e   : > { %p3655_p8 = pneg %p3654_p7 }
 0x45f   : > { %p3661_p11 = por %p3660_p6, %p3659_p2 }
 0x461   : > { %p3662_p12 = pnand %p3661_p11, %p3655_p8 }
 0x463   : > { %3665 = shalt.err (!%p3662_p12)
}
 0x464   : > { %3490 = dma.vmem_to_hbm [thread:$0]  (%p4901_p10), %s4775_s20, 256, %s4773_s11, %s3188_s25  }
 0x465 PF: > { %p3501_p4 = scmp.ge.s32.totalorder %s3704_s24, 2  ;;  %s3214_s19 = sand.u32 1, %s3692_s21  }
 0x466   : > { %p4902_p9 = scmp.ne.s32.totalorder %s4852_s10, 0  ;;  %s3215_s12 = scalar_lea.sflag [#allocation4], %s3214_s19 }
 0x468   : > { %p3497_p1 = pnand %p3501_p4, %p4902_p9 }
 0x46a   : > { %3687 = dma.done.wait (!%p3497_p1), %s3215_s12, 256  }
 0x46b   : > { %3689 = vsyncadd (!%p3497_p1), %s3215_s12, 4294967040  ;;  %p19_p3 = scmp.ge.s32.totalorder %s3773_s27, 6   ;;  %s4903_s21 = smov %s3696_s22 }
 0x46c   : > { %s4904_s22 = smov %s3700_s23  ;;  %s4905_s23 = smov %s3785_s30 }
 0x46d   : > { %s4906_s24 = smov %s3773_s27  ;;  %21 = sbr.rel (!%p19_p3) target bundleno = 5 (0x5), region = 89 }
 0x474   :  { %3220 = vsyncpa [#allocation3], 1 }
 0x475   :  { %3222 = vsyncpa [#allocation3 + $0x1], 1 }
 0x476   :  { %3223 = vsyncpa [#allocation4], 1 }
 0x477   :  { %3225 = vsyncpa [#allocation4 + $0x1], 1 }

</bundles_post_ra>
